<compile_context>
chip_gen: v7x
topology: tpu7x:2x2x1
jax: 0.10.0
libtpu: 0.0.40
codegen_flags: <defaults>
</compile_context>

<pallas_src>
import jax
import jax.numpy as jnp
from jax import lax
from jax.experimental import pallas as pl
from jax.experimental.pallas import tpu as pltpu

BN_EPS = 1e-5


def _dot(a, b):
    return jnp.dot(a, b, preferred_element_type=jnp.float32)


# --------------------------------------------------------------------------
# Fused UNet1D kernel
# --------------------------------------------------------------------------

def make_unet_kernel(n_blocks, N, L0):
    """Builds the fused UNet1D kernel.

    Parameters are consumed positionally in the order produced by
    `pack_params`: encoder blocks, bottleneck, decoder stages, final conv.
    """
    n_params = 4 * (n_blocks + 1) + 6 * n_blocks + 2

    def kernel(*refs):
        x_ref = refs[0]
        p_refs = refs[1:1 + n_params]
        o_ref = refs[1 + n_params]
        pad_ref = refs[2 + n_params]          # VMEM scratch: (C_max, N*L0 + 2)

        it = iter(p_refs)

        # -- caches so iota masks / selectors are only traced once per size --
        mask_cache, pool_cache, up_cache = {}, {}, {}

        def boundary_masks(L):
            nl = N * L
            if L not in mask_cache:
                lane = lax.broadcasted_iota(jnp.int32, (1, nl), 1)
                keep_f = None
                keep_l = None
                for n in range(N):
                    cf = lane != n * L            # first position of batch n
                    cl = lane != n * L + L - 1    # last position of batch n
                    keep_f = cf if keep_f is None else jnp.logical_and(keep_f, cf)
                    keep_l = cl if keep_l is None else jnp.logical_and(keep_l, cl)
                mask_cache[L] = (jnp.where(keep_f, 1.0, 0.0),
                                 jnp.where(keep_l, 1.0, 0.0))
            return mask_cache[L]

        def pool_selectors(L):
            nl = N * L
            if L not in pool_cache:
                rows = lax.broadcasted_iota(jnp.int32, (nl, nl // 2), 0)
                cols = lax.broadcasted_iota(jnp.int32, (nl, nl // 2), 1)
                pool_cache[L] = (jnp.where(rows == 2 * cols, 1.0, 0.0),
                                 jnp.where(rows == 2 * cols + 1, 1.0, 0.0))
            return pool_cache[L]

        def up_selectors(L):
            nl = N * L
            if L not in up_cache:
                rows = lax.broadcasted_iota(jnp.int32, (nl, 2 * nl), 0)
                cols = lax.broadcasted_iota(jnp.int32, (nl, 2 * nl), 1)
                up_cache[L] = (jnp.where(cols == 2 * rows, 1.0, 0.0),
                               jnp.where(cols == 2 * rows + 1, 1.0, 0.0))
            return up_cache[L]

        # -- fused layer helpers; all activations are (C, N*L) f32 slabs ----
        def conv3_bn_relu(segments, w_ref, g_ref, bt_ref, L):
            """Conv1d(k=3, padding=1) -> BatchNorm1d(batch stats) -> ReLU.

            `segments` is a list of (Ci_s, N*L) slabs occupying consecutive
            input-channel rows of the padding scratch (this also realizes the
            decoder skip-concat for free).  The conv bias is omitted: it is
            exactly cancelled by the BN mean subtraction.
            """
            nl = N * L
            row = 0
            for z in segments:
                ci = z.shape[0]
                pad_ref[row:row + ci, 1:nl + 1] = z
                row += ci
            ct = row
            zcol = jnp.zeros((ct, 1), jnp.float32)
            pad_ref[0:ct, 0:1] = zcol                     # left 'same' pad
            pad_ref[0:ct, nl + 1:nl + 2] = zcol           # right 'same' pad

            m_first, m_last = boundary_masks(L)
            x0 = pad_ref[0:ct, 0:nl] * m_first            # tap at offset -1
            x1 = pad_ref[0:ct, 1:nl + 1]                  # center tap
            x2 = pad_ref[0:ct, 2:nl + 2] * m_last         # tap at offset +1
            y = _dot(w_ref[0], x0) + _dot(w_ref[1], x1) + _dot(w_ref[2], x2)

            # BatchNorm1d in training mode: per-channel stats over (N, L),
            # biased variance.  One-pass moments + folded affine: only
            # mul/add/max touch the full slab after the conv.
            mean = jnp.mean(y, axis=1, keepdims=True)
            msq = jnp.mean(y * y, axis=1, keepdims=True)
            var = jnp.maximum(msq - mean * mean, 0.0)
            scale = g_ref[...] * lax.rsqrt(var + BN_EPS)   # (Co, 1)
            shift = bt_ref[...] - mean * scale             # (Co, 1)
            return jnp.maximum(y * scale + shift, 0.0)

        def conv_block(segments, w1_ref, w2_ref, g_ref, bt_ref, L):
            h = conv3_bn_relu(segments, w1_ref, g_ref, bt_ref, L)
            return conv3_bn_relu([h], w2_ref, g_ref, bt_ref, L)

        def maxpool2(z, L):
            s_even, s_odd = pool_selectors(L)
            return jnp.maximum(_dot(z, s_even), _dot(z, s_odd))

        def conv_transpose2(z, w_ref, b_ref, L):
            u0 = _dot(w_ref[0], z)                        # even output taps
            u1 = _dot(w_ref[1], z)                        # odd output taps
            e_even, e_odd = up_selectors(L)
            return _dot(u0, e_even) + _dot(u1, e_odd) + b_ref[...]

        # -- forward pass ----------------------------------------------------
        L = L0
        z = x_ref[...]                                    # (Cin, N*L)
        skips = []
        for _ in range(n_blocks):                         # encoder
            w1, w2, g, bt = next(it), next(it), next(it), next(it)
            z = conv_block([z], w1, w2, g, bt, L)
            skips.append(z)
            z = maxpool2(z, L)
            L //= 2

        w1, w2, g, bt = next(it), next(it), next(it), next(it)
        z = conv_block([z], w1, w2, g, bt, L)             # bottleneck

        for _ in range(n_blocks):                         # decoder
            up_w, up_b = next(it), next(it)
            w1, w2, g, bt = next(it), next(it), next(it), next(it)
            z = conv_transpose2(z, up_w, up_b, L)
            L *= 2
            skip = skips.pop()
            # TODO(synk): nearest-neighbor resize (F.interpolate) when the
            # upsampled length differs from the skip length; never triggers
            # when L is divisible by 2**depth (asserted in the wrapper).
            z = conv_block([skip, z], w1, w2, g, bt, L)   # concat via rows

        wf, bf = next(it), next(it)                       # final 1x1 conv
        o_ref[...] = _dot(wf[...], z) + bf[...]

    return kernel, n_params


# --------------------------------------------------------------------------
# Wrapper (packs params, single pallas_call, layout glue on tiny in/out only)
# --------------------------------------------------------------------------

def pack_params(params):
    """Flatten & pre-transpose parameters into the kernel's positional order."""
    def conv3(w):                                  # (Co, Ci, 3) -> (3, Co, Ci)
        return jnp.transpose(w, (2, 0, 1)).astype(jnp.float32)

    def col(v):
        return jnp.reshape(v, (-1, 1)).astype(jnp.float32)

    flat = []

    def add_block(p):
        # Conv biases b1/b2 are intentionally not passed: a per-channel bias
        # added right before BatchNorm is exactly cancelled by the mean
        # subtraction (mathematically identical, one fewer add per conv).
        flat.extend([conv3(p["w1"]), conv3(p["w2"]),
                     col(p["gamma"]), col(p["beta"])])

    for p in params["encoder"]:
        add_block(p)
    add_block(params["bottleneck"])
    for d in params["decoder"]:
        flat.append(jnp.transpose(d["up_w"], (2, 1, 0)).astype(jnp.float32))
        flat.append(col(d["up_b"]))
        add_block(d["block"])
    flat.append(params["final_w"][:, :, 0].astype(jnp.float32))
    flat.append(col(params["final_b"]))
    return flat


def unet1d_forward(params, x):
    """UNet1D forward pass, fully fused into a single Pallas TPU kernel."""
    N, Cin, L = x.shape
    n_blocks = len(params["encoder"])
    assert L % (2 ** n_blocks) == 0, "L must be divisible by 2**len(features)"
    Cout = params["final_w"].shape[0]

    kernel, n_params = make_unet_kernel(n_blocks, N, L)
    flat = pack_params(params)
    assert len(flat) == n_params

    # Fold batch into the lane dimension: (N, Cin, L) -> (Cin, N*L).
    x2d = jnp.reshape(jnp.transpose(x, (1, 0, 2)), (Cin, N * L))

    # Rows of the in-kernel padding scratch = max input channels of any conv.
    blocks = (params["encoder"] + [params["bottleneck"]]
              + [d["block"] for d in params["decoder"]])
    c_pad = max(max(p["w1"].shape[1], p["w2"].shape[1]) for p in blocks)

    vmem = pl.BlockSpec(memory_space=pltpu.MemorySpace.VMEM)
    out2d = pl.pallas_call(
        kernel,
        out_shape=jax.ShapeDtypeStruct((Cout, N * L), jnp.float32),
        in_specs=[vmem] * (1 + n_params),
        out_specs=vmem,
        scratch_shapes=[pltpu.VMEM((c_pad, N * L + 2), jnp.float32)],
    )(x2d, *flat)

    return jnp.transpose(jnp.reshape(out2d, (Cout, N, L)), (1, 0, 2))


# --------------------------------------------------------------------------
# Pure-JAX reference (mirrors the PyTorch module; used only for validation)
# --------------------------------------------------------------------------

def unet1d_reference(params, x):
    hi = lax.Precision.HIGHEST

    def conv1d3(x, w, b):                    # Conv1d(k=3, padding=1)
        L = x.shape[2]
        xp = jnp.pad(x, ((0, 0), (0, 0), (1, 1)))
        out = sum(jnp.einsum("oc,ncl->nol", w[:, :, t], xp[:, :, t:t + L],
                             precision=hi) for t in range(3))
        return out + b[None, :, None]

    def bn_relu(x, gamma, beta):             # BatchNorm1d, training mode
        mean = jnp.mean(x, axis=(0, 2), keepdims=True)
        var = jnp.mean((x - mean) ** 2, axis=(0, 2), keepdims=True)
        xh = (x - mean) / jnp.sqrt(var + BN_EPS)
        return jnp.maximum(xh * gamma[None, :, None] + beta[None, :, None], 0.0)

    def conv_block(x, p):
        x = bn_relu(conv1d3(x, p["w1"], p["b1"]), p["gamma"], p["beta"])
        return bn_relu(conv1d3(x, p["w2"], p["b2"]), p["gamma"], p["beta"])

    def maxpool2(x):
        n, c, l = x.shape
        return jnp.max(jnp.reshape(x, (n, c, l // 2, 2)), axis=-1)

    def conv_transpose2(x, w, b):            # ConvTranspose1d(k=2, s=2)
        y = jnp.einsum("ncl,cok->nolk", x, w, precision=hi)
        n, co, l, k = y.shape
        return jnp.reshape(y, (n, co, l * k)) + b[None, :, None]

    skips, z = [], x
    for p in params["encoder"]:
        z = conv_block(z, p)
        skips.append(z)
        z = maxpool2(z)
    z = conv_block(z, params["bottleneck"])
    for d, skip in zip(params["decoder"], reversed(skips)):
        z = conv_transpose2(z, d["up_w"], d["up_b"])
        z = conv_block(jnp.concatenate([skip, z], axis=1), d["block"])
    return (jnp.einsum("oc,ncl->nol", params["final_w"][:, :, 0], z,
                       precision=hi) + params["final_b"][None, :, None])


# --------------------------------------------------------------------------
# Parameter init (deterministic, synthetic; mirrors the PyTorch module shapes)
# --------------------------------------------------------------------------

def init_conv(key, co, ci, k):
    kw, kb = jax.random.split(key)
    bound = 1.0 / float(ci * k) ** 0.5
    w = jax.random.uniform(kw, (co, ci, k), jnp.float32, -bound, bound)
    b = jax.random.uniform(kb, (co,), jnp.float32, -bound, bound)
    return w, b


def init_convblock(key, ci, co):
    k1, k2, kg, kb = jax.random.split(key, 4)
    w1, b1 = init_conv(k1, co, ci, 3)
    w2, b2 = init_conv(k2, co, co, 3)
    gamma = 1.0 + 0.1 * jax.random.normal(kg, (co,), jnp.float32)
    beta = 0.1 * jax.random.normal(kb, (co,), jnp.float32)
    return dict(w1=w1, b1=b1, w2=w2, b2=b2, gamma=gamma, beta=beta)


def init_convtranspose(key, ci, co, k=2):
    kw, kb = jax.random.split(key)
    bound = 1.0 / float(ci * k) ** 0.5
    w = jax.random.uniform(kw, (ci, co, k), jnp.float32, -bound, bound)
    b = jax.random.uniform(kb, (co,), jnp.float32, -bound, bound)
    return w, b


def init_unet(key, in_channels=1, out_channels=1, features=(8, 16)):
    enc = []
    ci = in_channels
    for f in features:
        key, sub = jax.random.split(key)
        enc.append(init_convblock(sub, ci, f))
        ci = f
    key, sub = jax.random.split(key)
    bottleneck = init_convblock(sub, features[-1], features[-1] * 2)
    dec = []
    for f in reversed(features):
        key, sub = jax.random.split(key)
        up_w, up_b = init_convtranspose(sub, f * 2, f, 2)
        key, sub = jax.random.split(key)
        blk = init_convblock(sub, f * 2, f)
        dec.append(dict(up_w=up_w, up_b=up_b, block=blk))
    key, sub = jax.random.split(key)
    fw, fb = init_conv(sub, out_channels, features[0], 1)
    return dict(encoder=enc, bottleneck=bottleneck, decoder=dec,
                final_w=fw, final_b=fb)


# --------------------------------------------------------------------------

if __name__ == "__main__":
    key = jax.random.PRNGKey(0)
    kp, kx = jax.random.split(key)

    features = (8, 16)          # small features (module default is 64..512)
    N, Cin, L = 2, 1, 32
    params = init_unet(kp, in_channels=Cin, out_channels=1, features=features)
    x = jax.random.normal(kx, (N, Cin, L), jnp.float32)   # (N, C, L)

    out = jax.block_until_ready(jax.jit(unet1d_forward)(params, x))
    ref = jax.block_until_ready(jax.jit(unet1d_reference)(params, x))

    assert out.shape == (N, 1, L), out.shape
    assert ref.shape == out.shape
    assert bool(jnp.all(jnp.isfinite(out)))
    max_err = float(jnp.max(jnp.abs(out - ref)))
    # Loose enough for MXU pass differences, tight enough to catch any
    # structural bug (taps, masks, concat order, BN stats).
    assert max_err < 5e-2, f"max abs err vs reference: {max_err}"
    print("KERNEL_OK")
</pallas_src>

<mosaic_0001>
module attributes {stable_mosaic.version = 11 : i64} {
  func.func @kernel(%arg0: memref<1x64xf32, #tpu.memory_space<vmem>>, %arg1: memref<3x8x1xf32, #tpu.memory_space<vmem>>, %arg2: memref<3x8x8xf32, #tpu.memory_space<vmem>>, %arg3: memref<8x1xf32, #tpu.memory_space<vmem>>, %arg4: memref<8x1xf32, #tpu.memory_space<vmem>>, %arg5: memref<3x16x8xf32, #tpu.memory_space<vmem>>, %arg6: memref<3x16x16xf32, #tpu.memory_space<vmem>>, %arg7: memref<16x1xf32, #tpu.memory_space<vmem>>, %arg8: memref<16x1xf32, #tpu.memory_space<vmem>>, %arg9: memref<3x32x16xf32, #tpu.memory_space<vmem>>, %arg10: memref<3x32x32xf32, #tpu.memory_space<vmem>>, %arg11: memref<32x1xf32, #tpu.memory_space<vmem>>, %arg12: memref<32x1xf32, #tpu.memory_space<vmem>>, %arg13: memref<2x16x32xf32, #tpu.memory_space<vmem>>, %arg14: memref<16x1xf32, #tpu.memory_space<vmem>>, %arg15: memref<3x16x32xf32, #tpu.memory_space<vmem>>, %arg16: memref<3x16x16xf32, #tpu.memory_space<vmem>>, %arg17: memref<16x1xf32, #tpu.memory_space<vmem>>, %arg18: memref<16x1xf32, #tpu.memory_space<vmem>>, %arg19: memref<2x8x16xf32, #tpu.memory_space<vmem>>, %arg20: memref<8x1xf32, #tpu.memory_space<vmem>>, %arg21: memref<3x8x16xf32, #tpu.memory_space<vmem>>, %arg22: memref<3x8x8xf32, #tpu.memory_space<vmem>>, %arg23: memref<8x1xf32, #tpu.memory_space<vmem>>, %arg24: memref<8x1xf32, #tpu.memory_space<vmem>>, %arg25: memref<1x8xf32, #tpu.memory_space<vmem>>, %arg26: memref<1x1xf32, #tpu.memory_space<vmem>>, %arg27: memref<1x64xf32, #tpu.memory_space<vmem>>, %arg28: memref<32x66xf32, #tpu.memory_space<vmem>>) attributes {dimension_semantics = [], scalar_prefetch = 0 : i64, scratch_operands = 1 : i64, tpu.core_type = #tpu.core_type<tc>} {
    %c0 = arith.constant 0 : index
    %c0_0 = arith.constant 0 : index
    %0 = vector.load %arg0[%c0, %c0_0] : memref<1x64xf32, #tpu.memory_space<vmem>>, vector<1x64xf32>
    %c0_1 = arith.constant 0 : index
    %c1 = arith.constant 1 : index
    %1 = vector.load %arg28[%c0_1, %c1] : memref<32x66xf32, #tpu.memory_space<vmem>>, vector<1x64xf32>
    tpu.vector_store %arg28[%c0_1, %c1], %0 {strides = array<i32>} : memref<32x66xf32, #tpu.memory_space<vmem>>, vector<1x64xf32>,
    %cst = arith.constant 0.000000e+00 : f32
    %2 = vector.broadcast %cst : f32 to vector<1x1xf32>
    %c0_2 = arith.constant 0 : index
    %c0_3 = arith.constant 0 : index
    %3 = vector.load %arg28[%c0_2, %c0_3] : memref<32x66xf32, #tpu.memory_space<vmem>>, vector<1x1xf32>
    tpu.vector_store %arg28[%c0_2, %c0_3], %2 {strides = array<i32>} : memref<32x66xf32, #tpu.memory_space<vmem>>, vector<1x1xf32>,
    %c0_4 = arith.constant 0 : index
    %c65 = arith.constant 65 : index
    %4 = vector.load %arg28[%c0_4, %c65] : memref<32x66xf32, #tpu.memory_space<vmem>>, vector<1x1xf32>
    tpu.vector_store %arg28[%c0_4, %c65], %2 {strides = array<i32>} : memref<32x66xf32, #tpu.memory_space<vmem>>, vector<1x1xf32>,
    %5 = tpu.iota {dimensions = array<i32: 1>} : vector<1x64xi32>
    %c0_i32 = arith.constant 0 : i32
    %6 = vector.broadcast %c0_i32 : i32 to vector<1x64xi32>
    %7 = arith.cmpi ne, %5, %6 : vector<1x64xi32>
    %c31_i32 = arith.constant 31 : i32
    %8 = vector.broadcast %c31_i32 : i32 to vector<1x64xi32>
    %9 = arith.cmpi ne, %5, %8 : vector<1x64xi32>
    %c32_i32 = arith.constant 32 : i32
    %10 = vector.broadcast %c32_i32 : i32 to vector<1x64xi32>
    %11 = arith.cmpi ne, %5, %10 : vector<1x64xi32>
    %c63_i32 = arith.constant 63 : i32
    %12 = vector.broadcast %c63_i32 : i32 to vector<1x64xi32>
    %13 = arith.cmpi ne, %5, %12 : vector<1x64xi32>
    %14 = arith.andi %7, %11 : vector<1x64xi1>
    %15 = arith.andi %9, %13 : vector<1x64xi1>
    %cst_5 = arith.constant 1.000000e+00 : f32
    %cst_6 = arith.constant 0.000000e+00 : f32
    %16 = vector.broadcast %cst_5 : f32 to vector<1x64xf32>
    %17 = vector.broadcast %cst_6 : f32 to vector<1x64xf32>
    %18 = arith.select %14, %16, %17 : vector<1x64xi1>, vector<1x64xf32>
    %cst_7 = arith.constant 1.000000e+00 : f32
    %cst_8 = arith.constant 0.000000e+00 : f32
    %19 = vector.broadcast %cst_7 : f32 to vector<1x64xf32>
    %20 = vector.broadcast %cst_8 : f32 to vector<1x64xf32>
    %21 = arith.select %15, %19, %20 : vector<1x64xi1>, vector<1x64xf32>
    %c0_9 = arith.constant 0 : index
    %c0_10 = arith.constant 0 : index
    %22 = vector.load %arg28[%c0_9, %c0_10] : memref<32x66xf32, #tpu.memory_space<vmem>>, vector<1x64xf32>
    %23 = arith.mulf %22, %18 : vector<1x64xf32>
    %c0_11 = arith.constant 0 : index
    %c1_12 = arith.constant 1 : index
    %24 = vector.load %arg28[%c0_11, %c1_12] : memref<32x66xf32, #tpu.memory_space<vmem>>, vector<1x64xf32>
    %c0_13 = arith.constant 0 : index
    %c2 = arith.constant 2 : index
    %25 = vector.load %arg28[%c0_13, %c2] : memref<32x66xf32, #tpu.memory_space<vmem>>, vector<1x64xf32>
    %26 = arith.mulf %25, %21 : vector<1x64xf32>
    %c0_14 = arith.constant 0 : index
    %c0_15 = arith.constant 0 : index
    %c0_16 = arith.constant 0 : index
    %27 = vector.load %arg1[%c0_14, %c0_15, %c0_16] : memref<3x8x1xf32, #tpu.memory_space<vmem>>, vector<1x8x1xf32>
    %28 = vector.shape_cast %27 : vector<1x8x1xf32> to vector<8x1xf32>
    %cst_17 = arith.constant dense<0.000000e+00> : vector<8x64xf32>
    %29 = tpu.matmul %28, %23, %cst_17 {dimension_numbers = #tpu.dot_dimension_numbers<[1], [0], [0], [1], [0, 0, 1, 1], [], []>} : vector<8x1xf32>, vector<1x64xf32>, vector<8x64xf32> -> vector<8x64xf32>
    %c1_18 = arith.constant 1 : index
    %c0_19 = arith.constant 0 : index
    %c0_20 = arith.constant 0 : index
    %30 = vector.load %arg1[%c1_18, %c0_19, %c0_20] : memref<3x8x1xf32, #tpu.memory_space<vmem>>, vector<1x8x1xf32>
    %31 = vector.shape_cast %30 : vector<1x8x1xf32> to vector<8x1xf32>
    %cst_21 = arith.constant dense<0.000000e+00> : vector<8x64xf32>
    %32 = tpu.matmul %31, %24, %cst_21 {dimension_numbers = #tpu.dot_dimension_numbers<[1], [0], [0], [1], [0, 0, 1, 1], [], []>} : vector<8x1xf32>, vector<1x64xf32>, vector<8x64xf32> -> vector<8x64xf32>
    %33 = arith.addf %29, %32 : vector<8x64xf32>
    %c2_22 = arith.constant 2 : index
    %c0_23 = arith.constant 0 : index
    %c0_24 = arith.constant 0 : index
    %34 = vector.load %arg1[%c2_22, %c0_23, %c0_24] : memref<3x8x1xf32, #tpu.memory_space<vmem>>, vector<1x8x1xf32>
    %35 = vector.shape_cast %34 : vector<1x8x1xf32> to vector<8x1xf32>
    %cst_25 = arith.constant dense<0.000000e+00> : vector<8x64xf32>
    %36 = tpu.matmul %35, %26, %cst_25 {dimension_numbers = #tpu.dot_dimension_numbers<[1], [0], [0], [1], [0, 0, 1, 1], [], []>} : vector<8x1xf32>, vector<1x64xf32>, vector<8x64xf32> -> vector<8x64xf32>
    %37 = arith.addf %33, %36 : vector<8x64xf32>
    %cst_26 = arith.constant dense<0.000000e+00> : vector<8xf32>
    %38 = vector.multi_reduction <add>, %37, %cst_26 [1] : vector<8x64xf32> to vector<8xf32>
    %39 = vector.shape_cast %38 : vector<8xf32> to vector<8x1xf32>
    %cst_27 = arith.constant 6.400000e+01 : f32
    %40 = vector.broadcast %cst_27 : f32 to vector<8x1xf32>
    %41 = arith.divf %39, %40 : vector<8x1xf32>
    %42 = arith.mulf %37, %37 : vector<8x64xf32>
    %cst_28 = arith.constant dense<0.000000e+00> : vector<8xf32>
    %43 = vector.multi_reduction <add>, %42, %cst_28 [1] : vector<8x64xf32> to vector<8xf32>
    %44 = vector.shape_cast %43 : vector<8xf32> to vector<8x1xf32>
    %cst_29 = arith.constant 6.400000e+01 : f32
    %45 = vector.broadcast %cst_29 : f32 to vector<8x1xf32>
    %46 = arith.divf %44, %45 : vector<8x1xf32>
    %47 = arith.mulf %41, %41 : vector<8x1xf32>
    %48 = arith.subf %46, %47 : vector<8x1xf32>
    %cst_30 = arith.constant 0.000000e+00 : f32
    %49 = vector.broadcast %cst_30 : f32 to vector<8x1xf32>
    %50 = arith.maximumf %48, %49 : vector<8x1xf32>
    %c0_31 = arith.constant 0 : index
    %c0_32 = arith.constant 0 : index
    %51 = vector.load %arg3[%c0_31, %c0_32] : memref<8x1xf32, #tpu.memory_space<vmem>>, vector<8x1xf32>
    %cst_33 = arith.constant 9.99999974E-6 : f32
    %52 = vector.broadcast %cst_33 : f32 to vector<8x1xf32>
    %53 = arith.addf %50, %52 : vector<8x1xf32>
    %54 = math.rsqrt %53 : vector<8x1xf32>
    %55 = arith.mulf %51, %54 : vector<8x1xf32>
    %c0_34 = arith.constant 0 : index
    %c0_35 = arith.constant 0 : index
    %56 = vector.load %arg4[%c0_34, %c0_35] : memref<8x1xf32, #tpu.memory_space<vmem>>, vector<8x1xf32>
    %57 = arith.mulf %41, %55 : vector<8x1xf32>
    %58 = arith.subf %56, %57 : vector<8x1xf32>
    %59 = vector.broadcast %55 : vector<8x1xf32> to vector<8x64xf32>
    %60 = arith.mulf %37, %59 : vector<8x64xf32>
    %61 = vector.broadcast %58 : vector<8x1xf32> to vector<8x64xf32>
    %62 = arith.addf %60, %61 : vector<8x64xf32>
    %cst_36 = arith.constant 0.000000e+00 : f32
    %63 = vector.broadcast %cst_36 : f32 to vector<8x64xf32>
    %64 = arith.maximumf %62, %63 : vector<8x64xf32>
    %c0_37 = arith.constant 0 : index
    %c1_38 = arith.constant 1 : index
    %65 = vector.load %arg28[%c0_37, %c1_38] : memref<32x66xf32, #tpu.memory_space<vmem>>, vector<8x64xf32>
    tpu.vector_store %arg28[%c0_37, %c1_38], %64 {strides = array<i32>} : memref<32x66xf32, #tpu.memory_space<vmem>>, vector<8x64xf32>,
    %cst_39 = arith.constant 0.000000e+00 : f32
    %66 = vector.broadcast %cst_39 : f32 to vector<8x1xf32>
    %c0_40 = arith.constant 0 : index
    %c0_41 = arith.constant 0 : index
    %67 = vector.load %arg28[%c0_40, %c0_41] : memref<32x66xf32, #tpu.memory_space<vmem>>, vector<8x1xf32>
    tpu.vector_store %arg28[%c0_40, %c0_41], %66 {strides = array<i32>} : memref<32x66xf32, #tpu.memory_space<vmem>>, vector<8x1xf32>,
    %c0_42 = arith.constant 0 : index
    %c65_43 = arith.constant 65 : index
    %68 = vector.load %arg28[%c0_42, %c65_43] : memref<32x66xf32, #tpu.memory_space<vmem>>, vector<8x1xf32>
    tpu.vector_store %arg28[%c0_42, %c65_43], %66 {strides = array<i32>} : memref<32x66xf32, #tpu.memory_space<vmem>>, vector<8x1xf32>,
    %c0_44 = arith.constant 0 : index
    %c0_45 = arith.constant 0 : index
    %69 = vector.load %arg28[%c0_44, %c0_45] : memref<32x66xf32, #tpu.memory_space<vmem>>, vector<8x64xf32>
    %70 = vector.broadcast %18 : vector<1x64xf32> to vector<8x64xf32>
    %71 = arith.mulf %69, %70 : vector<8x64xf32>
    %c0_46 = arith.constant 0 : index
    %c1_47 = arith.constant 1 : index
    %72 = vector.load %arg28[%c0_46, %c1_47] : memref<32x66xf32, #tpu.memory_space<vmem>>, vector<8x64xf32>
    %c0_48 = arith.constant 0 : index
    %c2_49 = arith.constant 2 : index
    %73 = vector.load %arg28[%c0_48, %c2_49] : memref<32x66xf32, #tpu.memory_space<vmem>>, vector<8x64xf32>
    %74 = vector.broadcast %21 : vector<1x64xf32> to vector<8x64xf32>
    %75 = arith.mulf %73, %74 : vector<8x64xf32>
    %c0_50 = arith.constant 0 : index
    %c0_51 = arith.constant 0 : index
    %c0_52 = arith.constant 0 : index
    %76 = vector.load %arg2[%c0_50, %c0_51, %c0_52] : memref<3x8x8xf32, #tpu.memory_space<vmem>>, vector<1x8x8xf32>
    %77 = vector.shape_cast %76 : vector<1x8x8xf32> to vector<8x8xf32>
    %cst_53 = arith.constant dense<0.000000e+00> : vector<8x64xf32>
    %78 = tpu.matmul %77, %71, %cst_53 {dimension_numbers = #tpu.dot_dimension_numbers<[1], [0], [0], [1], [0, 0, 1, 1], [], []>} : vector<8x8xf32>, vector<8x64xf32>, vector<8x64xf32> -> vector<8x64xf32>
    %c1_54 = arith.constant 1 : index
    %c0_55 = arith.constant 0 : index
    %c0_56 = arith.constant 0 : index
    %79 = vector.load %arg2[%c1_54, %c0_55, %c0_56] : memref<3x8x8xf32, #tpu.memory_space<vmem>>, vector<1x8x8xf32>
    %80 = vector.shape_cast %79 : vector<1x8x8xf32> to vector<8x8xf32>
    %cst_57 = arith.constant dense<0.000000e+00> : vector<8x64xf32>
    %81 = tpu.matmul %80, %72, %cst_57 {dimension_numbers = #tpu.dot_dimension_numbers<[1], [0], [0], [1], [0, 0, 1, 1], [], []>} : vector<8x8xf32>, vector<8x64xf32>, vector<8x64xf32> -> vector<8x64xf32>
    %82 = arith.addf %78, %81 : vector<8x64xf32>
    %c2_58 = arith.constant 2 : index
    %c0_59 = arith.constant 0 : index
    %c0_60 = arith.constant 0 : index
    %83 = vector.load %arg2[%c2_58, %c0_59, %c0_60] : memref<3x8x8xf32, #tpu.memory_space<vmem>>, vector<1x8x8xf32>
    %84 = vector.shape_cast %83 : vector<1x8x8xf32> to vector<8x8xf32>
    %cst_61 = arith.constant dense<0.000000e+00> : vector<8x64xf32>
    %85 = tpu.matmul %84, %75, %cst_61 {dimension_numbers = #tpu.dot_dimension_numbers<[1], [0], [0], [1], [0, 0, 1, 1], [], []>} : vector<8x8xf32>, vector<8x64xf32>, vector<8x64xf32> -> vector<8x64xf32>
    %86 = arith.addf %82, %85 : vector<8x64xf32>
    %cst_62 = arith.constant dense<0.000000e+00> : vector<8xf32>
    %87 = vector.multi_reduction <add>, %86, %cst_62 [1] : vector<8x64xf32> to vector<8xf32>
    %88 = vector.shape_cast %87 : vector<8xf32> to vector<8x1xf32>
    %cst_63 = arith.constant 6.400000e+01 : f32
    %89 = vector.broadcast %cst_63 : f32 to vector<8x1xf32>
    %90 = arith.divf %88, %89 : vector<8x1xf32>
    %91 = arith.mulf %86, %86 : vector<8x64xf32>
    %cst_64 = arith.constant dense<0.000000e+00> : vector<8xf32>
    %92 = vector.multi_reduction <add>, %91, %cst_64 [1] : vector<8x64xf32> to vector<8xf32>
    %93 = vector.shape_cast %92 : vector<8xf32> to vector<8x1xf32>
    %cst_65 = arith.constant 6.400000e+01 : f32
    %94 = vector.broadcast %cst_65 : f32 to vector<8x1xf32>
    %95 = arith.divf %93, %94 : vector<8x1xf32>
    %96 = arith.mulf %90, %90 : vector<8x1xf32>
    %97 = arith.subf %95, %96 : vector<8x1xf32>
    %cst_66 = arith.constant 0.000000e+00 : f32
    %98 = vector.broadcast %cst_66 : f32 to vector<8x1xf32>
    %99 = arith.maximumf %97, %98 : vector<8x1xf32>
    %c0_67 = arith.constant 0 : index
    %c0_68 = arith.constant 0 : index
    %100 = vector.load %arg3[%c0_67, %c0_68] : memref<8x1xf32, #tpu.memory_space<vmem>>, vector<8x1xf32>
    %cst_69 = arith.constant 9.99999974E-6 : f32
    %101 = vector.broadcast %cst_69 : f32 to vector<8x1xf32>
    %102 = arith.addf %99, %101 : vector<8x1xf32>
    %103 = math.rsqrt %102 : vector<8x1xf32>
    %104 = arith.mulf %100, %103 : vector<8x1xf32>
    %c0_70 = arith.constant 0 : index
    %c0_71 = arith.constant 0 : index
    %105 = vector.load %arg4[%c0_70, %c0_71] : memref<8x1xf32, #tpu.memory_space<vmem>>, vector<8x1xf32>
    %106 = arith.mulf %90, %104 : vector<8x1xf32>
    %107 = arith.subf %105, %106 : vector<8x1xf32>
    %108 = vector.broadcast %104 : vector<8x1xf32> to vector<8x64xf32>
    %109 = arith.mulf %86, %108 : vector<8x64xf32>
    %110 = vector.broadcast %107 : vector<8x1xf32> to vector<8x64xf32>
    %111 = arith.addf %109, %110 : vector<8x64xf32>
    %cst_72 = arith.constant 0.000000e+00 : f32
    %112 = vector.broadcast %cst_72 : f32 to vector<8x64xf32>
    %113 = arith.maximumf %111, %112 : vector<8x64xf32>
    %114 = tpu.iota {dimensions = array<i32: 0>} : vector<64x32xi32>
    %115 = tpu.iota {dimensions = array<i32: 1>} : vector<64x32xi32>
    %c2_i32 = arith.constant 2 : i32
    %116 = vector.broadcast %c2_i32 : i32 to vector<64x32xi32>
    %117 = arith.muli %116, %115 : vector<64x32xi32>
    %118 = arith.cmpi eq, %114, %117 : vector<64x32xi32>
    %cst_73 = arith.constant 1.000000e+00 : f32
    %cst_74 = arith.constant 0.000000e+00 : f32
    %119 = vector.broadcast %cst_73 : f32 to vector<64x32xf32>
    %120 = vector.broadcast %cst_74 : f32 to vector<64x32xf32>
    %121 = arith.select %118, %119, %120 : vector<64x32xi1>, vector<64x32xf32>
    %c2_i32_75 = arith.constant 2 : i32
    %122 = vector.broadcast %c2_i32_75 : i32 to vector<64x32xi32>
    %123 = arith.muli %122, %115 : vector<64x32xi32>
    %c1_i32 = arith.constant 1 : i32
    %124 = vector.broadcast %c1_i32 : i32 to vector<64x32xi32>
    %125 = arith.addi %123, %124 : vector<64x32xi32>
    %126 = arith.cmpi eq, %114, %125 : vector<64x32xi32>
    %cst_76 = arith.constant 1.000000e+00 : f32
    %cst_77 = arith.constant 0.000000e+00 : f32
    %127 = vector.broadcast %cst_76 : f32 to vector<64x32xf32>
    %128 = vector.broadcast %cst_77 : f32 to vector<64x32xf32>
    %129 = arith.select %126, %127, %128 : vector<64x32xi1>, vector<64x32xf32>
    %cst_78 = arith.constant dense<0.000000e+00> : vector<8x32xf32>
    %130 = tpu.matmul %113, %121, %cst_78 {dimension_numbers = #tpu.dot_dimension_numbers<[1], [0], [0], [1], [0, 0, 1, 1], [], []>} : vector<8x64xf32>, vector<64x32xf32>, vector<8x32xf32> -> vector<8x32xf32>
    %cst_79 = arith.constant dense<0.000000e+00> : vector<8x32xf32>
    %131 = tpu.matmul %113, %129, %cst_79 {dimension_numbers = #tpu.dot_dimension_numbers<[1], [0], [0], [1], [0, 0, 1, 1], [], []>} : vector<8x64xf32>, vector<64x32xf32>, vector<8x32xf32> -> vector<8x32xf32>
    %132 = arith.maximumf %130, %131 : vector<8x32xf32>
    %c0_80 = arith.constant 0 : index
    %c1_81 = arith.constant 1 : index
    %133 = vector.load %arg28[%c0_80, %c1_81] : memref<32x66xf32, #tpu.memory_space<vmem>>, vector<8x32xf32>
    tpu.vector_store %arg28[%c0_80, %c1_81], %132 {strides = array<i32>} : memref<32x66xf32, #tpu.memory_space<vmem>>, vector<8x32xf32>,
    %cst_82 = arith.constant 0.000000e+00 : f32
    %134 = vector.broadcast %cst_82 : f32 to vector<8x1xf32>
    %c0_83 = arith.constant 0 : index
    %c0_84 = arith.constant 0 : index
    %135 = vector.load %arg28[%c0_83, %c0_84] : memref<32x66xf32, #tpu.memory_space<vmem>>, vector<8x1xf32>
    tpu.vector_store %arg28[%c0_83, %c0_84], %134 {strides = array<i32>} : memref<32x66xf32, #tpu.memory_space<vmem>>, vector<8x1xf32>,
    %c0_85 = arith.constant 0 : index
    %c33 = arith.constant 33 : index
    %136 = vector.load %arg28[%c0_85, %c33] : memref<32x66xf32, #tpu.memory_space<vmem>>, vector<8x1xf32>
    tpu.vector_store %arg28[%c0_85, %c33], %134 {strides = array<i32>} : memref<32x66xf32, #tpu.memory_space<vmem>>, vector<8x1xf32>,
    %137 = tpu.iota {dimensions = array<i32: 1>} : vector<1x32xi32>
    %c0_i32_86 = arith.constant 0 : i32
    %138 = vector.broadcast %c0_i32_86 : i32 to vector<1x32xi32>
    %139 = arith.cmpi ne, %137, %138 : vector<1x32xi32>
    %c15_i32 = arith.constant 15 : i32
    %140 = vector.broadcast %c15_i32 : i32 to vector<1x32xi32>
    %141 = arith.cmpi ne, %137, %140 : vector<1x32xi32>
    %c16_i32 = arith.constant 16 : i32
    %142 = vector.broadcast %c16_i32 : i32 to vector<1x32xi32>
    %143 = arith.cmpi ne, %137, %142 : vector<1x32xi32>
    %c31_i32_87 = arith.constant 31 : i32
    %144 = vector.broadcast %c31_i32_87 : i32 to vector<1x32xi32>
    %145 = arith.cmpi ne, %137, %144 : vector<1x32xi32>
    %146 = arith.andi %139, %143 : vector<1x32xi1>
    %147 = arith.andi %141, %145 : vector<1x32xi1>
    %cst_88 = arith.constant 1.000000e+00 : f32
    %cst_89 = arith.constant 0.000000e+00 : f32
    %148 = vector.broadcast %cst_88 : f32 to vector<1x32xf32>
    %149 = vector.broadcast %cst_89 : f32 to vector<1x32xf32>
    %150 = arith.select %146, %148, %149 : vector<1x32xi1>, vector<1x32xf32>
    %cst_90 = arith.constant 1.000000e+00 : f32
    %cst_91 = arith.constant 0.000000e+00 : f32
    %151 = vector.broadcast %cst_90 : f32 to vector<1x32xf32>
    %152 = vector.broadcast %cst_91 : f32 to vector<1x32xf32>
    %153 = arith.select %147, %151, %152 : vector<1x32xi1>, vector<1x32xf32>
    %c0_92 = arith.constant 0 : index
    %c0_93 = arith.constant 0 : index
    %154 = vector.load %arg28[%c0_92, %c0_93] : memref<32x66xf32, #tpu.memory_space<vmem>>, vector<8x32xf32>
    %155 = vector.broadcast %150 : vector<1x32xf32> to vector<8x32xf32>
    %156 = arith.mulf %154, %155 : vector<8x32xf32>
    %c0_94 = arith.constant 0 : index
    %c1_95 = arith.constant 1 : index
    %157 = vector.load %arg28[%c0_94, %c1_95] : memref<32x66xf32, #tpu.memory_space<vmem>>, vector<8x32xf32>
    %c0_96 = arith.constant 0 : index
    %c2_97 = arith.constant 2 : index
    %158 = vector.load %arg28[%c0_96, %c2_97] : memref<32x66xf32, #tpu.memory_space<vmem>>, vector<8x32xf32>
    %159 = vector.broadcast %153 : vector<1x32xf32> to vector<8x32xf32>
    %160 = arith.mulf %158, %159 : vector<8x32xf32>
    %c0_98 = arith.constant 0 : index
    %c0_99 = arith.constant 0 : index
    %c0_100 = arith.constant 0 : index
    %161 = vector.load %arg5[%c0_98, %c0_99, %c0_100] : memref<3x16x8xf32, #tpu.memory_space<vmem>>, vector<1x16x8xf32>
    %162 = vector.shape_cast %161 : vector<1x16x8xf32> to vector<16x8xf32>
    %cst_101 = arith.constant dense<0.000000e+00> : vector<16x32xf32>
    %163 = tpu.matmul %162, %156, %cst_101 {dimension_numbers = #tpu.dot_dimension_numbers<[1], [0], [0], [1], [0, 0, 1, 1], [], []>} : vector<16x8xf32>, vector<8x32xf32>, vector<16x32xf32> -> vector<16x32xf32>
    %c1_102 = arith.constant 1 : index
    %c0_103 = arith.constant 0 : index
    %c0_104 = arith.constant 0 : index
    %164 = vector.load %arg5[%c1_102, %c0_103, %c0_104] : memref<3x16x8xf32, #tpu.memory_space<vmem>>, vector<1x16x8xf32>
    %165 = vector.shape_cast %164 : vector<1x16x8xf32> to vector<16x8xf32>
    %cst_105 = arith.constant dense<0.000000e+00> : vector<16x32xf32>
    %166 = tpu.matmul %165, %157, %cst_105 {dimension_numbers = #tpu.dot_dimension_numbers<[1], [0], [0], [1], [0, 0, 1, 1], [], []>} : vector<16x8xf32>, vector<8x32xf32>, vector<16x32xf32> -> vector<16x32xf32>
    %167 = arith.addf %163, %166 : vector<16x32xf32>
    %c2_106 = arith.constant 2 : index
    %c0_107 = arith.constant 0 : index
    %c0_108 = arith.constant 0 : index
    %168 = vector.load %arg5[%c2_106, %c0_107, %c0_108] : memref<3x16x8xf32, #tpu.memory_space<vmem>>, vector<1x16x8xf32>
    %169 = vector.shape_cast %168 : vector<1x16x8xf32> to vector<16x8xf32>
    %cst_109 = arith.constant dense<0.000000e+00> : vector<16x32xf32>
    %170 = tpu.matmul %169, %160, %cst_109 {dimension_numbers = #tpu.dot_dimension_numbers<[1], [0], [0], [1], [0, 0, 1, 1], [], []>} : vector<16x8xf32>, vector<8x32xf32>, vector<16x32xf32> -> vector<16x32xf32>
    %171 = arith.addf %167, %170 : vector<16x32xf32>
    %cst_110 = arith.constant dense<0.000000e+00> : vector<16xf32>
    %172 = vector.multi_reduction <add>, %171, %cst_110 [1] : vector<16x32xf32> to vector<16xf32>
    %173 = vector.shape_cast %172 : vector<16xf32> to vector<16x1xf32>
    %cst_111 = arith.constant 3.200000e+01 : f32
    %174 = vector.broadcast %cst_111 : f32 to vector<16x1xf32>
    %175 = arith.divf %173, %174 : vector<16x1xf32>
    %176 = arith.mulf %171, %171 : vector<16x32xf32>
    %cst_112 = arith.constant dense<0.000000e+00> : vector<16xf32>
    %177 = vector.multi_reduction <add>, %176, %cst_112 [1] : vector<16x32xf32> to vector<16xf32>
    %178 = vector.shape_cast %177 : vector<16xf32> to vector<16x1xf32>
    %cst_113 = arith.constant 3.200000e+01 : f32
    %179 = vector.broadcast %cst_113 : f32 to vector<16x1xf32>
    %180 = arith.divf %178, %179 : vector<16x1xf32>
    %181 = arith.mulf %175, %175 : vector<16x1xf32>
    %182 = arith.subf %180, %181 : vector<16x1xf32>
    %cst_114 = arith.constant 0.000000e+00 : f32
    %183 = vector.broadcast %cst_114 : f32 to vector<16x1xf32>
    %184 = arith.maximumf %182, %183 : vector<16x1xf32>
    %c0_115 = arith.constant 0 : index
    %c0_116 = arith.constant 0 : index
    %185 = vector.load %arg7[%c0_115, %c0_116] : memref<16x1xf32, #tpu.memory_space<vmem>>, vector<16x1xf32>
    %cst_117 = arith.constant 9.99999974E-6 : f32
    %186 = vector.broadcast %cst_117 : f32 to vector<16x1xf32>
    %187 = arith.addf %184, %186 : vector<16x1xf32>
    %188 = math.rsqrt %187 : vector<16x1xf32>
    %189 = arith.mulf %185, %188 : vector<16x1xf32>
    %c0_118 = arith.constant 0 : index
    %c0_119 = arith.constant 0 : index
    %190 = vector.load %arg8[%c0_118, %c0_119] : memref<16x1xf32, #tpu.memory_space<vmem>>, vector<16x1xf32>
    %191 = arith.mulf %175, %189 : vector<16x1xf32>
    %192 = arith.subf %190, %191 : vector<16x1xf32>
    %193 = vector.broadcast %189 : vector<16x1xf32> to vector<16x32xf32>
    %194 = arith.mulf %171, %193 : vector<16x32xf32>
    %195 = vector.broadcast %192 : vector<16x1xf32> to vector<16x32xf32>
    %196 = arith.addf %194, %195 : vector<16x32xf32>
    %cst_120 = arith.constant 0.000000e+00 : f32
    %197 = vector.broadcast %cst_120 : f32 to vector<16x32xf32>
    %198 = arith.maximumf %196, %197 : vector<16x32xf32>
    %c0_121 = arith.constant 0 : index
    %c1_122 = arith.constant 1 : index
    %199 = vector.load %arg28[%c0_121, %c1_122] : memref<32x66xf32, #tpu.memory_space<vmem>>, vector<16x32xf32>
    tpu.vector_store %arg28[%c0_121, %c1_122], %198 {strides = array<i32>} : memref<32x66xf32, #tpu.memory_space<vmem>>, vector<16x32xf32>,
    %cst_123 = arith.constant 0.000000e+00 : f32
    %200 = vector.broadcast %cst_123 : f32 to vector<16x1xf32>
    %c0_124 = arith.constant 0 : index
    %c0_125 = arith.constant 0 : index
    %201 = vector.load %arg28[%c0_124, %c0_125] : memref<32x66xf32, #tpu.memory_space<vmem>>, vector<16x1xf32>
    tpu.vector_store %arg28[%c0_124, %c0_125], %200 {strides = array<i32>} : memref<32x66xf32, #tpu.memory_space<vmem>>, vector<16x1xf32>,
    %c0_126 = arith.constant 0 : index
    %c33_127 = arith.constant 33 : index
    %202 = vector.load %arg28[%c0_126, %c33_127] : memref<32x66xf32, #tpu.memory_space<vmem>>, vector<16x1xf32>
    tpu.vector_store %arg28[%c0_126, %c33_127], %200 {strides = array<i32>} : memref<32x66xf32, #tpu.memory_space<vmem>>, vector<16x1xf32>,
    %c0_128 = arith.constant 0 : index
    %c0_129 = arith.constant 0 : index
    %203 = vector.load %arg28[%c0_128, %c0_129] : memref<32x66xf32, #tpu.memory_space<vmem>>, vector<16x32xf32>
    %204 = vector.broadcast %150 : vector<1x32xf32> to vector<16x32xf32>
    %205 = arith.mulf %203, %204 : vector<16x32xf32>
    %c0_130 = arith.constant 0 : index
    %c1_131 = arith.constant 1 : index
    %206 = vector.load %arg28[%c0_130, %c1_131] : memref<32x66xf32, #tpu.memory_space<vmem>>, vector<16x32xf32>
    %c0_132 = arith.constant 0 : index
    %c2_133 = arith.constant 2 : index
    %207 = vector.load %arg28[%c0_132, %c2_133] : memref<32x66xf32, #tpu.memory_space<vmem>>, vector<16x32xf32>
    %208 = vector.broadcast %153 : vector<1x32xf32> to vector<16x32xf32>
    %209 = arith.mulf %207, %208 : vector<16x32xf32>
    %c0_134 = arith.constant 0 : index
    %c0_135 = arith.constant 0 : index
    %c0_136 = arith.constant 0 : index
    %210 = vector.load %arg6[%c0_134, %c0_135, %c0_136] : memref<3x16x16xf32, #tpu.memory_space<vmem>>, vector<1x16x16xf32>
    %211 = vector.shape_cast %210 : vector<1x16x16xf32> to vector<16x16xf32>
    %cst_137 = arith.constant dense<0.000000e+00> : vector<16x32xf32>
    %212 = tpu.matmul %211, %205, %cst_137 {dimension_numbers = #tpu.dot_dimension_numbers<[1], [0], [0], [1], [0, 0, 1, 1], [], []>} : vector<16x16xf32>, vector<16x32xf32>, vector<16x32xf32> -> vector<16x32xf32>
    %c1_138 = arith.constant 1 : index
    %c0_139 = arith.constant 0 : index
    %c0_140 = arith.constant 0 : index
    %213 = vector.load %arg6[%c1_138, %c0_139, %c0_140] : memref<3x16x16xf32, #tpu.memory_space<vmem>>, vector<1x16x16xf32>
    %214 = vector.shape_cast %213 : vector<1x16x16xf32> to vector<16x16xf32>
    %cst_141 = arith.constant dense<0.000000e+00> : vector<16x32xf32>
    %215 = tpu.matmul %214, %206, %cst_141 {dimension_numbers = #tpu.dot_dimension_numbers<[1], [0], [0], [1], [0, 0, 1, 1], [], []>} : vector<16x16xf32>, vector<16x32xf32>, vector<16x32xf32> -> vector<16x32xf32>
    %216 = arith.addf %212, %215 : vector<16x32xf32>
    %c2_142 = arith.constant 2 : index
    %c0_143 = arith.constant 0 : index
    %c0_144 = arith.constant 0 : index
    %217 = vector.load %arg6[%c2_142, %c0_143, %c0_144] : memref<3x16x16xf32, #tpu.memory_space<vmem>>, vector<1x16x16xf32>
    %218 = vector.shape_cast %217 : vector<1x16x16xf32> to vector<16x16xf32>
    %cst_145 = arith.constant dense<0.000000e+00> : vector<16x32xf32>
    %219 = tpu.matmul %218, %209, %cst_145 {dimension_numbers = #tpu.dot_dimension_numbers<[1], [0], [0], [1], [0, 0, 1, 1], [], []>} : vector<16x16xf32>, vector<16x32xf32>, vector<16x32xf32> -> vector<16x32xf32>
    %220 = arith.addf %216, %219 : vector<16x32xf32>
    %cst_146 = arith.constant dense<0.000000e+00> : vector<16xf32>
    %221 = vector.multi_reduction <add>, %220, %cst_146 [1] : vector<16x32xf32> to vector<16xf32>
    %222 = vector.shape_cast %221 : vector<16xf32> to vector<16x1xf32>
    %cst_147 = arith.constant 3.200000e+01 : f32
    %223 = vector.broadcast %cst_147 : f32 to vector<16x1xf32>
    %224 = arith.divf %222, %223 : vector<16x1xf32>
    %225 = arith.mulf %220, %220 : vector<16x32xf32>
    %cst_148 = arith.constant dense<0.000000e+00> : vector<16xf32>
    %226 = vector.multi_reduction <add>, %225, %cst_148 [1] : vector<16x32xf32> to vector<16xf32>
    %227 = vector.shape_cast %226 : vector<16xf32> to vector<16x1xf32>
    %cst_149 = arith.constant 3.200000e+01 : f32
    %228 = vector.broadcast %cst_149 : f32 to vector<16x1xf32>
    %229 = arith.divf %227, %228 : vector<16x1xf32>
    %230 = arith.mulf %224, %224 : vector<16x1xf32>
    %231 = arith.subf %229, %230 : vector<16x1xf32>
    %cst_150 = arith.constant 0.000000e+00 : f32
    %232 = vector.broadcast %cst_150 : f32 to vector<16x1xf32>
    %233 = arith.maximumf %231, %232 : vector<16x1xf32>
    %c0_151 = arith.constant 0 : index
    %c0_152 = arith.constant 0 : index
    %234 = vector.load %arg7[%c0_151, %c0_152] : memref<16x1xf32, #tpu.memory_space<vmem>>, vector<16x1xf32>
    %cst_153 = arith.constant 9.99999974E-6 : f32
    %235 = vector.broadcast %cst_153 : f32 to vector<16x1xf32>
    %236 = arith.addf %233, %235 : vector<16x1xf32>
    %237 = math.rsqrt %236 : vector<16x1xf32>
    %238 = arith.mulf %234, %237 : vector<16x1xf32>
    %c0_154 = arith.constant 0 : index
    %c0_155 = arith.constant 0 : index
    %239 = vector.load %arg8[%c0_154, %c0_155] : memref<16x1xf32, #tpu.memory_space<vmem>>, vector<16x1xf32>
    %240 = arith.mulf %224, %238 : vector<16x1xf32>
    %241 = arith.subf %239, %240 : vector<16x1xf32>
    %242 = vector.broadcast %238 : vector<16x1xf32> to vector<16x32xf32>
    %243 = arith.mulf %220, %242 : vector<16x32xf32>
    %244 = vector.broadcast %241 : vector<16x1xf32> to vector<16x32xf32>
    %245 = arith.addf %243, %244 : vector<16x32xf32>
    %cst_156 = arith.constant 0.000000e+00 : f32
    %246 = vector.broadcast %cst_156 : f32 to vector<16x32xf32>
    %247 = arith.maximumf %245, %246 : vector<16x32xf32>
    %248 = tpu.iota {dimensions = array<i32: 0>} : vector<32x16xi32>
    %249 = tpu.iota {dimensions = array<i32: 1>} : vector<32x16xi32>
    %c2_i32_157 = arith.constant 2 : i32
    %250 = vector.broadcast %c2_i32_157 : i32 to vector<32x16xi32>
    %251 = arith.muli %250, %249 : vector<32x16xi32>
    %252 = arith.cmpi eq, %248, %251 : vector<32x16xi32>
    %cst_158 = arith.constant 1.000000e+00 : f32
    %cst_159 = arith.constant 0.000000e+00 : f32
    %253 = vector.broadcast %cst_158 : f32 to vector<32x16xf32>
    %254 = vector.broadcast %cst_159 : f32 to vector<32x16xf32>
    %255 = arith.select %252, %253, %254 : vector<32x16xi1>, vector<32x16xf32>
    %c2_i32_160 = arith.constant 2 : i32
    %256 = vector.broadcast %c2_i32_160 : i32 to vector<32x16xi32>
    %257 = arith.muli %256, %249 : vector<32x16xi32>
    %c1_i32_161 = arith.constant 1 : i32
    %258 = vector.broadcast %c1_i32_161 : i32 to vector<32x16xi32>
    %259 = arith.addi %257, %258 : vector<32x16xi32>
    %260 = arith.cmpi eq, %248, %259 : vector<32x16xi32>
    %cst_162 = arith.constant 1.000000e+00 : f32
    %cst_163 = arith.constant 0.000000e+00 : f32
    %261 = vector.broadcast %cst_162 : f32 to vector<32x16xf32>
    %262 = vector.broadcast %cst_163 : f32 to vector<32x16xf32>
    %263 = arith.select %260, %261, %262 : vector<32x16xi1>, vector<32x16xf32>
    %cst_164 = arith.constant dense<0.000000e+00> : vector<16x16xf32>
    %264 = tpu.matmul %247, %255, %cst_164 {dimension_numbers = #tpu.dot_dimension_numbers<[1], [0], [0], [1], [0, 0, 1, 1], [], []>} : vector<16x32xf32>, vector<32x16xf32>, vector<16x16xf32> -> vector<16x16xf32>
    %cst_165 = arith.constant dense<0.000000e+00> : vector<16x16xf32>
    %265 = tpu.matmul %247, %263, %cst_165 {dimension_numbers = #tpu.dot_dimension_numbers<[1], [0], [0], [1], [0, 0, 1, 1], [], []>} : vector<16x32xf32>, vector<32x16xf32>, vector<16x16xf32> -> vector<16x16xf32>
    %266 = arith.maximumf %264, %265 : vector<16x16xf32>
    %c0_166 = arith.constant 0 : index
    %c1_167 = arith.constant 1 : index
    %267 = vector.load %arg28[%c0_166, %c1_167] : memref<32x66xf32, #tpu.memory_space<vmem>>, vector<16x16xf32>
    tpu.vector_store %arg28[%c0_166, %c1_167], %266 {strides = array<i32>} : memref<32x66xf32, #tpu.memory_space<vmem>>, vector<16x16xf32>,
    %cst_168 = arith.constant 0.000000e+00 : f32
    %268 = vector.broadcast %cst_168 : f32 to vector<16x1xf32>
    %c0_169 = arith.constant 0 : index
    %c0_170 = arith.constant 0 : index
    %269 = vector.load %arg28[%c0_169, %c0_170] : memref<32x66xf32, #tpu.memory_space<vmem>>, vector<16x1xf32>
    tpu.vector_store %arg28[%c0_169, %c0_170], %268 {strides = array<i32>} : memref<32x66xf32, #tpu.memory_space<vmem>>, vector<16x1xf32>,
    %c0_171 = arith.constant 0 : index
    %c17 = arith.constant 17 : index
    %270 = vector.load %arg28[%c0_171, %c17] : memref<32x66xf32, #tpu.memory_space<vmem>>, vector<16x1xf32>
    tpu.vector_store %arg28[%c0_171, %c17], %268 {strides = array<i32>} : memref<32x66xf32, #tpu.memory_space<vmem>>, vector<16x1xf32>,
    %271 = tpu.iota {dimensions = array<i32: 1>} : vector<1x16xi32>
    %c0_i32_172 = arith.constant 0 : i32
    %272 = vector.broadcast %c0_i32_172 : i32 to vector<1x16xi32>
    %273 = arith.cmpi ne, %271, %272 : vector<1x16xi32>
    %c7_i32 = arith.constant 7 : i32
    %274 = vector.broadcast %c7_i32 : i32 to vector<1x16xi32>
    %275 = arith.cmpi ne, %271, %274 : vector<1x16xi32>
    %c8_i32 = arith.constant 8 : i32
    %276 = vector.broadcast %c8_i32 : i32 to vector<1x16xi32>
    %277 = arith.cmpi ne, %271, %276 : vector<1x16xi32>
    %c15_i32_173 = arith.constant 15 : i32
    %278 = vector.broadcast %c15_i32_173 : i32 to vector<1x16xi32>
    %279 = arith.cmpi ne, %271, %278 : vector<1x16xi32>
    %280 = arith.andi %273, %277 : vector<1x16xi1>
    %281 = arith.andi %275, %279 : vector<1x16xi1>
    %cst_174 = arith.constant 1.000000e+00 : f32
    %cst_175 = arith.constant 0.000000e+00 : f32
    %282 = vector.broadcast %cst_174 : f32 to vector<1x16xf32>
    %283 = vector.broadcast %cst_175 : f32 to vector<1x16xf32>
    %284 = arith.select %280, %282, %283 : vector<1x16xi1>, vector<1x16xf32>
    %cst_176 = arith.constant 1.000000e+00 : f32
    %cst_177 = arith.constant 0.000000e+00 : f32
    %285 = vector.broadcast %cst_176 : f32 to vector<1x16xf32>
    %286 = vector.broadcast %cst_177 : f32 to vector<1x16xf32>
    %287 = arith.select %281, %285, %286 : vector<1x16xi1>, vector<1x16xf32>
    %c0_178 = arith.constant 0 : index
    %c0_179 = arith.constant 0 : index
    %288 = vector.load %arg28[%c0_178, %c0_179] : memref<32x66xf32, #tpu.memory_space<vmem>>, vector<16x16xf32>
    %289 = vector.broadcast %284 : vector<1x16xf32> to vector<16x16xf32>
    %290 = arith.mulf %288, %289 : vector<16x16xf32>
    %c0_180 = arith.constant 0 : index
    %c1_181 = arith.constant 1 : index
    %291 = vector.load %arg28[%c0_180, %c1_181] : memref<32x66xf32, #tpu.memory_space<vmem>>, vector<16x16xf32>
    %c0_182 = arith.constant 0 : index
    %c2_183 = arith.constant 2 : index
    %292 = vector.load %arg28[%c0_182, %c2_183] : memref<32x66xf32, #tpu.memory_space<vmem>>, vector<16x16xf32>
    %293 = vector.broadcast %287 : vector<1x16xf32> to vector<16x16xf32>
    %294 = arith.mulf %292, %293 : vector<16x16xf32>
    %c0_184 = arith.constant 0 : index
    %c0_185 = arith.constant 0 : index
    %c0_186 = arith.constant 0 : index
    %295 = vector.load %arg9[%c0_184, %c0_185, %c0_186] : memref<3x32x16xf32, #tpu.memory_space<vmem>>, vector<1x32x16xf32>
    %296 = vector.shape_cast %295 : vector<1x32x16xf32> to vector<32x16xf32>
    %cst_187 = arith.constant dense<0.000000e+00> : vector<32x16xf32>
    %297 = tpu.matmul %296, %290, %cst_187 {dimension_numbers = #tpu.dot_dimension_numbers<[1], [0], [0], [1], [0, 0, 1, 1], [], []>} : vector<32x16xf32>, vector<16x16xf32>, vector<32x16xf32> -> vector<32x16xf32>
    %c1_188 = arith.constant 1 : index
    %c0_189 = arith.constant 0 : index
    %c0_190 = arith.constant 0 : index
    %298 = vector.load %arg9[%c1_188, %c0_189, %c0_190] : memref<3x32x16xf32, #tpu.memory_space<vmem>>, vector<1x32x16xf32>
    %299 = vector.shape_cast %298 : vector<1x32x16xf32> to vector<32x16xf32>
    %cst_191 = arith.constant dense<0.000000e+00> : vector<32x16xf32>
    %300 = tpu.matmul %299, %291, %cst_191 {dimension_numbers = #tpu.dot_dimension_numbers<[1], [0], [0], [1], [0, 0, 1, 1], [], []>} : vector<32x16xf32>, vector<16x16xf32>, vector<32x16xf32> -> vector<32x16xf32>
    %301 = arith.addf %297, %300 : vector<32x16xf32>
    %c2_192 = arith.constant 2 : index
    %c0_193 = arith.constant 0 : index
    %c0_194 = arith.constant 0 : index
    %302 = vector.load %arg9[%c2_192, %c0_193, %c0_194] : memref<3x32x16xf32, #tpu.memory_space<vmem>>, vector<1x32x16xf32>
    %303 = vector.shape_cast %302 : vector<1x32x16xf32> to vector<32x16xf32>
    %cst_195 = arith.constant dense<0.000000e+00> : vector<32x16xf32>
    %304 = tpu.matmul %303, %294, %cst_195 {dimension_numbers = #tpu.dot_dimension_numbers<[1], [0], [0], [1], [0, 0, 1, 1], [], []>} : vector<32x16xf32>, vector<16x16xf32>, vector<32x16xf32> -> vector<32x16xf32>
    %305 = arith.addf %301, %304 : vector<32x16xf32>
    %cst_196 = arith.constant dense<0.000000e+00> : vector<32xf32>
    %306 = vector.multi_reduction <add>, %305, %cst_196 [1] : vector<32x16xf32> to vector<32xf32>
    %307 = vector.shape_cast %306 : vector<32xf32> to vector<32x1xf32>
    %cst_197 = arith.constant 1.600000e+01 : f32
    %308 = vector.broadcast %cst_197 : f32 to vector<32x1xf32>
    %309 = arith.divf %307, %308 : vector<32x1xf32>
    %310 = arith.mulf %305, %305 : vector<32x16xf32>
    %cst_198 = arith.constant dense<0.000000e+00> : vector<32xf32>
    %311 = vector.multi_reduction <add>, %310, %cst_198 [1] : vector<32x16xf32> to vector<32xf32>
    %312 = vector.shape_cast %311 : vector<32xf32> to vector<32x1xf32>
    %cst_199 = arith.constant 1.600000e+01 : f32
    %313 = vector.broadcast %cst_199 : f32 to vector<32x1xf32>
    %314 = arith.divf %312, %313 : vector<32x1xf32>
    %315 = arith.mulf %309, %309 : vector<32x1xf32>
    %316 = arith.subf %314, %315 : vector<32x1xf32>
    %cst_200 = arith.constant 0.000000e+00 : f32
    %317 = vector.broadcast %cst_200 : f32 to vector<32x1xf32>
    %318 = arith.maximumf %316, %317 : vector<32x1xf32>
    %c0_201 = arith.constant 0 : index
    %c0_202 = arith.constant 0 : index
    %319 = vector.load %arg11[%c0_201, %c0_202] : memref<32x1xf32, #tpu.memory_space<vmem>>, vector<32x1xf32>
    %cst_203 = arith.constant 9.99999974E-6 : f32
    %320 = vector.broadcast %cst_203 : f32 to vector<32x1xf32>
    %321 = arith.addf %318, %320 : vector<32x1xf32>
    %322 = math.rsqrt %321 : vector<32x1xf32>
    %323 = arith.mulf %319, %322 : vector<32x1xf32>
    %c0_204 = arith.constant 0 : index
    %c0_205 = arith.constant 0 : index
    %324 = vector.load %arg12[%c0_204, %c0_205] : memref<32x1xf32, #tpu.memory_space<vmem>>, vector<32x1xf32>
    %325 = arith.mulf %309, %323 : vector<32x1xf32>
    %326 = arith.subf %324, %325 : vector<32x1xf32>
    %327 = vector.broadcast %323 : vector<32x1xf32> to vector<32x16xf32>
    %328 = arith.mulf %305, %327 : vector<32x16xf32>
    %329 = vector.broadcast %326 : vector<32x1xf32> to vector<32x16xf32>
    %330 = arith.addf %328, %329 : vector<32x16xf32>
    %cst_206 = arith.constant 0.000000e+00 : f32
    %331 = vector.broadcast %cst_206 : f32 to vector<32x16xf32>
    %332 = arith.maximumf %330, %331 : vector<32x16xf32>
    %c0_207 = arith.constant 0 : index
    %c1_208 = arith.constant 1 : index
    %333 = vector.load %arg28[%c0_207, %c1_208] : memref<32x66xf32, #tpu.memory_space<vmem>>, vector<32x16xf32>
    tpu.vector_store %arg28[%c0_207, %c1_208], %332 {strides = array<i32>} : memref<32x66xf32, #tpu.memory_space<vmem>>, vector<32x16xf32>,
    %cst_209 = arith.constant 0.000000e+00 : f32
    %334 = vector.broadcast %cst_209 : f32 to vector<32x1xf32>
    %c0_210 = arith.constant 0 : index
    %c0_211 = arith.constant 0 : index
    %335 = vector.load %arg28[%c0_210, %c0_211] : memref<32x66xf32, #tpu.memory_space<vmem>>, vector<32x1xf32>
    tpu.vector_store %arg28[%c0_210, %c0_211], %334 {strides = array<i32>} : memref<32x66xf32, #tpu.memory_space<vmem>>, vector<32x1xf32>,
    %c0_212 = arith.constant 0 : index
    %c17_213 = arith.constant 17 : index
    %336 = vector.load %arg28[%c0_212, %c17_213] : memref<32x66xf32, #tpu.memory_space<vmem>>, vector<32x1xf32>
    tpu.vector_store %arg28[%c0_212, %c17_213], %334 {strides = array<i32>} : memref<32x66xf32, #tpu.memory_space<vmem>>, vector<32x1xf32>,
    %c0_214 = arith.constant 0 : index
    %c0_215 = arith.constant 0 : index
    %337 = vector.load %arg28[%c0_214, %c0_215] : memref<32x66xf32, #tpu.memory_space<vmem>>, vector<32x16xf32>
    %338 = vector.broadcast %284 : vector<1x16xf32> to vector<32x16xf32>
    %339 = arith.mulf %337, %338 : vector<32x16xf32>
    %c0_216 = arith.constant 0 : index
    %c1_217 = arith.constant 1 : index
    %340 = vector.load %arg28[%c0_216, %c1_217] : memref<32x66xf32, #tpu.memory_space<vmem>>, vector<32x16xf32>
    %c0_218 = arith.constant 0 : index
    %c2_219 = arith.constant 2 : index
    %341 = vector.load %arg28[%c0_218, %c2_219] : memref<32x66xf32, #tpu.memory_space<vmem>>, vector<32x16xf32>
    %342 = vector.broadcast %287 : vector<1x16xf32> to vector<32x16xf32>
    %343 = arith.mulf %341, %342 : vector<32x16xf32>
    %c0_220 = arith.constant 0 : index
    %c0_221 = arith.constant 0 : index
    %c0_222 = arith.constant 0 : index
    %344 = vector.load %arg10[%c0_220, %c0_221, %c0_222] : memref<3x32x32xf32, #tpu.memory_space<vmem>>, vector<1x32x32xf32>
    %345 = vector.shape_cast %344 : vector<1x32x32xf32> to vector<32x32xf32>
    %cst_223 = arith.constant dense<0.000000e+00> : vector<32x16xf32>
    %346 = tpu.matmul %345, %339, %cst_223 {dimension_numbers = #tpu.dot_dimension_numbers<[1], [0], [0], [1], [0, 0, 1, 1], [], []>} : vector<32x32xf32>, vector<32x16xf32>, vector<32x16xf32> -> vector<32x16xf32>
    %c1_224 = arith.constant 1 : index
    %c0_225 = arith.constant 0 : index
    %c0_226 = arith.constant 0 : index
    %347 = vector.load %arg10[%c1_224, %c0_225, %c0_226] : memref<3x32x32xf32, #tpu.memory_space<vmem>>, vector<1x32x32xf32>
    %348 = vector.shape_cast %347 : vector<1x32x32xf32> to vector<32x32xf32>
    %cst_227 = arith.constant dense<0.000000e+00> : vector<32x16xf32>
    %349 = tpu.matmul %348, %340, %cst_227 {dimension_numbers = #tpu.dot_dimension_numbers<[1], [0], [0], [1], [0, 0, 1, 1], [], []>} : vector<32x32xf32>, vector<32x16xf32>, vector<32x16xf32> -> vector<32x16xf32>
    %350 = arith.addf %346, %349 : vector<32x16xf32>
    %c2_228 = arith.constant 2 : index
    %c0_229 = arith.constant 0 : index
    %c0_230 = arith.constant 0 : index
    %351 = vector.load %arg10[%c2_228, %c0_229, %c0_230] : memref<3x32x32xf32, #tpu.memory_space<vmem>>, vector<1x32x32xf32>
    %352 = vector.shape_cast %351 : vector<1x32x32xf32> to vector<32x32xf32>
    %cst_231 = arith.constant dense<0.000000e+00> : vector<32x16xf32>
    %353 = tpu.matmul %352, %343, %cst_231 {dimension_numbers = #tpu.dot_dimension_numbers<[1], [0], [0], [1], [0, 0, 1, 1], [], []>} : vector<32x32xf32>, vector<32x16xf32>, vector<32x16xf32> -> vector<32x16xf32>
    %354 = arith.addf %350, %353 : vector<32x16xf32>
    %cst_232 = arith.constant dense<0.000000e+00> : vector<32xf32>
    %355 = vector.multi_reduction <add>, %354, %cst_232 [1] : vector<32x16xf32> to vector<32xf32>
    %356 = vector.shape_cast %355 : vector<32xf32> to vector<32x1xf32>
    %cst_233 = arith.constant 1.600000e+01 : f32
    %357 = vector.broadcast %cst_233 : f32 to vector<32x1xf32>
    %358 = arith.divf %356, %357 : vector<32x1xf32>
    %359 = arith.mulf %354, %354 : vector<32x16xf32>
    %cst_234 = arith.constant dense<0.000000e+00> : vector<32xf32>
    %360 = vector.multi_reduction <add>, %359, %cst_234 [1] : vector<32x16xf32> to vector<32xf32>
    %361 = vector.shape_cast %360 : vector<32xf32> to vector<32x1xf32>
    %cst_235 = arith.constant 1.600000e+01 : f32
    %362 = vector.broadcast %cst_235 : f32 to vector<32x1xf32>
    %363 = arith.divf %361, %362 : vector<32x1xf32>
    %364 = arith.mulf %358, %358 : vector<32x1xf32>
    %365 = arith.subf %363, %364 : vector<32x1xf32>
    %cst_236 = arith.constant 0.000000e+00 : f32
    %366 = vector.broadcast %cst_236 : f32 to vector<32x1xf32>
    %367 = arith.maximumf %365, %366 : vector<32x1xf32>
    %c0_237 = arith.constant 0 : index
    %c0_238 = arith.constant 0 : index
    %368 = vector.load %arg11[%c0_237, %c0_238] : memref<32x1xf32, #tpu.memory_space<vmem>>, vector<32x1xf32>
    %cst_239 = arith.constant 9.99999974E-6 : f32
    %369 = vector.broadcast %cst_239 : f32 to vector<32x1xf32>
    %370 = arith.addf %367, %369 : vector<32x1xf32>
    %371 = math.rsqrt %370 : vector<32x1xf32>
    %372 = arith.mulf %368, %371 : vector<32x1xf32>
    %c0_240 = arith.constant 0 : index
    %c0_241 = arith.constant 0 : index
    %373 = vector.load %arg12[%c0_240, %c0_241] : memref<32x1xf32, #tpu.memory_space<vmem>>, vector<32x1xf32>
    %374 = arith.mulf %358, %372 : vector<32x1xf32>
    %375 = arith.subf %373, %374 : vector<32x1xf32>
    %376 = vector.broadcast %372 : vector<32x1xf32> to vector<32x16xf32>
    %377 = arith.mulf %354, %376 : vector<32x16xf32>
    %378 = vector.broadcast %375 : vector<32x1xf32> to vector<32x16xf32>
    %379 = arith.addf %377, %378 : vector<32x16xf32>
    %cst_242 = arith.constant 0.000000e+00 : f32
    %380 = vector.broadcast %cst_242 : f32 to vector<32x16xf32>
    %381 = arith.maximumf %379, %380 : vector<32x16xf32>
    %c0_243 = arith.constant 0 : index
    %c0_244 = arith.constant 0 : index
    %c0_245 = arith.constant 0 : index
    %382 = vector.load %arg13[%c0_243, %c0_244, %c0_245] : memref<2x16x32xf32, #tpu.memory_space<vmem>>, vector<1x16x32xf32>
    %383 = vector.shape_cast %382 : vector<1x16x32xf32> to vector<16x32xf32>
    %cst_246 = arith.constant dense<0.000000e+00> : vector<16x16xf32>
    %384 = tpu.matmul %383, %381, %cst_246 {dimension_numbers = #tpu.dot_dimension_numbers<[1], [0], [0], [1], [0, 0, 1, 1], [], []>} : vector<16x32xf32>, vector<32x16xf32>, vector<16x16xf32> -> vector<16x16xf32>
    %c1_247 = arith.constant 1 : index
    %c0_248 = arith.constant 0 : index
    %c0_249 = arith.constant 0 : index
    %385 = vector.load %arg13[%c1_247, %c0_248, %c0_249] : memref<2x16x32xf32, #tpu.memory_space<vmem>>, vector<1x16x32xf32>
    %386 = vector.shape_cast %385 : vector<1x16x32xf32> to vector<16x32xf32>
    %cst_250 = arith.constant dense<0.000000e+00> : vector<16x16xf32>
    %387 = tpu.matmul %386, %381, %cst_250 {dimension_numbers = #tpu.dot_dimension_numbers<[1], [0], [0], [1], [0, 0, 1, 1], [], []>} : vector<16x32xf32>, vector<32x16xf32>, vector<16x16xf32> -> vector<16x16xf32>
    %388 = tpu.iota {dimensions = array<i32: 0>} : vector<16x32xi32>
    %389 = tpu.iota {dimensions = array<i32: 1>} : vector<16x32xi32>
    %c2_i32_251 = arith.constant 2 : i32
    %390 = vector.broadcast %c2_i32_251 : i32 to vector<16x32xi32>
    %391 = arith.muli %390, %388 : vector<16x32xi32>
    %392 = arith.cmpi eq, %389, %391 : vector<16x32xi32>
    %cst_252 = arith.constant 1.000000e+00 : f32
    %cst_253 = arith.constant 0.000000e+00 : f32
    %393 = vector.broadcast %cst_252 : f32 to vector<16x32xf32>
    %394 = vector.broadcast %cst_253 : f32 to vector<16x32xf32>
    %395 = arith.select %392, %393, %394 : vector<16x32xi1>, vector<16x32xf32>
    %c2_i32_254 = arith.constant 2 : i32
    %396 = vector.broadcast %c2_i32_254 : i32 to vector<16x32xi32>
    %397 = arith.muli %396, %388 : vector<16x32xi32>
    %c1_i32_255 = arith.constant 1 : i32
    %398 = vector.broadcast %c1_i32_255 : i32 to vector<16x32xi32>
    %399 = arith.addi %397, %398 : vector<16x32xi32>
    %400 = arith.cmpi eq, %389, %399 : vector<16x32xi32>
    %cst_256 = arith.constant 1.000000e+00 : f32
    %cst_257 = arith.constant 0.000000e+00 : f32
    %401 = vector.broadcast %cst_256 : f32 to vector<16x32xf32>
    %402 = vector.broadcast %cst_257 : f32 to vector<16x32xf32>
    %403 = arith.select %400, %401, %402 : vector<16x32xi1>, vector<16x32xf32>
    %cst_258 = arith.constant dense<0.000000e+00> : vector<16x32xf32>
    %404 = tpu.matmul %384, %395, %cst_258 {dimension_numbers = #tpu.dot_dimension_numbers<[1], [0], [0], [1], [0, 0, 1, 1], [], []>} : vector<16x16xf32>, vector<16x32xf32>, vector<16x32xf32> -> vector<16x32xf32>
    %cst_259 = arith.constant dense<0.000000e+00> : vector<16x32xf32>
    %405 = tpu.matmul %387, %403, %cst_259 {dimension_numbers = #tpu.dot_dimension_numbers<[1], [0], [0], [1], [0, 0, 1, 1], [], []>} : vector<16x16xf32>, vector<16x32xf32>, vector<16x32xf32> -> vector<16x32xf32>
    %406 = arith.addf %404, %405 : vector<16x32xf32>
    %c0_260 = arith.constant 0 : index
    %c0_261 = arith.constant 0 : index
    %407 = vector.load %arg14[%c0_260, %c0_261] : memref<16x1xf32, #tpu.memory_space<vmem>>, vector<16x1xf32>
    %408 = vector.broadcast %407 : vector<16x1xf32> to vector<16x32xf32>
    %409 = arith.addf %406, %408 : vector<16x32xf32>
    %c0_262 = arith.constant 0 : index
    %c1_263 = arith.constant 1 : index
    %410 = vector.load %arg28[%c0_262, %c1_263] : memref<32x66xf32, #tpu.memory_space<vmem>>, vector<16x32xf32>
    tpu.vector_store %arg28[%c0_262, %c1_263], %247 {strides = array<i32>} : memref<32x66xf32, #tpu.memory_space<vmem>>, vector<16x32xf32>,
    %c16 = arith.constant 16 : index
    %c1_264 = arith.constant 1 : index
    %411 = vector.load %arg28[%c16, %c1_264] : memref<32x66xf32, #tpu.memory_space<vmem>>, vector<16x32xf32>
    tpu.vector_store %arg28[%c16, %c1_264], %409 {strides = array<i32>} : memref<32x66xf32, #tpu.memory_space<vmem>>, vector<16x32xf32>,
    %cst_265 = arith.constant 0.000000e+00 : f32
    %412 = vector.broadcast %cst_265 : f32 to vector<32x1xf32>
    %c0_266 = arith.constant 0 : index
    %c0_267 = arith.constant 0 : index
    %413 = vector.load %arg28[%c0_266, %c0_267] : memref<32x66xf32, #tpu.memory_space<vmem>>, vector<32x1xf32>
    tpu.vector_store %arg28[%c0_266, %c0_267], %412 {strides = array<i32>} : memref<32x66xf32, #tpu.memory_space<vmem>>, vector<32x1xf32>,
    %c0_268 = arith.constant 0 : index
    %c33_269 = arith.constant 33 : index
    %414 = vector.load %arg28[%c0_268, %c33_269] : memref<32x66xf32, #tpu.memory_space<vmem>>, vector<32x1xf32>
    tpu.vector_store %arg28[%c0_268, %c33_269], %412 {strides = array<i32>} : memref<32x66xf32, #tpu.memory_space<vmem>>, vector<32x1xf32>,
    %c0_270 = arith.constant 0 : index
    %c0_271 = arith.constant 0 : index
    %415 = vector.load %arg28[%c0_270, %c0_271] : memref<32x66xf32, #tpu.memory_space<vmem>>, vector<32x32xf32>
    %416 = vector.broadcast %150 : vector<1x32xf32> to vector<32x32xf32>
    %417 = arith.mulf %415, %416 : vector<32x32xf32>
    %c0_272 = arith.constant 0 : index
    %c1_273 = arith.constant 1 : index
    %418 = vector.load %arg28[%c0_272, %c1_273] : memref<32x66xf32, #tpu.memory_space<vmem>>, vector<32x32xf32>
    %c0_274 = arith.constant 0 : index
    %c2_275 = arith.constant 2 : index
    %419 = vector.load %arg28[%c0_274, %c2_275] : memref<32x66xf32, #tpu.memory_space<vmem>>, vector<32x32xf32>
    %420 = vector.broadcast %153 : vector<1x32xf32> to vector<32x32xf32>
    %421 = arith.mulf %419, %420 : vector<32x32xf32>
    %c0_276 = arith.constant 0 : index
    %c0_277 = arith.constant 0 : index
    %c0_278 = arith.constant 0 : index
    %422 = vector.load %arg15[%c0_276, %c0_277, %c0_278] : memref<3x16x32xf32, #tpu.memory_space<vmem>>, vector<1x16x32xf32>
    %423 = vector.shape_cast %422 : vector<1x16x32xf32> to vector<16x32xf32>
    %cst_279 = arith.constant dense<0.000000e+00> : vector<16x32xf32>
    %424 = tpu.matmul %423, %417, %cst_279 {dimension_numbers = #tpu.dot_dimension_numbers<[1], [0], [0], [1], [0, 0, 1, 1], [], []>} : vector<16x32xf32>, vector<32x32xf32>, vector<16x32xf32> -> vector<16x32xf32>
    %c1_280 = arith.constant 1 : index
    %c0_281 = arith.constant 0 : index
    %c0_282 = arith.constant 0 : index
    %425 = vector.load %arg15[%c1_280, %c0_281, %c0_282] : memref<3x16x32xf32, #tpu.memory_space<vmem>>, vector<1x16x32xf32>
    %426 = vector.shape_cast %425 : vector<1x16x32xf32> to vector<16x32xf32>
    %cst_283 = arith.constant dense<0.000000e+00> : vector<16x32xf32>
    %427 = tpu.matmul %426, %418, %cst_283 {dimension_numbers = #tpu.dot_dimension_numbers<[1], [0], [0], [1], [0, 0, 1, 1], [], []>} : vector<16x32xf32>, vector<32x32xf32>, vector<16x32xf32> -> vector<16x32xf32>
    %428 = arith.addf %424, %427 : vector<16x32xf32>
    %c2_284 = arith.constant 2 : index
    %c0_285 = arith.constant 0 : index
    %c0_286 = arith.constant 0 : index
    %429 = vector.load %arg15[%c2_284, %c0_285, %c0_286] : memref<3x16x32xf32, #tpu.memory_space<vmem>>, vector<1x16x32xf32>
    %430 = vector.shape_cast %429 : vector<1x16x32xf32> to vector<16x32xf32>
    %cst_287 = arith.constant dense<0.000000e+00> : vector<16x32xf32>
    %431 = tpu.matmul %430, %421, %cst_287 {dimension_numbers = #tpu.dot_dimension_numbers<[1], [0], [0], [1], [0, 0, 1, 1], [], []>} : vector<16x32xf32>, vector<32x32xf32>, vector<16x32xf32> -> vector<16x32xf32>
    %432 = arith.addf %428, %431 : vector<16x32xf32>
    %cst_288 = arith.constant dense<0.000000e+00> : vector<16xf32>
    %433 = vector.multi_reduction <add>, %432, %cst_288 [1] : vector<16x32xf32> to vector<16xf32>
    %434 = vector.shape_cast %433 : vector<16xf32> to vector<16x1xf32>
    %cst_289 = arith.constant 3.200000e+01 : f32
    %435 = vector.broadcast %cst_289 : f32 to vector<16x1xf32>
    %436 = arith.divf %434, %435 : vector<16x1xf32>
    %437 = arith.mulf %432, %432 : vector<16x32xf32>
    %cst_290 = arith.constant dense<0.000000e+00> : vector<16xf32>
    %438 = vector.multi_reduction <add>, %437, %cst_290 [1] : vector<16x32xf32> to vector<16xf32>
    %439 = vector.shape_cast %438 : vector<16xf32> to vector<16x1xf32>
    %cst_291 = arith.constant 3.200000e+01 : f32
    %440 = vector.broadcast %cst_291 : f32 to vector<16x1xf32>
    %441 = arith.divf %439, %440 : vector<16x1xf32>
    %442 = arith.mulf %436, %436 : vector<16x1xf32>
    %443 = arith.subf %441, %442 : vector<16x1xf32>
    %cst_292 = arith.constant 0.000000e+00 : f32
    %444 = vector.broadcast %cst_292 : f32 to vector<16x1xf32>
    %445 = arith.maximumf %443, %444 : vector<16x1xf32>
    %c0_293 = arith.constant 0 : index
    %c0_294 = arith.constant 0 : index
    %446 = vector.load %arg17[%c0_293, %c0_294] : memref<16x1xf32, #tpu.memory_space<vmem>>, vector<16x1xf32>
    %cst_295 = arith.constant 9.99999974E-6 : f32
    %447 = vector.broadcast %cst_295 : f32 to vector<16x1xf32>
    %448 = arith.addf %445, %447 : vector<16x1xf32>
    %449 = math.rsqrt %448 : vector<16x1xf32>
    %450 = arith.mulf %446, %449 : vector<16x1xf32>
    %c0_296 = arith.constant 0 : index
    %c0_297 = arith.constant 0 : index
    %451 = vector.load %arg18[%c0_296, %c0_297] : memref<16x1xf32, #tpu.memory_space<vmem>>, vector<16x1xf32>
    %452 = arith.mulf %436, %450 : vector<16x1xf32>
    %453 = arith.subf %451, %452 : vector<16x1xf32>
    %454 = vector.broadcast %450 : vector<16x1xf32> to vector<16x32xf32>
    %455 = arith.mulf %432, %454 : vector<16x32xf32>
    %456 = vector.broadcast %453 : vector<16x1xf32> to vector<16x32xf32>
    %457 = arith.addf %455, %456 : vector<16x32xf32>
    %cst_298 = arith.constant 0.000000e+00 : f32
    %458 = vector.broadcast %cst_298 : f32 to vector<16x32xf32>
    %459 = arith.maximumf %457, %458 : vector<16x32xf32>
    %c0_299 = arith.constant 0 : index
    %c1_300 = arith.constant 1 : index
    %460 = vector.load %arg28[%c0_299, %c1_300] : memref<32x66xf32, #tpu.memory_space<vmem>>, vector<16x32xf32>
    tpu.vector_store %arg28[%c0_299, %c1_300], %459 {strides = array<i32>} : memref<32x66xf32, #tpu.memory_space<vmem>>, vector<16x32xf32>,
    %cst_301 = arith.constant 0.000000e+00 : f32
    %461 = vector.broadcast %cst_301 : f32 to vector<16x1xf32>
    %c0_302 = arith.constant 0 : index
    %c0_303 = arith.constant 0 : index
    %462 = vector.load %arg28[%c0_302, %c0_303] : memref<32x66xf32, #tpu.memory_space<vmem>>, vector<16x1xf32>
    tpu.vector_store %arg28[%c0_302, %c0_303], %461 {strides = array<i32>} : memref<32x66xf32, #tpu.memory_space<vmem>>, vector<16x1xf32>,
    %c0_304 = arith.constant 0 : index
    %c33_305 = arith.constant 33 : index
    %463 = vector.load %arg28[%c0_304, %c33_305] : memref<32x66xf32, #tpu.memory_space<vmem>>, vector<16x1xf32>
    tpu.vector_store %arg28[%c0_304, %c33_305], %461 {strides = array<i32>} : memref<32x66xf32, #tpu.memory_space<vmem>>, vector<16x1xf32>,
    %c0_306 = arith.constant 0 : index
    %c0_307 = arith.constant 0 : index
    %464 = vector.load %arg28[%c0_306, %c0_307] : memref<32x66xf32, #tpu.memory_space<vmem>>, vector<16x32xf32>
    %465 = vector.broadcast %150 : vector<1x32xf32> to vector<16x32xf32>
    %466 = arith.mulf %464, %465 : vector<16x32xf32>
    %c0_308 = arith.constant 0 : index
    %c1_309 = arith.constant 1 : index
    %467 = vector.load %arg28[%c0_308, %c1_309] : memref<32x66xf32, #tpu.memory_space<vmem>>, vector<16x32xf32>
    %c0_310 = arith.constant 0 : index
    %c2_311 = arith.constant 2 : index
    %468 = vector.load %arg28[%c0_310, %c2_311] : memref<32x66xf32, #tpu.memory_space<vmem>>, vector<16x32xf32>
    %469 = vector.broadcast %153 : vector<1x32xf32> to vector<16x32xf32>
    %470 = arith.mulf %468, %469 : vector<16x32xf32>
    %c0_312 = arith.constant 0 : index
    %c0_313 = arith.constant 0 : index
    %c0_314 = arith.constant 0 : index
    %471 = vector.load %arg16[%c0_312, %c0_313, %c0_314] : memref<3x16x16xf32, #tpu.memory_space<vmem>>, vector<1x16x16xf32>
    %472 = vector.shape_cast %471 : vector<1x16x16xf32> to vector<16x16xf32>
    %cst_315 = arith.constant dense<0.000000e+00> : vector<16x32xf32>
    %473 = tpu.matmul %472, %466, %cst_315 {dimension_numbers = #tpu.dot_dimension_numbers<[1], [0], [0], [1], [0, 0, 1, 1], [], []>} : vector<16x16xf32>, vector<16x32xf32>, vector<16x32xf32> -> vector<16x32xf32>
    %c1_316 = arith.constant 1 : index
    %c0_317 = arith.constant 0 : index
    %c0_318 = arith.constant 0 : index
    %474 = vector.load %arg16[%c1_316, %c0_317, %c0_318] : memref<3x16x16xf32, #tpu.memory_space<vmem>>, vector<1x16x16xf32>
    %475 = vector.shape_cast %474 : vector<1x16x16xf32> to vector<16x16xf32>
    %cst_319 = arith.constant dense<0.000000e+00> : vector<16x32xf32>
    %476 = tpu.matmul %475, %467, %cst_319 {dimension_numbers = #tpu.dot_dimension_numbers<[1], [0], [0], [1], [0, 0, 1, 1], [], []>} : vector<16x16xf32>, vector<16x32xf32>, vector<16x32xf32> -> vector<16x32xf32>
    %477 = arith.addf %473, %476 : vector<16x32xf32>
    %c2_320 = arith.constant 2 : index
    %c0_321 = arith.constant 0 : index
    %c0_322 = arith.constant 0 : index
    %478 = vector.load %arg16[%c2_320, %c0_321, %c0_322] : memref<3x16x16xf32, #tpu.memory_space<vmem>>, vector<1x16x16xf32>
    %479 = vector.shape_cast %478 : vector<1x16x16xf32> to vector<16x16xf32>
    %cst_323 = arith.constant dense<0.000000e+00> : vector<16x32xf32>
    %480 = tpu.matmul %479, %470, %cst_323 {dimension_numbers = #tpu.dot_dimension_numbers<[1], [0], [0], [1], [0, 0, 1, 1], [], []>} : vector<16x16xf32>, vector<16x32xf32>, vector<16x32xf32> -> vector<16x32xf32>
    %481 = arith.addf %477, %480 : vector<16x32xf32>
    %cst_324 = arith.constant dense<0.000000e+00> : vector<16xf32>
    %482 = vector.multi_reduction <add>, %481, %cst_324 [1] : vector<16x32xf32> to vector<16xf32>
    %483 = vector.shape_cast %482 : vector<16xf32> to vector<16x1xf32>
    %cst_325 = arith.constant 3.200000e+01 : f32
    %484 = vector.broadcast %cst_325 : f32 to vector<16x1xf32>
    %485 = arith.divf %483, %484 : vector<16x1xf32>
    %486 = arith.mulf %481, %481 : vector<16x32xf32>
    %cst_326 = arith.constant dense<0.000000e+00> : vector<16xf32>
    %487 = vector.multi_reduction <add>, %486, %cst_326 [1] : vector<16x32xf32> to vector<16xf32>
    %488 = vector.shape_cast %487 : vector<16xf32> to vector<16x1xf32>
    %cst_327 = arith.constant 3.200000e+01 : f32
    %489 = vector.broadcast %cst_327 : f32 to vector<16x1xf32>
    %490 = arith.divf %488, %489 : vector<16x1xf32>
    %491 = arith.mulf %485, %485 : vector<16x1xf32>
    %492 = arith.subf %490, %491 : vector<16x1xf32>
    %cst_328 = arith.constant 0.000000e+00 : f32
    %493 = vector.broadcast %cst_328 : f32 to vector<16x1xf32>
    %494 = arith.maximumf %492, %493 : vector<16x1xf32>
    %c0_329 = arith.constant 0 : index
    %c0_330 = arith.constant 0 : index
    %495 = vector.load %arg17[%c0_329, %c0_330] : memref<16x1xf32, #tpu.memory_space<vmem>>, vector<16x1xf32>
    %cst_331 = arith.constant 9.99999974E-6 : f32
    %496 = vector.broadcast %cst_331 : f32 to vector<16x1xf32>
    %497 = arith.addf %494, %496 : vector<16x1xf32>
    %498 = math.rsqrt %497 : vector<16x1xf32>
    %499 = arith.mulf %495, %498 : vector<16x1xf32>
    %c0_332 = arith.constant 0 : index
    %c0_333 = arith.constant 0 : index
    %500 = vector.load %arg18[%c0_332, %c0_333] : memref<16x1xf32, #tpu.memory_space<vmem>>, vector<16x1xf32>
    %501 = arith.mulf %485, %499 : vector<16x1xf32>
    %502 = arith.subf %500, %501 : vector<16x1xf32>
    %503 = vector.broadcast %499 : vector<16x1xf32> to vector<16x32xf32>
    %504 = arith.mulf %481, %503 : vector<16x32xf32>
    %505 = vector.broadcast %502 : vector<16x1xf32> to vector<16x32xf32>
    %506 = arith.addf %504, %505 : vector<16x32xf32>
    %cst_334 = arith.constant 0.000000e+00 : f32
    %507 = vector.broadcast %cst_334 : f32 to vector<16x32xf32>
    %508 = arith.maximumf %506, %507 : vector<16x32xf32>
    %c0_335 = arith.constant 0 : index
    %c0_336 = arith.constant 0 : index
    %c0_337 = arith.constant 0 : index
    %509 = vector.load %arg19[%c0_335, %c0_336, %c0_337] : memref<2x8x16xf32, #tpu.memory_space<vmem>>, vector<1x8x16xf32>
    %510 = vector.shape_cast %509 : vector<1x8x16xf32> to vector<8x16xf32>
    %cst_338 = arith.constant dense<0.000000e+00> : vector<8x32xf32>
    %511 = tpu.matmul %510, %508, %cst_338 {dimension_numbers = #tpu.dot_dimension_numbers<[1], [0], [0], [1], [0, 0, 1, 1], [], []>} : vector<8x16xf32>, vector<16x32xf32>, vector<8x32xf32> -> vector<8x32xf32>
    %c1_339 = arith.constant 1 : index
    %c0_340 = arith.constant 0 : index
    %c0_341 = arith.constant 0 : index
    %512 = vector.load %arg19[%c1_339, %c0_340, %c0_341] : memref<2x8x16xf32, #tpu.memory_space<vmem>>, vector<1x8x16xf32>
    %513 = vector.shape_cast %512 : vector<1x8x16xf32> to vector<8x16xf32>
    %cst_342 = arith.constant dense<0.000000e+00> : vector<8x32xf32>
    %514 = tpu.matmul %513, %508, %cst_342 {dimension_numbers = #tpu.dot_dimension_numbers<[1], [0], [0], [1], [0, 0, 1, 1], [], []>} : vector<8x16xf32>, vector<16x32xf32>, vector<8x32xf32> -> vector<8x32xf32>
    %515 = tpu.iota {dimensions = array<i32: 0>} : vector<32x64xi32>
    %516 = tpu.iota {dimensions = array<i32: 1>} : vector<32x64xi32>
    %c2_i32_343 = arith.constant 2 : i32
    %517 = vector.broadcast %c2_i32_343 : i32 to vector<32x64xi32>
    %518 = arith.muli %517, %515 : vector<32x64xi32>
    %519 = arith.cmpi eq, %516, %518 : vector<32x64xi32>
    %cst_344 = arith.constant 1.000000e+00 : f32
    %cst_345 = arith.constant 0.000000e+00 : f32
    %520 = vector.broadcast %cst_344 : f32 to vector<32x64xf32>
    %521 = vector.broadcast %cst_345 : f32 to vector<32x64xf32>
    %522 = arith.select %519, %520, %521 : vector<32x64xi1>, vector<32x64xf32>
    %c2_i32_346 = arith.constant 2 : i32
    %523 = vector.broadcast %c2_i32_346 : i32 to vector<32x64xi32>
    %524 = arith.muli %523, %515 : vector<32x64xi32>
    %c1_i32_347 = arith.constant 1 : i32
    %525 = vector.broadcast %c1_i32_347 : i32 to vector<32x64xi32>
    %526 = arith.addi %524, %525 : vector<32x64xi32>
    %527 = arith.cmpi eq, %516, %526 : vector<32x64xi32>
    %cst_348 = arith.constant 1.000000e+00 : f32
    %cst_349 = arith.constant 0.000000e+00 : f32
    %528 = vector.broadcast %cst_348 : f32 to vector<32x64xf32>
    %529 = vector.broadcast %cst_349 : f32 to vector<32x64xf32>
    %530 = arith.select %527, %528, %529 : vector<32x64xi1>, vector<32x64xf32>
    %cst_350 = arith.constant dense<0.000000e+00> : vector<8x64xf32>
    %531 = tpu.matmul %511, %522, %cst_350 {dimension_numbers = #tpu.dot_dimension_numbers<[1], [0], [0], [1], [0, 0, 1, 1], [], []>} : vector<8x32xf32>, vector<32x64xf32>, vector<8x64xf32> -> vector<8x64xf32>
    %cst_351 = arith.constant dense<0.000000e+00> : vector<8x64xf32>
    %532 = tpu.matmul %514, %530, %cst_351 {dimension_numbers = #tpu.dot_dimension_numbers<[1], [0], [0], [1], [0, 0, 1, 1], [], []>} : vector<8x32xf32>, vector<32x64xf32>, vector<8x64xf32> -> vector<8x64xf32>
    %533 = arith.addf %531, %532 : vector<8x64xf32>
    %c0_352 = arith.constant 0 : index
    %c0_353 = arith.constant 0 : index
    %534 = vector.load %arg20[%c0_352, %c0_353] : memref<8x1xf32, #tpu.memory_space<vmem>>, vector<8x1xf32>
    %535 = vector.broadcast %534 : vector<8x1xf32> to vector<8x64xf32>
    %536 = arith.addf %533, %535 : vector<8x64xf32>
    %c0_354 = arith.constant 0 : index
    %c1_355 = arith.constant 1 : index
    %537 = vector.load %arg28[%c0_354, %c1_355] : memref<32x66xf32, #tpu.memory_space<vmem>>, vector<8x64xf32>
    tpu.vector_store %arg28[%c0_354, %c1_355], %113 {strides = array<i32>} : memref<32x66xf32, #tpu.memory_space<vmem>>, vector<8x64xf32>,
    %c8 = arith.constant 8 : index
    %c1_356 = arith.constant 1 : index
    %538 = vector.load %arg28[%c8, %c1_356] : memref<32x66xf32, #tpu.memory_space<vmem>>, vector<8x64xf32>
    tpu.vector_store %arg28[%c8, %c1_356], %536 {strides = array<i32>} : memref<32x66xf32, #tpu.memory_space<vmem>>, vector<8x64xf32>,
    %cst_357 = arith.constant 0.000000e+00 : f32
    %539 = vector.broadcast %cst_357 : f32 to vector<16x1xf32>
    %c0_358 = arith.constant 0 : index
    %c0_359 = arith.constant 0 : index
    %540 = vector.load %arg28[%c0_358, %c0_359] : memref<32x66xf32, #tpu.memory_space<vmem>>, vector<16x1xf32>
    tpu.vector_store %arg28[%c0_358, %c0_359], %539 {strides = array<i32>} : memref<32x66xf32, #tpu.memory_space<vmem>>, vector<16x1xf32>,
    %c0_360 = arith.constant 0 : index
    %c65_361 = arith.constant 65 : index
    %541 = vector.load %arg28[%c0_360, %c65_361] : memref<32x66xf32, #tpu.memory_space<vmem>>, vector<16x1xf32>
    tpu.vector_store %arg28[%c0_360, %c65_361], %539 {strides = array<i32>} : memref<32x66xf32, #tpu.memory_space<vmem>>, vector<16x1xf32>,
    %c0_362 = arith.constant 0 : index
    %c0_363 = arith.constant 0 : index
    %542 = vector.load %arg28[%c0_362, %c0_363] : memref<32x66xf32, #tpu.memory_space<vmem>>, vector<16x64xf32>
    %543 = vector.broadcast %18 : vector<1x64xf32> to vector<16x64xf32>
    %544 = arith.mulf %542, %543 : vector<16x64xf32>
    %c0_364 = arith.constant 0 : index
    %c1_365 = arith.constant 1 : index
    %545 = vector.load %arg28[%c0_364, %c1_365] : memref<32x66xf32, #tpu.memory_space<vmem>>, vector<16x64xf32>
    %c0_366 = arith.constant 0 : index
    %c2_367 = arith.constant 2 : index
    %546 = vector.load %arg28[%c0_366, %c2_367] : memref<32x66xf32, #tpu.memory_space<vmem>>, vector<16x64xf32>
    %547 = vector.broadcast %21 : vector<1x64xf32> to vector<16x64xf32>
    %548 = arith.mulf %546, %547 : vector<16x64xf32>
    %c0_368 = arith.constant 0 : index
    %c0_369 = arith.constant 0 : index
    %c0_370 = arith.constant 0 : index
    %549 = vector.load %arg21[%c0_368, %c0_369, %c0_370] : memref<3x8x16xf32, #tpu.memory_space<vmem>>, vector<1x8x16xf32>
    %550 = vector.shape_cast %549 : vector<1x8x16xf32> to vector<8x16xf32>
    %cst_371 = arith.constant dense<0.000000e+00> : vector<8x64xf32>
    %551 = tpu.matmul %550, %544, %cst_371 {dimension_numbers = #tpu.dot_dimension_numbers<[1], [0], [0], [1], [0, 0, 1, 1], [], []>} : vector<8x16xf32>, vector<16x64xf32>, vector<8x64xf32> -> vector<8x64xf32>
    %c1_372 = arith.constant 1 : index
    %c0_373 = arith.constant 0 : index
    %c0_374 = arith.constant 0 : index
    %552 = vector.load %arg21[%c1_372, %c0_373, %c0_374] : memref<3x8x16xf32, #tpu.memory_space<vmem>>, vector<1x8x16xf32>
    %553 = vector.shape_cast %552 : vector<1x8x16xf32> to vector<8x16xf32>
    %cst_375 = arith.constant dense<0.000000e+00> : vector<8x64xf32>
    %554 = tpu.matmul %553, %545, %cst_375 {dimension_numbers = #tpu.dot_dimension_numbers<[1], [0], [0], [1], [0, 0, 1, 1], [], []>} : vector<8x16xf32>, vector<16x64xf32>, vector<8x64xf32> -> vector<8x64xf32>
    %555 = arith.addf %551, %554 : vector<8x64xf32>
    %c2_376 = arith.constant 2 : index
    %c0_377 = arith.constant 0 : index
    %c0_378 = arith.constant 0 : index
    %556 = vector.load %arg21[%c2_376, %c0_377, %c0_378] : memref<3x8x16xf32, #tpu.memory_space<vmem>>, vector<1x8x16xf32>
    %557 = vector.shape_cast %556 : vector<1x8x16xf32> to vector<8x16xf32>
    %cst_379 = arith.constant dense<0.000000e+00> : vector<8x64xf32>
    %558 = tpu.matmul %557, %548, %cst_379 {dimension_numbers = #tpu.dot_dimension_numbers<[1], [0], [0], [1], [0, 0, 1, 1], [], []>} : vector<8x16xf32>, vector<16x64xf32>, vector<8x64xf32> -> vector<8x64xf32>
    %559 = arith.addf %555, %558 : vector<8x64xf32>
    %cst_380 = arith.constant dense<0.000000e+00> : vector<8xf32>
    %560 = vector.multi_reduction <add>, %559, %cst_380 [1] : vector<8x64xf32> to vector<8xf32>
    %561 = vector.shape_cast %560 : vector<8xf32> to vector<8x1xf32>
    %cst_381 = arith.constant 6.400000e+01 : f32
    %562 = vector.broadcast %cst_381 : f32 to vector<8x1xf32>
    %563 = arith.divf %561, %562 : vector<8x1xf32>
    %564 = arith.mulf %559, %559 : vector<8x64xf32>
    %cst_382 = arith.constant dense<0.000000e+00> : vector<8xf32>
    %565 = vector.multi_reduction <add>, %564, %cst_382 [1] : vector<8x64xf32> to vector<8xf32>
    %566 = vector.shape_cast %565 : vector<8xf32> to vector<8x1xf32>
    %cst_383 = arith.constant 6.400000e+01 : f32
    %567 = vector.broadcast %cst_383 : f32 to vector<8x1xf32>
    %568 = arith.divf %566, %567 : vector<8x1xf32>
    %569 = arith.mulf %563, %563 : vector<8x1xf32>
    %570 = arith.subf %568, %569 : vector<8x1xf32>
    %cst_384 = arith.constant 0.000000e+00 : f32
    %571 = vector.broadcast %cst_384 : f32 to vector<8x1xf32>
    %572 = arith.maximumf %570, %571 : vector<8x1xf32>
    %c0_385 = arith.constant 0 : index
    %c0_386 = arith.constant 0 : index
    %573 = vector.load %arg23[%c0_385, %c0_386] : memref<8x1xf32, #tpu.memory_space<vmem>>, vector<8x1xf32>
    %cst_387 = arith.constant 9.99999974E-6 : f32
    %574 = vector.broadcast %cst_387 : f32 to vector<8x1xf32>
    %575 = arith.addf %572, %574 : vector<8x1xf32>
    %576 = math.rsqrt %575 : vector<8x1xf32>
    %577 = arith.mulf %573, %576 : vector<8x1xf32>
    %c0_388 = arith.constant 0 : index
    %c0_389 = arith.constant 0 : index
    %578 = vector.load %arg24[%c0_388, %c0_389] : memref<8x1xf32, #tpu.memory_space<vmem>>, vector<8x1xf32>
    %579 = arith.mulf %563, %577 : vector<8x1xf32>
    %580 = arith.subf %578, %579 : vector<8x1xf32>
    %581 = vector.broadcast %577 : vector<8x1xf32> to vector<8x64xf32>
    %582 = arith.mulf %559, %581 : vector<8x64xf32>
    %583 = vector.broadcast %580 : vector<8x1xf32> to vector<8x64xf32>
    %584 = arith.addf %582, %583 : vector<8x64xf32>
    %cst_390 = arith.constant 0.000000e+00 : f32
    %585 = vector.broadcast %cst_390 : f32 to vector<8x64xf32>
    %586 = arith.maximumf %584, %585 : vector<8x64xf32>
    %c0_391 = arith.constant 0 : index
    %c1_392 = arith.constant 1 : index
    %587 = vector.load %arg28[%c0_391, %c1_392] : memref<32x66xf32, #tpu.memory_space<vmem>>, vector<8x64xf32>
    tpu.vector_store %arg28[%c0_391, %c1_392], %586 {strides = array<i32>} : memref<32x66xf32, #tpu.memory_space<vmem>>, vector<8x64xf32>,
    %cst_393 = arith.constant 0.000000e+00 : f32
    %588 = vector.broadcast %cst_393 : f32 to vector<8x1xf32>
    %c0_394 = arith.constant 0 : index
    %c0_395 = arith.constant 0 : index
    %589 = vector.load %arg28[%c0_394, %c0_395] : memref<32x66xf32, #tpu.memory_space<vmem>>, vector<8x1xf32>
    tpu.vector_store %arg28[%c0_394, %c0_395], %588 {strides = array<i32>} : memref<32x66xf32, #tpu.memory_space<vmem>>, vector<8x1xf32>,
    %c0_396 = arith.constant 0 : index
    %c65_397 = arith.constant 65 : index
    %590 = vector.load %arg28[%c0_396, %c65_397] : memref<32x66xf32, #tpu.memory_space<vmem>>, vector<8x1xf32>
    tpu.vector_store %arg28[%c0_396, %c65_397], %588 {strides = array<i32>} : memref<32x66xf32, #tpu.memory_space<vmem>>, vector<8x1xf32>,
    %c0_398 = arith.constant 0 : index
    %c0_399 = arith.constant 0 : index
    %591 = vector.load %arg28[%c0_398, %c0_399] : memref<32x66xf32, #tpu.memory_space<vmem>>, vector<8x64xf32>
    %592 = vector.broadcast %18 : vector<1x64xf32> to vector<8x64xf32>
    %593 = arith.mulf %591, %592 : vector<8x64xf32>
    %c0_400 = arith.constant 0 : index
    %c1_401 = arith.constant 1 : index
    %594 = vector.load %arg28[%c0_400, %c1_401] : memref<32x66xf32, #tpu.memory_space<vmem>>, vector<8x64xf32>
    %c0_402 = arith.constant 0 : index
    %c2_403 = arith.constant 2 : index
    %595 = vector.load %arg28[%c0_402, %c2_403] : memref<32x66xf32, #tpu.memory_space<vmem>>, vector<8x64xf32>
    %596 = vector.broadcast %21 : vector<1x64xf32> to vector<8x64xf32>
    %597 = arith.mulf %595, %596 : vector<8x64xf32>
    %c0_404 = arith.constant 0 : index
    %c0_405 = arith.constant 0 : index
    %c0_406 = arith.constant 0 : index
    %598 = vector.load %arg22[%c0_404, %c0_405, %c0_406] : memref<3x8x8xf32, #tpu.memory_space<vmem>>, vector<1x8x8xf32>
    %599 = vector.shape_cast %598 : vector<1x8x8xf32> to vector<8x8xf32>
    %cst_407 = arith.constant dense<0.000000e+00> : vector<8x64xf32>
    %600 = tpu.matmul %599, %593, %cst_407 {dimension_numbers = #tpu.dot_dimension_numbers<[1], [0], [0], [1], [0, 0, 1, 1], [], []>} : vector<8x8xf32>, vector<8x64xf32>, vector<8x64xf32> -> vector<8x64xf32>
    %c1_408 = arith.constant 1 : index
    %c0_409 = arith.constant 0 : index
    %c0_410 = arith.constant 0 : index
    %601 = vector.load %arg22[%c1_408, %c0_409, %c0_410] : memref<3x8x8xf32, #tpu.memory_space<vmem>>, vector<1x8x8xf32>
    %602 = vector.shape_cast %601 : vector<1x8x8xf32> to vector<8x8xf32>
    %cst_411 = arith.constant dense<0.000000e+00> : vector<8x64xf32>
    %603 = tpu.matmul %602, %594, %cst_411 {dimension_numbers = #tpu.dot_dimension_numbers<[1], [0], [0], [1], [0, 0, 1, 1], [], []>} : vector<8x8xf32>, vector<8x64xf32>, vector<8x64xf32> -> vector<8x64xf32>
    %604 = arith.addf %600, %603 : vector<8x64xf32>
    %c2_412 = arith.constant 2 : index
    %c0_413 = arith.constant 0 : index
    %c0_414 = arith.constant 0 : index
    %605 = vector.load %arg22[%c2_412, %c0_413, %c0_414] : memref<3x8x8xf32, #tpu.memory_space<vmem>>, vector<1x8x8xf32>
    %606 = vector.shape_cast %605 : vector<1x8x8xf32> to vector<8x8xf32>
    %cst_415 = arith.constant dense<0.000000e+00> : vector<8x64xf32>
    %607 = tpu.matmul %606, %597, %cst_415 {dimension_numbers = #tpu.dot_dimension_numbers<[1], [0], [0], [1], [0, 0, 1, 1], [], []>} : vector<8x8xf32>, vector<8x64xf32>, vector<8x64xf32> -> vector<8x64xf32>
    %608 = arith.addf %604, %607 : vector<8x64xf32>
    %cst_416 = arith.constant dense<0.000000e+00> : vector<8xf32>
    %609 = vector.multi_reduction <add>, %608, %cst_416 [1] : vector<8x64xf32> to vector<8xf32>
    %610 = vector.shape_cast %609 : vector<8xf32> to vector<8x1xf32>
    %cst_417 = arith.constant 6.400000e+01 : f32
    %611 = vector.broadcast %cst_417 : f32 to vector<8x1xf32>
    %612 = arith.divf %610, %611 : vector<8x1xf32>
    %613 = arith.mulf %608, %608 : vector<8x64xf32>
    %cst_418 = arith.constant dense<0.000000e+00> : vector<8xf32>
    %614 = vector.multi_reduction <add>, %613, %cst_418 [1] : vector<8x64xf32> to vector<8xf32>
    %615 = vector.shape_cast %614 : vector<8xf32> to vector<8x1xf32>
    %cst_419 = arith.constant 6.400000e+01 : f32
    %616 = vector.broadcast %cst_419 : f32 to vector<8x1xf32>
    %617 = arith.divf %615, %616 : vector<8x1xf32>
    %618 = arith.mulf %612, %612 : vector<8x1xf32>
    %619 = arith.subf %617, %618 : vector<8x1xf32>
    %cst_420 = arith.constant 0.000000e+00 : f32
    %620 = vector.broadcast %cst_420 : f32 to vector<8x1xf32>
    %621 = arith.maximumf %619, %620 : vector<8x1xf32>
    %c0_421 = arith.constant 0 : index
    %c0_422 = arith.constant 0 : index
    %622 = vector.load %arg23[%c0_421, %c0_422] : memref<8x1xf32, #tpu.memory_space<vmem>>, vector<8x1xf32>
    %cst_423 = arith.constant 9.99999974E-6 : f32
    %623 = vector.broadcast %cst_423 : f32 to vector<8x1xf32>
    %624 = arith.addf %621, %623 : vector<8x1xf32>
    %625 = math.rsqrt %624 : vector<8x1xf32>
    %626 = arith.mulf %622, %625 : vector<8x1xf32>
    %c0_424 = arith.constant 0 : index
    %c0_425 = arith.constant 0 : index
    %627 = vector.load %arg24[%c0_424, %c0_425] : memref<8x1xf32, #tpu.memory_space<vmem>>, vector<8x1xf32>
    %628 = arith.mulf %612, %626 : vector<8x1xf32>
    %629 = arith.subf %627, %628 : vector<8x1xf32>
    %630 = vector.broadcast %626 : vector<8x1xf32> to vector<8x64xf32>
    %631 = arith.mulf %608, %630 : vector<8x64xf32>
    %632 = vector.broadcast %629 : vector<8x1xf32> to vector<8x64xf32>
    %633 = arith.addf %631, %632 : vector<8x64xf32>
    %cst_426 = arith.constant 0.000000e+00 : f32
    %634 = vector.broadcast %cst_426 : f32 to vector<8x64xf32>
    %635 = arith.maximumf %633, %634 : vector<8x64xf32>
    %c0_427 = arith.constant 0 : index
    %c0_428 = arith.constant 0 : index
    %636 = vector.load %arg25[%c0_427, %c0_428] : memref<1x8xf32, #tpu.memory_space<vmem>>, vector<1x8xf32>
    %cst_429 = arith.constant dense<0.000000e+00> : vector<1x64xf32>
    %637 = tpu.matmul %636, %635, %cst_429 {dimension_numbers = #tpu.dot_dimension_numbers<[1], [0], [0], [1], [0, 0, 1, 1], [], []>} : vector<1x8xf32>, vector<8x64xf32>, vector<1x64xf32> -> vector<1x64xf32>
    %c0_430 = arith.constant 0 : index
    %c0_431 = arith.constant 0 : index
    %638 = vector.load %arg26[%c0_430, %c0_431] : memref<1x1xf32, #tpu.memory_space<vmem>>, vector<1x1xf32>
    %639 = vector.broadcast %638 : vector<1x1xf32> to vector<1x64xf32>
    %640 = arith.addf %637, %639 : vector<1x64xf32>
    %c0_432 = arith.constant 0 : index
    %c0_433 = arith.constant 0 : index
    %641 = vector.load %arg27[%c0_432, %c0_433] : memref<1x64xf32, #tpu.memory_space<vmem>>, vector<1x64xf32>
    tpu.vector_store %arg27[%c0_432, %c0_433], %640 {strides = array<i32>} : memref<1x64xf32, #tpu.memory_space<vmem>>, vector<1x64xf32>,
    return
  }
}

</mosaic_0001>

<bundles_post_ra>
// kernel: unet1d_forward.1
= control target key start
LH: loop header
LB: loop body
LE: loop exit
PB: predicated region body
PF: predicated region fallthrough
CT: control target
= control target key end

     0   :  { %v103_v0 = vlaneseq  ;;  %v5852_v2 = vmov 0.0   ;;  %s5853_s30 = smov 1   ;;  %vm97_vm3 = vcmask 524296   ;;  %vm6993_vm4 = vmmov 0   ;;  %s5857_s28 = smov 126   ;;  %s6954_s0 = inlined_call_operand.vmem [shape: f32[1,64], index: 0, kind: input, shape index: {}]   ;;  %s6955_s1 = inlined_call_operand.vmem [shape: f32[3,8,1], index: 1, kind: input, shape index: {}]   ;;  %s6956_s3 = inlined_call_operand.vmem [shape: f32[8,1], index: 3, kind: input, shape index: {}]   ;;  %s6957_s4 = inlined_call_operand.vmem [shape: f32[8,1], index: 4, kind: input, shape index: {}]   ;;  %s6958_s2 = inlined_call_operand.vmem [shape: f32[3,8,8], index: 2, kind: input, shape index: {}]   ;;  %s6959_s5 = inlined_call_operand.vmem [shape: f32[3,16,8], index: 5, kind: input, shape index: {}]   ;;  %s6960_s7 = inlined_call_operand.vmem [shape: f32[16,1], index: 7, kind: input, shape index: {}]   ;;  %s6961_s8 = inlined_call_operand.vmem [shape: f32[16,1], index: 8, kind: input, shape index: {}]   ;;  %s6962_s6 = inlined_call_operand.vmem [shape: f32[3,16,16], index: 6, kind: input, shape index: {}]   ;;  %s6963_s9 = inlined_call_operand.vmem [shape: f32[3,32,16], index: 9, kind: input, shape index: {}]   ;;  %s6964_s11 = inlined_call_operand.vmem [shape: f32[32,1], index: 11, kind: input, shape index: {}]   ;;  %s6965_s12 = inlined_call_operand.vmem [shape: f32[32,1], index: 12, kind: input, shape index: {}]   ;;  %s6966_s10 = inlined_call_operand.vmem [shape: f32[3,32,32], index: 10, kind: input, shape index: {}]   ;;  %s6967_s14 = inlined_call_operand.vmem [shape: f32[16,1], index: 14, kind: input, shape index: {}]   ;;  %s6968_s13 = inlined_call_operand.vmem [shape: f32[2,16,32], index: 13, kind: input, shape index: {}]   ;;  %s6969_s15 = inlined_call_operand.vmem [shape: f32[3,16,32], index: 15, kind: input, shape index: {}]   ;;  %s6970_s17 = inlined_call_operand.vmem [shape: f32[16,1], index: 17, kind: input, shape index: {}]   ;;  %s6971_s18 = inlined_call_operand.vmem [shape: f32[16,1], index: 18, kind: input, shape index: {}]   ;;  %s6972_s16 = inlined_call_operand.vmem [shape: f32[3,16,16], index: 16, kind: input, shape index: {}]   ;;  %s6973_s20 = inlined_call_operand.vmem [shape: f32[8,1], index: 20, kind: input, shape index: {}]   ;;  %s6974_s19 = inlined_call_operand.vmem [shape: f32[2,8,16], index: 19, kind: input, shape index: {}]   ;;  %s6975_s21 = inlined_call_operand.vmem [shape: f32[3,8,16], index: 21, kind: input, shape index: {}]   ;;  %s6976_s23 = inlined_call_operand.vmem [shape: f32[8,1], index: 23, kind: input, shape index: {}]   ;;  %s6977_s24 = inlined_call_operand.vmem [shape: f32[8,1], index: 24, kind: input, shape index: {}]   ;;  %s6978_s22 = inlined_call_operand.vmem [shape: f32[3,8,8], index: 22, kind: input, shape index: {}]   ;;  %s6979_s26 = inlined_call_operand.<no memory space> [shape: f32[1,1], index: 26, kind: input, shape index: {}]   ;;  %s6980_s25 = inlined_call_operand.vmem [shape: f32[1,8], index: 25, kind: input, shape index: {}]   ;;  %s6981_s27 = inlined_call_operand.vmem [shape: f32[1,64], index: 27, kind: output, shape index: {}]  }
   0x1   :  { %6997 = sst [smem:[#allocation4_spill]] %s6954_s0  ;;  %5131 = vmatprep.subr.mxu0 %v5852_v2  ;;  %5146 = vmatprep.subr.mxu1 %v5852_v2  ;;  %vm99_vm5 = vcmask 0   ;;  %vm101_vm6 = vcmask 533000   ;;  %vm130_vm10 = vcmask 1040384   ;;  %vm6996_vm11 = vcmask 7168  }
   0x2   :  { %6998 = sst [smem:[#allocation5_spill]] %s6955_s1  ;;  %v6008_v3 = vand.u32 127, %v103_v0  ;;  %5133 = vmatprep.mubr.msk.f32.mxu0 %vm6993_vm4, %v5852_v2  ;;  %5148 = vmatprep.mubr.msk.f32.mxu1 %vm6993_vm4, %v5852_v2  ;;  %vm360_vm12 = vcmask 523264   ;;  %v5858_v21 = vmov 0   ;;  %vm6992_vm13 = vcmask 531464  }
   0x3   :  { %6999 = sst [smem:[#allocation6_spill]] %s6956_s3  ;;  %s7010_s29 = sld [smem:[#allocation5_spill]]  ;;  %5730 = vset.pattern.permute.xlu0 %v5858_v21  ;;  %5731 = vset.pattern.permute.xlu1 %v5858_v21  ;;  %vm6991_vm14 = vcmask 540168   ;;  %vm413_vm15 = vcmask 64512   ;;  %v6107_v55 = vshrl.u32 %v103_v0, 7  ;;  %v5859_v57 = vmov 0.0|0.0  }
   0x4   :  { %7000 = sst [smem:[#allocation7_spill]] %s6957_s4  ;;  %vm106_vm0 = vcmp.ne.s32.totalorder %v6008_v3, 31  ;;  %vm108_vm1 = vcmp.ne.s32.totalorder %v6008_v3, 63  ;;  %vm6995_vm7 = vcmp.ne.s32.totalorder %v6008_v3, 0  ;;  %vm107_vm8 = vcmp.ne.s32.totalorder %v6008_v3, 32  ;;  %s7011_s3 = sld [smem:[#allocation6_spill]] }
   0x5   :  { %7001 = sst [smem:[#allocation8_spill]] %s6958_s2  ;;  %vm110_vm2 = vmand %vm106_vm0, %vm108_vm1  ;;  %v681_v56 = vmul.u32 2, %v6008_v3  ;;  %v6113_v58 = vadd.s32 8, %v6107_v55  ;;  %v6117_v60 = vadd.s32 16, %v6107_v55  ;;  %v6120_v61 = vadd.s32 24, %v6107_v55 }
   0x6   :  { %7002 = sst [smem:[#allocation9_spill]] %s6959_s5  ;;  %v112_v4 = vsel %vm110_vm2, 1.0, %v5852_v2  ;;  %s5856_s5 = smov 127   ;;  %vm109_vm9 = vmand %vm6995_vm7, %vm107_vm8  ;;  %v5860_v63 = vmov 1.0|1.0   ;;  %v679_v21 = vadd.s32 48, %v6107_v55 }
   0x7   :  { %7003 = sst [smem:[#allocation10_spill]] %s6960_s7  ;;  %v6032_v9 = vsel %vm109_vm9, 1.0, %v5852_v2  ;;  %s7013_s7 = sld [smem:[#allocation8_spill]]  ;;  %vm682_vm1 = vcmp.eq.s32.totalorder %v6107_v55, %v681_v56  ;;  %v698_v59 = vadd.s32 1, %v681_v56  ;;  %vm683_vm2 = vcmp.eq.s32.totalorder %v6113_v58, %v681_v56 }
   0x8   :  { %7004 = sst [smem:[#allocation11_spill]] %s6961_s8  ;;  %vm6126_vm8 = vmpackc.low %vm683_vm2, %vm682_vm1  ;;  %vm685_vm9 = vcmp.eq.s32.totalorder %v6120_v61, %v681_v56  ;;  %s7022_s0 = sld [smem:[#allocation9_spill]] }
   0x9   :  { %7005 = sst [smem:[#allocation12_spill]] %s6962_s6  ;;  %v4782_v11 = vld [vmem:[%s7010_s29 + $0x8] sm:$0xff]  ;;  %v120_v13 = vld [vmem:[%s7010_s29] sm:$0xff]  ;;  %v4787_v15 = vld [vmem:[%s7010_s29 + $0x10] sm:$0xff]  ;;  %s7025_s29 = sld [smem:[#allocation10_spill]] }
   0xa   :  { %7006 = sst [smem:[#allocation13_spill]] %s6963_s9  ;;  %s7009_s6 = sld [smem:[#allocation4_spill]]  ;;  %v6060_v30 = vld [vmem:[%s7011_s3] sm:$0xff] }
   0xb   :  { %7007 = sst [smem:[#allocation14_spill]] %s6964_s11  ;;  %s5854_s9 = smov 2  }
   0xc   :  { %7008 = sst [smem:[#allocation15_spill]] %s6965_s12  ;;  %s7026_s4 = sld [smem:[#allocation11_spill]] }
   0xd   :  { %s7012_s11 = sld [smem:[#allocation7_spill]]  ;;  %v4790_v44 = vld [vmem:[%s7013_s7 + $0x8] sm:$0xff]  ;;  %v406_v47 = vld [vmem:[%s7013_s7] sm:$0xff]  ;;  %v4793_v49 = vld [vmem:[%s7013_s7 + $0x10] sm:$0xff]  ;;  %s7034_s7 = sld [smem:[#allocation14_spill]] }
  0x10   :  { %v4781_v1 = vld [vmem:[%s7009_s6] ss:$0 sm:$0xff] }
  0x11   :  { %94 = vrot.lane.b32.xlu0 %v4781_v1, %s5853_s30 }
  0x13   :  { %v6066_v33 = vld [vmem:[%s7012_s11] sm:$0xff]  ;;  %s7029_s11 = sld [smem:[#allocation12_spill]] }
  0x15   :  { %116 = vrot.lane.b32.xlu0 %v112_v4, %s5854_s9 }
  0x83   :  { %v95_v5 = vpop.permute.xlu0 %94 }
  0x84   :  { %98 = vst.msk [vmem:[#allocation2] sm:$0x1] %vm97_vm3, %v95_v5  ;;  %vm699_vm3 = vcmp.eq.s32.totalorder %v6107_v55, %v698_v59 }
  0x85   :  { %100 = vst.msk [vmem:[#allocation2] sm:$0x1] %vm99_vm5, %v5852_v2  ;;  %vm700_vm5 = vcmp.eq.s32.totalorder %v6113_v58, %v698_v59 }
  0x86   :  { %102 = vst.msk [vmem:[#allocation2] sm:$0x1] %vm101_vm6, %v5852_v2  ;;  %vm684_vm6 = vcmp.eq.s32.totalorder %v6117_v60, %v681_v56 }
  0x87   :  { %v6022_v6 = vpop.permute.xlu0 %116  ;;  %vm6144_vm1 = vmpackc.low %vm685_vm9, %vm684_vm6 }
  0x8d   :  { %v113_v7 = vld [vmem:[#allocation2] sm:$0x1] }
  0x8e   :  { %124 = vrot.lane.b32.xlu1 %v113_v7, %s5856_s5  ;;  %v119_v8 = vmul.f32 %v6022_v6, %v113_v7  ;;  %v114_v10 = vmul.f32 %v113_v7, %v6032_v9 }
  0x92   :  { %282 = vrot.lane.b32.xlu1 %v119_v8, %s5857_s28 }
 0x100   :  { %v125_v12 = vpop.permute.xlu1 %124 }
 0x101   :  { %5132 = vmatpush3.msk.msra.mxu0 %vm130_vm10, %v125_v12 }
 0x102   :  { %5134 = vmatmul.mubr.msk.f32.vlgmr.msra.gmra.mrb[0].mxu0 %vm6996_vm11, %v4782_v11  ;;  %5136 = vmatprep.subr.mxu0 %v5852_v2 }
 0x103   :  { %5137 = vmatpush3.msk.msra.mxu0 %vm130_vm10, %v114_v10  ;;  %5138 = vmatprep.mubr.msk.f32.mxu0 %vm6993_vm4, %v5852_v2 }
 0x104   :  { %5141 = vmatprep.subr.mxu0 %v5852_v2  ;;  %v283_v14 = vpop.permute.xlu1 %282 }
 0x10a   :  { %5139 = vmatmul.mubr.msk.f32.vlgmr.msra.gmra.mrb[0].mxu0 %vm6996_vm11, %v120_v13 }
 0x10b   :  { %5142 = vmatpush3.msk.msra.mxu0 %vm130_vm10, %v283_v14  ;;  %5143 = vmatprep.mubr.msk.f32.mxu0 %vm6993_vm4, %v5852_v2  ;;  %vm701_vm10 = vcmp.eq.s32.totalorder %v6117_v60, %v698_v59 }
 0x10c   :  { %5496 = vmatprep.subr.bf16.mxu0 %v5859_v57 }
 0x112   :  { %5144 = vmatmul.mubr.msk.f32.vlgmr.msra.gmra.mrb[0].mxu0 %vm6996_vm11, %v4787_v15 }
 0x113   :  { %5177 = vmatprep.mubr.msk.f32.mxu0 %vm6993_vm4, %v5852_v2  ;;  %5498 = vmatpush3.bf16.msk.msra.mxu0 %vm6126_vm8, %v5860_v63 }
 0x114   :  { %5499 = vmatprep.subr.bf16.mxu0 %v5859_v57 }
 0x117   :  { %5501 = vmatpush3.bf16.msk.msra.mxu0 %vm6144_vm1, %v5860_v63 }
 0x118   :  { %5502 = vmatprep.subr.bf16.mxu0 %v5859_v57 }
 0x1e5   :  { %v355_v16 = vpop.f32.mrb[0].mxu0 }
 0x1e6   :  { %v5145_v17 = vpop.f32.mrb[1].mxu0  ;;  %v361_v18 = vsel %vm360_vm12, %v355_v16, 0.0  ;;  %v366_v19 = vmul.f32 %v355_v16, %v355_v16 }
 0x1e7   :  { %362 = vadd.xlane.f32.xlu0 %v361_v18  ;;  %v677_v17 = vadd.s32 32, %v6107_v55  ;;  %v678_v18 = vadd.s32 40, %v6107_v55 }
 0x1e8   :  { %v367_v20 = vsel %vm360_vm12, %v366_v19, 0.0 }
 0x1e9   :  { %368 = vadd.xlane.f32.xlu1 %v367_v20  ;;  %vm704_vm9 = vcmp.eq.s32.totalorder %v678_v18, %v698_v59 }
 0x274   :  { %v363_v22 = vpop.xlane.xlu0 %362 }
 0x275   :  { %v365_v23 = vmul.f32 0.015625, %v363_v22  ;;  %v680_v22 = vadd.s32 56, %v6107_v55 }
 0x276   :  { %v369_v24 = vpop.xlane.xlu1 %368 }
 0x277   :  { %v371_v25 = vmul.f32 %v365_v23, %v365_v23  ;;  %v370_v26 = vmul.f32 0.015625, %v369_v24  ;;  %vm689_vm7 = vcmp.eq.s32.totalorder %v680_v22, %v681_v56 }
 0x279   :  { %v372_v27 = vsub.f32 %v370_v26, %v371_v25 }
 0x27b   :  { %v373_v28 = vmax.f32 %v372_v27, 0.0 }
 0x27d   :  { %v375_v29 = vadd.f32 1e-05, %v373_v28 }
 0x27f   :  { %5812 = vrsqrt.f32 %v375_v29 }
 0x289   :  { %v5813_v31 = vpop.eup %5812 }
 0x28a   :  { %v377_v32 = vmul.f32 %v5813_v31, %v6060_v30 }
 0x28c   :  { %383 = vperm.xlu0 %5730, %v377_v32   ;;  %v379_v34 = vmul.f32 %v377_v32, %v365_v23 }
 0x28e   :  { %v380_v35 = vsub.f32 %v6066_v33, %v379_v34  ;;  %v4813_v34 = vld [vmem:[%s7022_s0 + $0x10] sm:$0xff] }
 0x290   :  { %389 = vperm.xlu1 %5731, %v380_v35  }
 0x30b   :  { %v384_v36 = vpop.permute.xlu0 %383 }
 0x30c   :  { %v386_v37 = vmul.f32 %v384_v36, %v355_v16 }
 0x30f   :  { %v390_v38 = vpop.permute.xlu1 %389 }
 0x310   :  { %v392_v39 = vadd.f32 %v390_v38, %v386_v37 }
 0x312   :  { %v393_v40 = vmax.f32 %v392_v39, 0.0 }
 0x314   :  { %395 = vrot.lane.b32.xlu1 %v393_v40, %s5853_s30 }
 0x386   :  { %v396_v41 = vpop.permute.xlu1 %395 }
 0x387   :  { %399 = vst.msk [vmem:[#allocation2] sm:$0xff] %vm6992_vm13, %v396_v41  ;;  %vm6136_vm13 = vmpackc.low %vm700_vm5, %vm699_vm3  ;;  %vm687_vm3 = vcmp.eq.s32.totalorder %v678_v18, %v681_v56  ;;  %vm703_vm5 = vcmp.eq.s32.totalorder %v677_v17, %v698_v59 }
 0x388   :  { %400 = vst.msk [vmem:[#allocation2] sm:$0xff] %vm6996_vm11, %v5852_v2  ;;  %vm706_vm11 = vcmp.eq.s32.totalorder %v680_v22, %v698_v59 }
 0x389   :  { %402 = vst.msk [vmem:[#allocation2] sm:$0xff] %vm6991_vm14, %v5852_v2  ;;  %vm702_vm14 = vcmp.eq.s32.totalorder %v6120_v61, %v698_v59 }
 0x38a   :  { %vm6149_vm2 = vmpackc.low %vm702_vm14, %vm701_vm10  ;;  %vm686_vm14 = vcmp.eq.s32.totalorder %v677_v17, %v681_v56 }
 0x38b   :  { %vm5503_vm6 = vmpackc.low %vm687_vm3, %vm686_vm14  ;;  %vm705_vm14 = vcmp.eq.s32.totalorder %v679_v21, %v698_v59 }
 0x38c   :  { %5504 = vmatpush3.bf16.msk.msra.mxu0 %vm5503_vm6, %v5860_v63  ;;  %vm5515_vm10 = vmpackc.low %vm704_vm9, %vm703_vm5  ;;  %vm866_vm5 = vcmask 277768   ;;  %vm7023_vm9 = vcmask 7168  }
 0x38d   :  { %5505 = vmatprep.subr.bf16.mxu0 %v5859_v57  ;;  %vm5518_vm6 = vmpackc.low %vm706_vm11, %vm705_vm14  ;;  %vm863_vm11 = vcmask 269320  }
 0x390   :  { %v403_v42 = vld [vmem:[#allocation2] sm:$0xff] }
 0x391   :  { %410 = vrot.lane.b32.xlu1 %v403_v42, %s5856_s5  ;;  %v405_v43 = vmul.f32 %v403_v42, %v6022_v6  ;;  %v404_v45 = vmul.f32 %v403_v42, %v6032_v9  ;;  %v4814_v42 = vld [vmem:[%s7022_s0 + $0x18] sm:$0xff] }
 0x395   :  { %563 = vrot.lane.b32.xlu1 %v405_v43, %s5857_s28  ;;  %v881_v43 = vld [vmem:[%s7022_s0] sm:$0xff] }
 0x403   :  { %v411_v46 = vpop.permute.xlu1 %410 }
 0x404   :  { %5147 = vmatpush3.msra.mxu1 %v411_v46  ;;  %v4819_v46 = vld [vmem:[%s7022_s0 + $0x20] sm:$0xff] }
 0x405   :  { %5149 = vmatmul.mubr.msk.f32.vlgmr.msra.gmra.mrb[0].mxu1 %vm413_vm15, %v4790_v44  ;;  %5151 = vmatprep.subr.mxu1 %v5852_v2 }
 0x406   :  { %5152 = vmatpush3.msra.mxu1 %v404_v45  ;;  %5153 = vmatprep.mubr.msk.f32.mxu1 %vm6993_vm4, %v5852_v2  ;;  %v882_v45 = vld [vmem:[%s7022_s0 + $0x8] sm:$0xff] }
 0x407   :  { %5156 = vmatprep.subr.mxu1 %v5852_v2  ;;  %v564_v48 = vpop.permute.xlu1 %563 }
 0x40d   :  { %5154 = vmatmul.mubr.msk.f32.vlgmr.msra.gmra.mrb[0].mxu1 %vm413_vm15, %v406_v47  ;;  %v4820_v47 = vld [vmem:[%s7022_s0 + $0x28] sm:$0xff]  ;;  %s7035_s0 = sld [smem:[#allocation15_spill]] }
 0x40e   :  { %5157 = vmatpush3.msra.mxu1 %v564_v48  ;;  %5158 = vmatprep.mubr.msk.f32.mxu1 %vm6993_vm4, %v5852_v2 }
 0x40f   :  { %5508 = vmatprep.subr.bf16.mxu1 %v5859_v57 }
 0x415   :  { %5159 = vmatmul.mubr.msk.f32.vlgmr.msra.gmra.mrb[0].mxu1 %vm413_vm15, %v4793_v49 }
 0x416   :  { %5196 = vmatprep.mubr.msk.f32.mxu1 %vm6993_vm4, %v5852_v2  ;;  %5510 = vmatpush3.bf16.msk.msra.mxu1 %vm6136_vm13, %v5860_v63  ;;  %vm688_vm4 = vcmp.eq.s32.totalorder %v679_v21, %v681_v56  ;;  %v6253_v21 = vld [vmem:[%s7025_s29 + $0x8] sm:$0xff] }
 0x417   :  { %5511 = vmatprep.subr.bf16.mxu1 %v5859_v57  ;;  %vm5506_vm3 = vmpackc.low %vm689_vm7, %vm688_vm4  ;;  %vm868_vm4 = vcmp.ne.s32.totalorder %v6008_v3, 15 }
 0x418   :  { %5507 = vmatpush3.bf16.msk.msra.mxu0 %vm5506_vm3, %v5860_v63  ;;  %vm871_vm7 = vmand %vm868_vm4, %vm106_vm0  ;;  %vm869_vm0 = vcmp.ne.s32.totalorder %v6008_v3, 16  ;;  %vm1142_vm3 = vcmask 261120  }
 0x41a   :  { %5513 = vmatpush3.bf16.msk.msra.mxu1 %vm6149_vm2, %v5860_v63 }
 0x41b   :  { %5514 = vmatprep.subr.bf16.mxu1 %v5859_v57 }
 0x41e   :  { %5516 = vmatpush3.bf16.msk.msra.mxu1 %vm5515_vm10, %v5860_v63  ;;  %vm7024_vm10 = vcmp.ne.s32.totalorder %v6008_v3, 0 }
 0x41f   :  { %5517 = vmatprep.subr.bf16.mxu1 %v5859_v57  ;;  %vm870_vm14 = vmand %vm7024_vm10, %vm869_vm0  ;;  %vm1737_vm10 = vcmp.ne.s32.totalorder %v6008_v3, 8 }
 0x420   :  { %v6206_v39 = vsel %vm870_vm14, 1.0, %v5852_v2  ;;  %vm7033_vm14 = vcmp.ne.s32.totalorder %v6008_v3, 0 }
 0x422   :  { %5519 = vmatpush3.bf16.msk.msra.mxu1 %vm5518_vm6, %v5860_v63  ;;  %vm1241_vm6 = vcmask 130048  }
 0x4e8   :  { %v6099_v50 = vpop.f32.mrb[0].mxu1 }
 0x4e9   :  { %v5160_v51 = vpop.f32.mrb[1].mxu1  ;;  %v640_v52 = vsel %vm360_vm12, %v6099_v50, 0.0  ;;  %v644_v53 = vmul.f32 %v6099_v50, %v6099_v50 }
 0x4ea   :  { %641 = vadd.xlane.f32.xlu1 %v640_v52 }
 0x4eb   :  { %v645_v54 = vsel %vm360_vm12, %v644_v53, 0.0 }
 0x4ec   :  { %646 = vadd.xlane.f32.xlu0 %v645_v54 }
 0x577   :  { %v642_v5 = vpop.xlane.xlu1 %641 }
 0x578   :  { %v643_v7 = vmul.f32 0.015625, %v642_v5 }
 0x579   :  { %v647_v8 = vpop.xlane.xlu0 %646 }
 0x57a   :  { %v649_v10 = vmul.f32 %v643_v7, %v643_v7  ;;  %v648_v11 = vmul.f32 0.015625, %v647_v8 }
 0x57c   :  { %v650_v12 = vsub.f32 %v648_v11, %v649_v10 }
 0x57e   :  { %v651_v13 = vmax.f32 %v650_v12, 0.0 }
 0x580   :  { %v653_v14 = vadd.f32 1e-05, %v651_v13 }
 0x582   :  { %5814 = vrsqrt.f32 %v653_v14 }
 0x58c   :  { %v5815_v15 = vpop.eup %5814 }
 0x58d   :  { %v655_v16 = vmul.f32 %v5815_v15, %v6060_v30 }
 0x58f   :  { %661 = vperm.xlu1 %5731, %v655_v16   ;;  %v657_v19 = vmul.f32 %v655_v16, %v643_v7 }
 0x591   :  { %v658_v20 = vsub.f32 %v6066_v33, %v657_v19  ;;  %v873_v33 = vsel %vm871_vm7, 1.0, %v5852_v2  ;;  %vm1728_vm7 = vcmask 138248  }
 0x593   :  { %667 = vperm.xlu0 %5730, %v658_v20   ;;  %v6248_v20 = vld [vmem:[%s7025_s29] sm:$0xff]  ;;  %s7032_s29 = sld [smem:[#allocation13_spill]] }
 0x60e   :  { %v662_v23 = vpop.permute.xlu1 %661 }
 0x60f   :  { %v664_v24 = vmul.f32 %v662_v23, %v6099_v50 }
 0x612   :  { %v668_v25 = vpop.permute.xlu0 %667 }
 0x613   :  { %v670_v26 = vadd.f32 %v668_v25, %v664_v24 }
 0x615   :  { %v6174_v27 = vmax.f32 %v670_v26, 0.0  ;;  %v6260_v26 = vld [vmem:[%s7026_s4] sm:$0xff] }
 0x617   :  { %5178 = vmatmul.mubr.msk.f32.vlgmr.msra.gmra.mrb[2].mxu0 %vm360_vm12, %v6174_v27  ;;  %5197 = vmatmul.mubr.msk.f32.vlgmr.msra.gmra.mrb[2].mxu1 %vm360_vm12, %v6174_v27 }
 0x618   :  { %5201 = vmatprep.mubr.msk.f32.mxu0 %vm413_vm15, %v4813_v34 }
 0x6ea   :  { %v784_v28 = vpop.f32.mrb[2].mxu0  ;;  %v854_v29 = vpop.f32.mrb[2].mxu1 }
 0x6eb   :  { %v858_v30 = vmax.f32 %v784_v28, %v854_v29  ;;  %v5179_v31 = vpop.f32.mrb[3].mxu0  ;;  %v5198_v32 = vpop.f32.mrb[3].mxu1  ;;  %v6265_v29 = vld [vmem:[%s7026_s4 + $0x8] sm:$0xff] }
 0x6ed   :  { %860 = vrot.lane.b32.xlu1 %v858_v30, %s5853_s30 }
 0x6f1   :  { %877 = vrot.lane.b32.xlu1 %v873_v33, %s5854_s9 }
 0x75f   :  { %v861_v35 = vpop.permute.xlu1 %860 }
 0x760   :  { %864 = vst.msk [vmem:[#allocation2] sm:$0xff] %vm863_vm11, %v861_v35 }
 0x761   :  { %865 = vst.msk [vmem:[#allocation2] sm:$0xff] %vm7023_vm9, %v5852_v2 }
 0x762   :  { %867 = vst.msk [vmem:[#allocation2] sm:$0xff] %vm866_vm5, %v5852_v2 }
 0x763   :  { %v6197_v36 = vpop.permute.xlu1 %877 }
 0x769   :  { %v874_v37 = vld [vmem:[#allocation2] sm:$0xff] }
 0x76a   :  { %887 = vrot.lane.b32.xlu1 %v874_v37, %s5856_s5  ;;  %v880_v38 = vmul.f32 %v6197_v36, %v874_v37  ;;  %v875_v40 = vmul.f32 %v874_v37, %v6206_v39 }
 0x76c   :  { %1056 = vrot.lane.b32.xlu0 %v880_v38, %s5857_s28 }
 0x7dc   :  { %v888_v41 = vpop.permute.xlu1 %887 }
 0x7dd   :  { %5199 = vmatprep.subr.mxu0 %v888_v41 }
 0x7de   :  { %5200 = vmatpush3.msra.mxu0 %v888_v41  ;;  %v1057_v44 = vpop.permute.xlu0 %1056 }
 0x7df   :  { %5202 = vmatmul.mubr.msk.f32.vlgmr.msra.gmra.mrb[4].mxu0 %vm413_vm15, %v4814_v42  ;;  %5204 = vmatprep.subr.mxu0 %v875_v40 }
 0x7e0   :  { %5205 = vmatpush3.msra.mxu0 %v875_v40  ;;  %5206 = vmatprep.mubr.msk.f32.mxu0 %vm413_vm15, %v881_v43 }
 0x7e1   :  { %5209 = vmatprep.subr.mxu0 %v1057_v44 }
 0x7e7   :  { %5207 = vmatmul.mubr.msk.f32.vlgmr.msra.gmra.mrb[4].mxu0 %vm413_vm15, %v882_v45 }
 0x7e8   :  { %5210 = vmatpush3.msra.mxu0 %v1057_v44  ;;  %5211 = vmatprep.mubr.msk.f32.mxu0 %vm413_vm15, %v4819_v46 }
 0x7e9   :  { %5533 = vmatprep.subr.msk.bf16.mxu0 %vm6126_vm8, %v5860_v63 }
 0x7ef   :  { %5212 = vmatmul.mubr.msk.f32.vlgmr.msra.gmra.mrb[4].mxu0 %vm413_vm15, %v4820_v47  ;;  %v4823_v47 = vld [vmem:[%s7029_s11 + $0x10] sm:$0xff] }
 0x7f0   :  { %5535 = vmatpush3.bf16.msk.msra.mxu0 %vm6126_vm8, %v5860_v63  ;;  %vm7027_vm8 = vmmov %vm7023_vm9  ;;  %5218 = vmatprep.mubr.msk.f32.mxu1 %vm1241_vm6, %v4823_v47  ;;  %vm1733_vm9 = vcmask 146568  }
 0x7f1   :  { %5537 = vmatprep.subr.msk.bf16.mxu0 %vm6144_vm1, %v5860_v63 }
 0x7f4   :  { %5539 = vmatpush3.bf16.msk.msra.mxu0 %vm6144_vm1, %v5860_v63  ;;  %vm7028_vm1 = vmmov %vm7027_vm8 }
 0x7f5   :  { %vm7030_vm0 = vmmov %vm7028_vm1 }
 0x8c2   :  { %v5213_v48 = vpop.f32.mrb[4].mxu0 }
 0x8c3   :  { %v1131_v49 = vpop.f32.mrb[5].mxu0  ;;  %v1146_v50 = vsel %vm1142_vm3, %v5213_v48, 0.0  ;;  %v1153_v53 = vmul.f32 %v5213_v48, %v5213_v48 }
 0x8c4   :  { %1147 = vadd.xlane.f32.xlu0 %v1146_v50  ;;  %v1143_v51 = vsel %vm1142_vm3, %v1131_v49, 0.0  ;;  %v1152_v52 = vmul.f32 %v1131_v49, %v1131_v49 }
 0x8c5   :  { %1144 = vadd.xlane.f32.xlu1 %v1143_v51  ;;  %v1157_v56 = vsel %vm1142_vm3, %v1153_v53, 0.0 }
 0x8c6   :  { %v1154_v54 = vsel %vm1142_vm3, %v1152_v52, 0.0 }
 0x8c8   :  { %1155 = vadd.xlane.f32.xlu0 %v1154_v54 }
 0x8c9   :  { %1158 = vadd.xlane.f32.xlu1 %v1157_v56 }
 0x951   :  { %v1148_v59 = vpop.xlane.xlu0 %1147 }
 0x952   :  { %v1145_v62 = vpop.xlane.xlu1 %1144  ;;  %v1151_v1 = vmul.f32 0.03125, %v1148_v59 }
 0x953   :  { %v1150_v5 = vmul.f32 0.03125, %v1145_v62 }
 0x954   :  { %v1163_v12 = vmul.f32 %v1151_v1, %v1151_v1 }
 0x955   :  { %v1162_v7 = vmul.f32 %v1150_v5, %v1150_v5  ;;  %v1156_v8 = vpop.xlane.xlu0 %1155 }
 0x956   :  { %v1160_v10 = vmul.f32 0.03125, %v1156_v8  ;;  %v1159_v11 = vpop.xlane.xlu1 %1158 }
 0x957   :  { %v1161_v13 = vmul.f32 0.03125, %v1159_v11 }
 0x958   :  { %v1164_v14 = vsub.f32 %v1160_v10, %v1162_v7 }
 0x959   :  { %v1165_v15 = vsub.f32 %v1161_v13, %v1163_v12  ;;  %v4824_v12 = vld [vmem:[%s7029_s11 + $0x18] sm:$0xff]  ;;  %v1228_v13 = vld [vmem:[%s7029_s11] sm:$0xff] }
 0x95a   :  { %v1166_v16 = vmax.f32 %v1164_v14, 0.0 }
 0x95b   :  { %v1167_v17 = vmax.f32 %v1165_v15, 0.0  ;;  %v1229_v15 = vld [vmem:[%s7029_s11 + $0x8] sm:$0xff] }
 0x95c   :  { %v1170_v18 = vadd.f32 1e-05, %v1166_v16  ;;  %v4829_v16 = vld [vmem:[%s7029_s11 + $0x20] sm:$0xff] }
 0x95d   :  { %v1171_v19 = vadd.f32 1e-05, %v1167_v17  ;;  %v4830_v17 = vld [vmem:[%s7029_s11 + $0x28] sm:$0xff] }
 0x95e   :  { %5816 = vrsqrt.f32 %v1170_v18 }
 0x95f   :  { %5818 = vrsqrt.f32 %v1171_v19 }
 0x968   :  { %v5817_v22 = vpop.eup %5816 }
 0x969   :  { %v5819_v23 = vpop.eup %5818  ;;  %v1174_v24 = vmul.f32 %v5817_v22, %v6248_v20 }
 0x96a   :  { %v1175_v25 = vmul.f32 %v5819_v23, %v6253_v21 }
 0x96b   :  { %1184 = vperm.xlu0 %5730, %v1174_v24   ;;  %v1178_v28 = vmul.f32 %v1174_v24, %v1150_v5 }
 0x96c   :  { %1189 = vperm.xlu1 %5731, %v1175_v25   ;;  %v1179_v30 = vmul.f32 %v1175_v25, %v1151_v1 }
 0x96d   :  { %v1180_v31 = vsub.f32 %v6260_v26, %v1178_v28 }
 0x96e   :  { %v1181_v32 = vsub.f32 %v6265_v29, %v1179_v30 }
 0x970   :  { %1196 = vperm.xlu1 %5731, %v1180_v31   ;;  %1201 = vperm.xlu0 %5730, %v1181_v32  }
 0x9ea   :  { %v1185_v33 = vpop.permute.xlu0 %1184 }
 0x9eb   :  { %v1190_v34 = vpop.permute.xlu1 %1189  ;;  %v1192_v35 = vmul.f32 %v1185_v33, %v1131_v49 }
 0x9ec   :  { %v1193_v37 = vmul.f32 %v5213_v48, %v1190_v34 }
 0x9ef   :  { %v1197_v38 = vpop.permute.xlu1 %1196  ;;  %v1202_v40 = vpop.permute.xlu0 %1201 }
 0x9f0   :  { %v1204_v41 = vadd.f32 %v1197_v38, %v1192_v35  ;;  %v1205_v42 = vadd.f32 %v1202_v40, %v1193_v37 }
 0x9f2   :  { %v1206_v43 = vmax.f32 %v1204_v41, 0.0  ;;  %v1207_v44 = vmax.f32 %v1205_v42, 0.0 }
 0x9f4   :  { %1210 = vrot.lane.b32.xlu1 %v1206_v43, %s5853_s30  ;;  %1212 = vrot.lane.b32.xlu0 %v1207_v44, %s5853_s30 }
 0xa66   :  { %v1211_v45 = vpop.permute.xlu1 %1210  ;;  %v1213_v46 = vpop.permute.xlu0 %1212 }
 0xa67   :  { %1216 = vst.msk [vmem:[#allocation2] sm:$0xff] %vm863_vm11, %v1211_v45  ;;  %1217 = vst.msk [vmem:[#allocation2 + $0x8] sm:$0xff] %vm863_vm11, %v1213_v46 }
 0xa68   :  { %1218 = vst.msk [vmem:[#allocation2] sm:$0xff] %vm7027_vm8, %v5852_v2  ;;  %vm1738_vm8 = vmand %vm7033_vm14, %vm1737_vm10 }
 0xa69   :  { %1219 = vst.msk [vmem:[#allocation2 + $0x8] sm:$0xff] %vm7028_vm1, %v5852_v2  ;;  %vm7036_vm1 = vmmov %vm7030_vm0 }
 0xa6a   :  { %1220 = vst.msk [vmem:[#allocation2] sm:$0xff] %vm866_vm5, %v5852_v2  ;;  %1221 = vst.msk [vmem:[#allocation2 + $0x8] sm:$0xff] %vm866_vm5, %v5852_v2 }
 0xa6b   :  { %vm7042_vm14 = vmmov %vm7030_vm0 }
 0xa71   :  { %v1222_v48 = vld [vmem:[#allocation2] sm:$0xff]  ;;  %v1223_v49 = vld [vmem:[#allocation2 + $0x8] sm:$0xff] }
 0xa72   :  { %v5732_v50 = vpack.i.bf16 %v1223_v49, %v1222_v48  ;;  %v1226_v51 = vmul.f32 %v1222_v48, %v6197_v36  ;;  %v1227_v52 = vmul.f32 %v1223_v49, %v6197_v36  ;;  %v1224_v54 = vmul.f32 %v1222_v48, %v6206_v39 }
 0xa73   :  { %v1225_v56 = vmul.f32 %v1223_v49, %v6206_v39 }
 0xa74   :  { %5733 = vrot.lane.b32.xlu1 %v5732_v50, %s5856_s5  ;;  %v5737_v53 = vpack.i.bf16 %v1227_v52, %v1226_v51 }
 0xa75   :  { %v5524_v8 = vpack.c.bf16 %v1225_v56, %v1224_v54 }
 0xa76   :  { %5738 = vrot.lane.b32.xlu0 %v5737_v53, %s5857_s28 }
 0xae6   :  { %v5734_v59 = vpop.permute.xlu1 %5733 }
 0xae7   :  { %v5736_v62 = vunpack.i.h.bf16 %v5734_v59  ;;  %v5735_v1 = vunpack.i.l.bf16 %v5734_v59 }
 0xae8   :  { %v5739_v5 = vpop.permute.xlu0 %5738 }
 0xae9   :  { %v5520_v7 = vpack.c.bf16 %v5736_v62, %v5735_v1  ;;  %v5741_v10 = vunpack.i.h.bf16 %v5739_v5  ;;  %v5740_v11 = vunpack.i.l.bf16 %v5739_v5 }
 0xaeb   :  { %5521 = vmatprep.subr.bf16.mxu1 %v5520_v7  ;;  %v5528_v14 = vpack.c.bf16 %v5741_v10, %v5740_v11 }
 0xaec   :  { %5523 = vmatpush3.bf16.msra.mxu1 %v5520_v7 }
 0xaed   :  { %5525 = vmatprep.subr.bf16.mxu1 %v5524_v8 }
 0xaef   :  { %5219 = vmatmul.mubr.msk.f32.vlgmr.msra.gmra.mrb[4].mxu1 %vm1241_vm6, %v4824_v12 }
 0xaf0   :  { %5527 = vmatpush3.bf16.msra.mxu1 %v5524_v8  ;;  %5225 = vmatprep.mubr.msk.f32.mxu1 %vm1241_vm6, %v1228_v13 }
 0xaf1   :  { %5529 = vmatprep.subr.bf16.mxu1 %v5528_v14 }
 0xaf7   :  { %5226 = vmatmul.mubr.msk.f32.vlgmr.msra.gmra.mrb[4].mxu1 %vm1241_vm6, %v1229_v15 }
 0xaf8   :  { %5531 = vmatpush3.bf16.msra.mxu1 %v5528_v14  ;;  %5232 = vmatprep.mubr.msk.f32.mxu1 %vm1241_vm6, %v4829_v16 }
 0xaf9   :  { %5541 = vmatprep.subr.msk.bf16.mxu1 %vm6136_vm13, %v5860_v63 }
 0xaff   :  { %5233 = vmatmul.mubr.msk.f32.vlgmr.msra.gmra.mrb[4].mxu1 %vm1241_vm6, %v4830_v17 }
 0xb00   :  { %5543 = vmatpush3.bf16.msk.msra.mxu1 %vm6136_vm13, %v5860_v63  ;;  %vm1736_vm13 = vcmp.ne.s32.totalorder %v6008_v3, 7 }
 0xb01   :  { %5545 = vmatprep.subr.msk.bf16.mxu1 %vm6149_vm2, %v5860_v63 }
 0xb04   :  { %5547 = vmatpush3.bf16.msk.msra.mxu1 %vm6149_vm2, %v5860_v63  ;;  %vm1739_vm2 = vmand %vm1736_vm13, %vm868_vm4 }
 0xb05   :  { %v1741_v15 = vsel %vm1739_vm2, 1.0, %v5852_v2  ;;  %vm7031_vm4 = vmmov %vm7030_vm0 }
 0xb06   :  { %vm7037_vm13 = vmmov %vm7030_vm0 }
 0xb07   :  { %vm7038_vm2 = vmmov %vm7030_vm0 }
 0xbd2   :  { %v5234_v18 = vpop.f32.mrb[4].mxu1 }
 0xbd3   :  { %v1487_v19 = vpop.f32.mrb[5].mxu1  ;;  %v1501_v22 = vsel %vm1142_vm3, %v5234_v18, 0.0  ;;  %v1507_v25 = vmul.f32 %v5234_v18, %v5234_v18 }
 0xbd4   :  { %1502 = vadd.xlane.f32.xlu0 %v1501_v22  ;;  %v1498_v23 = vsel %vm1142_vm3, %v1487_v19, 0.0  ;;  %v1506_v24 = vmul.f32 %v1487_v19, %v1487_v19 }
 0xbd5   :  { %1499 = vadd.xlane.f32.xlu1 %v1498_v23  ;;  %v1511_v28 = vsel %vm1142_vm3, %v1507_v25, 0.0 }
 0xbd6   :  { %v1508_v0 = vsel %vm1142_vm3, %v1506_v24, 0.0 }
 0xbd8   :  { %1509 = vadd.xlane.f32.xlu0 %v1508_v0 }
 0xbd9   :  { %1512 = vadd.xlane.f32.xlu1 %v1511_v28 }
 0xc61   :  { %v1503_v30 = vpop.xlane.xlu0 %1502 }
 0xc62   :  { %v1500_v31 = vpop.xlane.xlu1 %1499  ;;  %v1505_v4 = vmul.f32 0.03125, %v1503_v30  ;;  %v6374_v30 = vsel %vm1738_vm8, 1.0, %v5852_v2 }
 0xc63   :  { %v1504_v32 = vmul.f32 0.03125, %v1500_v31 }
 0xc64   :  { %v1517_v38 = vmul.f32 %v1505_v4, %v1505_v4 }
 0xc65   :  { %v1516_v33 = vmul.f32 %v1504_v32, %v1504_v32  ;;  %v1510_v34 = vpop.xlane.xlu0 %1509 }
 0xc66   :  { %v1514_v35 = vmul.f32 0.03125, %v1510_v34  ;;  %v1513_v37 = vpop.xlane.xlu1 %1512 }
 0xc67   :  { %v1515_v40 = vmul.f32 0.03125, %v1513_v37 }
 0xc68   :  { %v1518_v41 = vsub.f32 %v1514_v35, %v1516_v33 }
 0xc69   :  { %v1519_v42 = vsub.f32 %v1515_v40, %v1517_v38 }
 0xc6a   :  { %v1520_v43 = vmax.f32 %v1518_v41, 0.0 }
 0xc6b   :  { %v1521_v44 = vmax.f32 %v1519_v42, 0.0  ;;  %v4846_v42 = vld [vmem:[%s7032_s29 + $0x28] sm:$0xff] }
 0xc6c   :  { %v1524_v45 = vadd.f32 1e-05, %v1520_v43  ;;  %v4847_v43 = vld [vmem:[%s7032_s29 + $0x30] sm:$0xff] }
 0xc6d   :  { %v1525_v46 = vadd.f32 1e-05, %v1521_v44 }
 0xc6e   :  { %5820 = vrsqrt.f32 %v1524_v45  ;;  %v4848_v45 = vld [vmem:[%s7032_s29 + $0x38] sm:$0xff] }
 0xc6f   :  { %5822 = vrsqrt.f32 %v1525_v46  ;;  %v1752_v46 = vld [vmem:[%s7032_s29] sm:$0xff] }
 0xc78   :  { %v5821_v47 = vpop.eup %5820 }
 0xc79   :  { %v5823_v48 = vpop.eup %5822  ;;  %v1528_v49 = vmul.f32 %v5821_v47, %v6248_v20  ;;  %v1753_v47 = vld [vmem:[%s7032_s29 + $0x8] sm:$0xff] }
 0xc7a   :  { %v1529_v50 = vmul.f32 %v5823_v48, %v6253_v21  ;;  %v1754_v48 = vld [vmem:[%s7032_s29 + $0x10] sm:$0xff] }
 0xc7b   :  { %1538 = vperm.xlu0 %5730, %v1528_v49   ;;  %v1532_v51 = vmul.f32 %v1528_v49, %v1504_v32  ;;  %v1755_v49 = vld [vmem:[%s7032_s29 + $0x18] sm:$0xff] }
 0xc7c   :  { %1543 = vperm.xlu1 %5731, %v1529_v50   ;;  %v1533_v52 = vmul.f32 %v1529_v50, %v1505_v4  ;;  %v4857_v50 = vld [vmem:[%s7032_s29 + $0x40] sm:$0xff] }
 0xc7d   :  { %v1534_v53 = vsub.f32 %v6260_v26, %v1532_v51  ;;  %v4858_v51 = vld [vmem:[%s7032_s29 + $0x48] sm:$0xff] }
 0xc7e   :  { %v1535_v54 = vsub.f32 %v6265_v29, %v1533_v52  ;;  %v4859_v52 = vld [vmem:[%s7032_s29 + $0x50] sm:$0xff] }
 0xc80   :  { %1550 = vperm.xlu1 %5731, %v1534_v53   ;;  %1555 = vperm.xlu0 %5730, %v1535_v54   ;;  %v4860_v53 = vld [vmem:[%s7032_s29 + $0x58] sm:$0xff] }
 0xcfa   :  { %v1539_v56 = vpop.permute.xlu0 %1538 }
 0xcfb   :  { %v1544_v59 = vpop.permute.xlu1 %1543  ;;  %v1546_v62 = vmul.f32 %v1539_v56, %v1487_v19 }
 0xcfc   :  { %v1547_v1 = vmul.f32 %v5234_v18, %v1544_v59  ;;  %v4845_v18 = vld [vmem:[%s7032_s29 + $0x20] sm:$0xff] }
 0xcff   :  { %v1551_v5 = vpop.permute.xlu1 %1550  ;;  %v1556_v7 = vpop.permute.xlu0 %1555 }
 0xd00   :  { %v1558_v8 = vadd.f32 %v1551_v5, %v1546_v62  ;;  %v1559_v20 = vadd.f32 %v1556_v7, %v1547_v1 }
 0xd02   :  { %v6331_v10 = vmax.f32 %v1558_v8, 0.0  ;;  %v6333_v21 = vmax.f32 %v1559_v20, 0.0 }
 0xd04   :  { %5243 = vmatprep.mubr.msk.f32.mxu0 %vm1142_vm3, %v6331_v10  ;;  %5254 = vmatprep.mubr.msk.f32.mxu1 %vm1142_vm3, %v6331_v10 }
 0xd05   :  { %5244 = vmatmul.mubr.msk.f32.vlgmr.msra.gmra.mrb[6].mxu0 %vm1142_vm3, %v6333_v21  ;;  %5255 = vmatmul.mubr.msk.f32.vlgmr.msra.gmra.mrb[6].mxu1 %vm1142_vm3, %v6333_v21 }
 0xd06   :  { %5261 = vmatprep.mubr.msk.f32.mxu0 %vm1241_vm6, %v4845_v18 }
 0xdd8   :  { %v5245_v26 = vpop.f32.mrb[6].mxu0  ;;  %v5256_v29 = vpop.f32.mrb[6].mxu1 }
 0xdd9   :  { %v1719_v11 = vmax.f32 %v5245_v26, %v5256_v29  ;;  %v1634_v12 = vpop.f32.mrb[7].mxu0  ;;  %v1709_v13 = vpop.f32.mrb[7].mxu1 }
 0xdda   :  { %v1718_v14 = vmax.f32 %v1634_v12, %v1709_v13 }
 0xddb   :  { %1724 = vrot.lane.b32.xlu0 %v1719_v11, %s5853_s30 }
 0xddc   :  { %1722 = vrot.lane.b32.xlu1 %v1718_v14, %s5853_s30 }
 0xde0   :  { %1747 = vrot.lane.b32.xlu1 %v1741_v15, %s5854_s9 }
 0xe4d   :  { %v1725_v16 = vpop.permute.xlu0 %1724 }
 0xe4e   :  { %1730 = vst.msk [vmem:[#allocation2 + $0x8] sm:$0xff] %vm1728_vm7, %v1725_v16  ;;  %v1723_v17 = vpop.permute.xlu1 %1722 }
 0xe4f   :  { %1732 = vst.msk [vmem:[#allocation2 + $0x8] sm:$0xff] %vm7030_vm0, %v5852_v2 }
 0xe50   :  { %1729 = vst.msk [vmem:[#allocation2] sm:$0xff] %vm1728_vm7, %v1723_v17 }
 0xe51   :  { %1735 = vst.msk [vmem:[#allocation2 + $0x8] sm:$0xff] %vm1733_vm9, %v5852_v2 }
 0xe52   :  { %1731 = vst.msk [vmem:[#allocation2] sm:$0xff] %vm7031_vm4, %v5852_v2  ;;  %v6363_v19 = vpop.permute.xlu1 %1747 }
 0xe53   :  { %1734 = vst.msk [vmem:[#allocation2] sm:$0xff] %vm1733_vm9, %v5852_v2 }
 0xe58   :  { %v1743_v22 = vld [vmem:[#allocation2 + $0x8] sm:$0xff] }
 0xe59   :  { %v1751_v24 = vmul.f32 %v6363_v19, %v1743_v22  ;;  %v1745_v4 = vmul.f32 %v1743_v22, %v6374_v30 }
 0xe5a   :  { %v1742_v23 = vld [vmem:[#allocation2] sm:$0xff] }
 0xe5b   :  { %v5742_v25 = vpack.i.bf16 %v1743_v22, %v1742_v23  ;;  %v1750_v0 = vmul.f32 %v6363_v19, %v1742_v23  ;;  %v1744_v31 = vmul.f32 %v1742_v23, %v6374_v30 }
 0xe5d   :  { %5743 = vrot.lane.b32.xlu0 %v5742_v25, %s5856_s5  ;;  %v5747_v28 = vpack.i.bf16 %v1751_v24, %v1750_v0  ;;  %v5552_v38 = vpack.c.bf16 %v1745_v4, %v1744_v31 }
 0xe5f   :  { %5748 = vrot.lane.b32.xlu1 %v5747_v28, %s5857_s28 }
 0xecf   :  { %v5744_v32 = vpop.permute.xlu0 %5743 }
 0xed0   :  { %v5746_v33 = vunpack.i.h.bf16 %v5744_v32  ;;  %v5745_v34 = vunpack.i.l.bf16 %v5744_v32 }
 0xed1   :  { %v5749_v35 = vpop.permute.xlu1 %5748 }
 0xed2   :  { %v5548_v37 = vpack.c.bf16 %v5746_v33, %v5745_v34  ;;  %v5751_v40 = vunpack.i.h.bf16 %v5749_v35  ;;  %v5750_v41 = vunpack.i.l.bf16 %v5749_v35 }
 0xed4   :  { %5549 = vmatprep.subr.bf16.mxu0 %v5548_v37  ;;  %v5556_v44 = vpack.c.bf16 %v5751_v40, %v5750_v41 }
 0xed5   :  { %5551 = vmatpush3.bf16.msra.mxu0 %v5548_v37 }
 0xed6   :  { %5553 = vmatprep.subr.bf16.mxu0 %v5552_v38 }
 0xed8   :  { %5262 = vmatmul.mubr.msk.f32.vlgmr.msra.gmra.mrb[8].mxu0 %vm1241_vm6, %v4846_v42 }
 0xed9   :  { %5264 = vmatprep.mubr.msk.f32.mxu0 %vm1241_vm6, %v4847_v43  ;;  %5555 = vmatpush3.bf16.msra.mxu0 %v5552_v38 }
 0xeda   :  { %5557 = vmatprep.subr.bf16.mxu0 %v5556_v44 }
 0xedc   :  { %5265 = vmatmul.mubr.msk.f32.gmra.mrb[10].mxu0 %vm1241_vm6, %v4848_v45 }
 0xedd   :  { %5271 = vmatprep.mubr.msk.f32.mxu0 %vm1241_vm6, %v1752_v46 }
 0xee0   :  { %5272 = vmatmul.mubr.msk.f32.vlgmr.msra.gmra.mrb[8].mxu0 %vm1241_vm6, %v1753_v47 }
 0xee1   :  { %5559 = vmatpush3.bf16.msra.mxu0 %v5556_v44  ;;  %5274 = vmatprep.mubr.msk.f32.mxu0 %vm1241_vm6, %v1754_v48 }
 0xee4   :  { %5275 = vmatmul.mubr.msk.f32.gmra.mrb[10].mxu0 %vm1241_vm6, %v1755_v49 }
 0xee5   :  { %5281 = vmatprep.mubr.msk.f32.mxu0 %vm1241_vm6, %v4857_v50 }
 0xee8   :  { %5282 = vmatmul.mubr.msk.f32.vlgmr.msra.gmra.mrb[8].mxu0 %vm1241_vm6, %v4858_v51 }
 0xee9   :  { %5284 = vmatprep.mubr.msk.f32.mxu0 %vm1241_vm6, %v4859_v52 }
 0xeec   :  { %5285 = vmatmul.mubr.msk.f32.gmra.mrb[10].mxu0 %vm1241_vm6, %v4860_v53 }
 0xfbb   :  { %v6422_v54 = vpop.f32.mrb[8].mxu0 }
 0xfbc   :  { %v6424_v56 = vpop.f32.mrb[9].mxu0  ;;  %v2080_v59 = vsel %vm1241_vm6, %v6422_v54, 0.0  ;;  %v2095_v1 = vmul.f32 %v6422_v54, %v6422_v54 }
 0xfbd   :  { %2081 = vadd.xlane.f32.xlu1 %v2080_v59  ;;  %v2077_v62 = vsel %vm1241_vm6, %v6424_v56, 0.0  ;;  %v2094_v26 = vmul.f32 %v6424_v56, %v6424_v56  ;;  %v6453_v59 = vld [vmem:[%s7034_s7 + $0x8] sm:$0xff] }
 0xfbe   :  { %2078 = vadd.xlane.f32.xlu0 %v2077_v62  ;;  %v2101_v8 = vsel %vm1241_vm6, %v2095_v1, 0.0 }
 0xfbf   :  { %v6432_v5 = vpop.f32.mrb[10].mxu0  ;;  %v2098_v11 = vsel %vm1241_vm6, %v2094_v26, 0.0  ;;  %v6464_v26 = vld [vmem:[%s7034_s7 + $0x10] sm:$0xff] }
 0xfc0   :  { %v6434_v7 = vpop.f32.mrb[11].mxu0  ;;  %v2086_v13 = vsel %vm1241_vm6, %v6432_v5, 0.0  ;;  %v2097_v14 = vmul.f32 %v6432_v5, %v6432_v5 }
 0xfc1   :  { %v2083_v20 = vsel %vm1241_vm6, %v6434_v7, 0.0  ;;  %v2096_v29 = vmul.f32 %v6434_v7, %v6434_v7 }
 0xfc2   :  { %2102 = vadd.xlane.f32.xlu0 %v2101_v8  ;;  %2084 = vadd.xlane.f32.xlu1 %v2083_v20  ;;  %v2107_v15 = vsel %vm1241_vm6, %v2097_v14, 0.0  ;;  %v6459_v20 = vld [vmem:[%s7034_s7] sm:$0xff] }
 0xfc3   :  { %v2104_v12 = vsel %vm1241_vm6, %v2096_v29, 0.0 }
 0xfc6   :  { %2099 = vadd.xlane.f32.xlu0 %v2098_v11  ;;  %2105 = vadd.xlane.f32.xlu1 %v2104_v12 }
 0xfca   :  { %2087 = vadd.xlane.f32.xlu0 %v2086_v13 }
 0xfce   :  { %2108 = vadd.xlane.f32.xlu0 %v2107_v15  ;;  %v6471_v15 = vld [vmem:[%s7035_s0 + $0x8] sm:$0xff] }
0x104a   :  { %v2082_v16 = vpop.xlane.xlu1 %2081 }
0x104b   :  { %v2079_v17 = vpop.xlane.xlu0 %2078  ;;  %v2091_v18 = vmul.f32 0.0625, %v2082_v16  ;;  %v6476_v16 = vld [vmem:[%s7035_s0 + $0x10] sm:$0xff] }
0x104c   :  { %v2090_v22 = vmul.f32 0.0625, %v2079_v17 }
0x104d   :  { %v2115_v25 = vmul.f32 %v2091_v18, %v2091_v18 }
0x104e   :  { %v2114_v4 = vmul.f32 %v2090_v22, %v2090_v22 }
0x104f   :  { %v2103_v23 = vpop.xlane.xlu0 %2102  ;;  %v2085_v24 = vpop.xlane.xlu1 %2084 }
0x1050   :  { %v2111_v0 = vmul.f32 0.0625, %v2103_v23  ;;  %v2092_v28 = vmul.f32 0.0625, %v2085_v24 }
0x1052   :  { %v2119_v31 = vsub.f32 %v2111_v0, %v2115_v25  ;;  %v2116_v35 = vmul.f32 %v2092_v28, %v2092_v28 }
0x1053   :  { %v2100_v32 = vpop.xlane.xlu0 %2099  ;;  %v2106_v33 = vpop.xlane.xlu1 %2105 }
0x1054   :  { %v2123_v34 = vmax.f32 %v2119_v31, 0.0  ;;  %v2110_v37 = vmul.f32 0.0625, %v2100_v32  ;;  %v2112_v38 = vmul.f32 0.0625, %v2106_v33  ;;  %v6495_v33 = vld [vmem:[%s7035_s0 + $0x18] sm:$0xff] }
0x1056   :  { %v2131_v40 = vadd.f32 1e-05, %v2123_v34  ;;  %v2118_v41 = vsub.f32 %v2110_v37, %v2114_v4  ;;  %v2120_v42 = vsub.f32 %v2112_v38, %v2116_v35  ;;  %v6489_v4 = vld [vmem:[%s7035_s0] sm:$0xff] }
0x1057   :  { %v2088_v43 = vpop.xlane.xlu0 %2087 }
0x1058   :  { %5824 = vrsqrt.f32 %v2131_v40  ;;  %v2122_v44 = vmax.f32 %v2118_v41, 0.0  ;;  %v2124_v45 = vmax.f32 %v2120_v42, 0.0  ;;  %v2093_v46 = vmul.f32 0.0625, %v2088_v43 }
0x105a   :  { %v2130_v47 = vadd.f32 1e-05, %v2122_v44  ;;  %v2132_v48 = vadd.f32 1e-05, %v2124_v45  ;;  %v2117_v50 = vmul.f32 %v2093_v46, %v2093_v46 }
0x105b   :  { %v2109_v49 = vpop.xlane.xlu0 %2108 }
0x105c   :  { %5826 = vrsqrt.f32 %v2130_v47  ;;  %v2113_v51 = vmul.f32 0.0625, %v2109_v49 }
0x105d   :  { %5828 = vrsqrt.f32 %v2132_v48 }
0x105e   :  { %v2121_v52 = vsub.f32 %v2113_v51, %v2117_v50 }
0x1060   :  { %v2125_v53 = vmax.f32 %v2121_v52, 0.0 }
0x1062   :  { %v5825_v62 = vpop.eup %5824  ;;  %v2133_v1 = vadd.f32 1e-05, %v2125_v53 }
0x1063   :  { %v2139_v8 = vmul.f32 %v5825_v62, %v6453_v59 }
0x1064   :  { %5830 = vrsqrt.f32 %v2133_v1 }
0x1065   :  { %2161 = vperm.xlu0 %5730, %v2139_v8   ;;  %v2147_v13 = vmul.f32 %v2139_v8, %v2091_v18  ;;  %v6483_v18 = vld [vmem:[%s7034_s7 + $0x18] sm:$0xff] }
0x1066   :  { %v5827_v29 = vpop.eup %5826 }
0x1067   :  { %v5829_v11 = vpop.eup %5828  ;;  %v2138_v12 = vmul.f32 %v5827_v29, %v6459_v20  ;;  %v2151_v23 = vsub.f32 %v6471_v15, %v2147_v13  ;;  %v4865_v13 = vld [vmem:[%s6966_s10 + $0x20] sm:$0xff] }
0x1068   :  { %v2140_v14 = vmul.f32 %v5829_v11, %v6464_v26  ;;  %5295 = vmatprep.mubr.msk.f32.mxu1 %vm1142_vm3, %v4865_v13  ;;  %v4880_v13 = vld [vmem:[%s6966_s10 + $0x58] sm:$0xff] }
0x1069   :  { %2156 = vperm.xlu1 %5731, %v2138_v12   ;;  %v2146_v31 = vmul.f32 %v2138_v12, %v2090_v22 }
0x106a   :  { %2166 = vperm.xlu0 %5730, %v2140_v14   ;;  %v2148_v17 = vmul.f32 %v2140_v14, %v2092_v28 }
0x106b   :  { %v2150_v28 = vsub.f32 %v6489_v4, %v2146_v31 }
0x106c   :  { %v2152_v24 = vsub.f32 %v6476_v16, %v2148_v17 }
0x106d   :  { %2185 = vperm.xlu1 %5731, %v2151_v23  }
0x106e   :  { %v5831_v25 = vpop.eup %5830  ;;  %2190 = vperm.xlu0 %5730, %v2152_v24  }
0x106f   :  { %v2141_v0 = vmul.f32 %v5831_v25, %v6483_v18 }
0x1071   :  { %2171 = vperm.xlu1 %5731, %v2141_v0   ;;  %v2149_v32 = vmul.f32 %v2141_v0, %v2093_v46 }
0x1073   :  { %v2153_v34 = vsub.f32 %v6495_v33, %v2149_v32 }
0x1075   :  { %2180 = vperm.xlu1 %5731, %v2150_v28  }
0x1079   :  { %2195 = vperm.xlu1 %5731, %v2153_v34  }
0x10e4   :  { %v2162_v35 = vpop.permute.xlu0 %2161 }
0x10e5   :  { %v2175_v37 = vmul.f32 %v6422_v54, %v2162_v35 }
0x10e8   :  { %v2157_v22 = vpop.permute.xlu1 %2156 }
0x10e9   :  { %v2167_v41 = vpop.permute.xlu0 %2166  ;;  %v2174_v44 = vmul.f32 %v2157_v22, %v6424_v56 }
0x10ea   :  { %v2176_v47 = vmul.f32 %v2167_v41, %v6434_v7 }
0x10ec   :  { %v2186_v38 = vpop.permute.xlu1 %2185 }
0x10ed   :  { %v2199_v40 = vadd.f32 %v2186_v38, %v2175_v37  ;;  %v2191_v45 = vpop.permute.xlu0 %2190 }
0x10ee   :  { %v2200_v49 = vadd.f32 %v2191_v45, %v2176_v47  ;;  %v4866_v47 = vld [vmem:[%s6966_s10 + $0x28] sm:$0xff] }
0x10ef   :  { %v2203_v42 = vmax.f32 %v2199_v40, 0.0 }
0x10f0   :  { %v2172_v43 = vpop.permute.xlu1 %2171  ;;  %v2204_v53 = vmax.f32 %v2200_v49, 0.0 }
0x10f1   :  { %2212 = vrot.lane.b32.xlu1 %v2203_v42, %s5853_s30  ;;  %v2177_v50 = vmul.f32 %v6432_v5, %v2172_v43 }
0x10f4   :  { %v2181_v46 = vpop.permute.xlu1 %2180 }
0x10f5   :  { %v2198_v48 = vadd.f32 %v2181_v46, %v2174_v44 }
0x10f7   :  { %v2202_v51 = vmax.f32 %v2198_v48, 0.0  ;;  %v4867_v48 = vld [vmem:[%s6966_s10 + $0x30] sm:$0xff] }
0x10f8   :  { %v2196_v52 = vpop.permute.xlu1 %2195 }
0x10f9   :  { %v2201_v54 = vadd.f32 %v2196_v52, %v2177_v50  ;;  %2210 = vrot.lane.b32.xlu0 %v2202_v51, %s5853_s30 }
0x10fb   :  { %v2205_v62 = vmax.f32 %v2201_v54, 0.0  ;;  %v2246_v54 = vld [vmem:[%s6966_s10] sm:$0xff] }
0x10fd   :  { %2214 = vrot.lane.b32.xlu0 %v2204_v53, %s5853_s30  ;;  %2216 = vrot.lane.b32.xlu1 %v2205_v62, %s5853_s30 }
0x1163   :  { %v2213_v56 = vpop.permute.xlu1 %2212 }
0x1164   :  { %2223 = vst.msk [vmem:[#allocation2 + $0x8] sm:$0xff] %vm1728_vm7, %v2213_v56 }
0x1165   :  { %2227 = vst.msk [vmem:[#allocation2 + $0x8] sm:$0xff] %vm7036_vm1, %v5852_v2 }
0x1166   :  { %2231 = vst.msk [vmem:[#allocation2 + $0x8] sm:$0xff] %vm1733_vm9, %v5852_v2 }
0x116b   :  { %v2211_v5 = vpop.permute.xlu0 %2210 }
0x116c   :  { %2222 = vst.msk [vmem:[#allocation2] sm:$0xff] %vm1728_vm7, %v2211_v5  ;;  %v2247_v5 = vld [vmem:[%s6966_s10 + $0x8] sm:$0xff] }
0x116d   :  { %2226 = vst.msk [vmem:[#allocation2] sm:$0xff] %vm7037_vm13, %v5852_v2  ;;  %v2235_v29 = vld [vmem:[#allocation2 + $0x8] sm:$0xff] }
0x116e   :  { %2230 = vst.msk [vmem:[#allocation2] sm:$0xff] %vm1733_vm9, %v5852_v2  ;;  %v2243_v14 = vmul.f32 %v2235_v29, %v6363_v19  ;;  %v2239_v38 = vmul.f32 %v2235_v29, %v6374_v30 }
0x116f   :  { %v2215_v7 = vpop.permute.xlu0 %2214  ;;  %v2217_v1 = vpop.permute.xlu1 %2216 }
0x1170   :  { %2224 = vst.msk [vmem:[#allocation2 + $0x10] sm:$0xff] %vm1728_vm7, %v2215_v7  ;;  %2225 = vst.msk [vmem:[#allocation2 + $0x18] sm:$0xff] %vm1728_vm7, %v2217_v1  ;;  %v2248_v7 = vld [vmem:[%s6966_s10 + $0x10] sm:$0xff] }
0x1171   :  { %2228 = vst.msk [vmem:[#allocation2 + $0x10] sm:$0xff] %vm7038_vm2, %v5852_v2  ;;  %vm7039_vm7 = vmmov %vm7030_vm0 }
0x1172   :  { %2229 = vst.msk [vmem:[#allocation2 + $0x18] sm:$0xff] %vm7030_vm0, %v5852_v2  ;;  %vm7045_vm2 = vmmov %vm7030_vm0 }
0x1173   :  { %2232 = vst.msk [vmem:[#allocation2 + $0x10] sm:$0xff] %vm1733_vm9, %v5852_v2  ;;  %2233 = vst.msk [vmem:[#allocation2 + $0x18] sm:$0xff] %vm1733_vm9, %v5852_v2 }
0x1175   :  { %v2234_v8 = vld [vmem:[#allocation2] sm:$0xff] }
0x1176   :  { %v5752_v11 = vpack.i.bf16 %v2235_v29, %v2234_v8  ;;  %v2242_v12 = vmul.f32 %v2234_v8, %v6363_v19  ;;  %v2238_v37 = vmul.f32 %v2234_v8, %v6374_v30  ;;  %v2249_v8 = vld [vmem:[%s6966_s10 + $0x18] sm:$0xff]  ;;  %v4877_v29 = vld [vmem:[%s6966_s10 + $0x40] sm:$0xff] }
0x1178   :  { %5753 = vrot.lane.b32.xlu0 %v5752_v11, %s5856_s5  ;;  %v5762_v24 = vpack.i.bf16 %v2243_v14, %v2242_v12  ;;  %v5568_v43 = vpack.c.bf16 %v2239_v38, %v2238_v37  ;;  %v4878_v11 = vld [vmem:[%s6966_s10 + $0x48] sm:$0xff]  ;;  %v4879_v12 = vld [vmem:[%s6966_s10 + $0x50] sm:$0xff] }
0x117a   :  { %v2236_v17 = vld [vmem:[#allocation2 + $0x10] sm:$0xff]  ;;  %v2237_v23 = vld [vmem:[#allocation2 + $0x18] sm:$0xff] }
0x117b   :  { %v5757_v25 = vpack.i.bf16 %v2237_v23, %v2236_v17  ;;  %v2244_v0 = vmul.f32 %v2236_v17, %v6363_v19  ;;  %v2245_v31 = vmul.f32 %v2237_v23, %v6363_v19  ;;  %v2240_v44 = vmul.f32 %v2236_v17, %v6374_v30 }
0x117c   :  { %5763 = vrot.lane.b32.xlu0 %v5762_v24, %s5857_s28  ;;  %v2241_v45 = vmul.f32 %v2237_v23, %v6374_v30  ;;  %v4868_v30 = vld [vmem:[%s6966_s10 + $0x38] sm:$0xff] }
0x117d   :  { %5758 = vrot.lane.b32.xlu1 %v5757_v25, %s5856_s5  ;;  %v5767_v28 = vpack.i.bf16 %v2245_v31, %v2244_v0 }
0x117e   :  { %v5572_v49 = vpack.c.bf16 %v2241_v45, %v2240_v44 }
0x1181   :  { %5768 = vrot.lane.b32.xlu1 %v5767_v28, %s5857_s28 }
0x11ea   :  { %v5754_v32 = vpop.permute.xlu0 %5753 }
0x11eb   :  { %v5756_v34 = vunpack.i.h.bf16 %v5754_v32  ;;  %v5755_v35 = vunpack.i.l.bf16 %v5754_v32 }
0x11ed   :  { %v5560_v22 = vpack.c.bf16 %v5756_v34, %v5755_v35 }
0x11ee   :  { %v5764_v46 = vpop.permute.xlu0 %5763 }
0x11ef   :  { %v5759_v40 = vpop.permute.xlu1 %5758  ;;  %5561 = vmatprep.subr.bf16.mxu1 %v5560_v22  ;;  %v5766_v50 = vunpack.i.h.bf16 %v5764_v46  ;;  %v5765_v51 = vunpack.i.l.bf16 %v5764_v46 }
0x11f0   :  { %v5761_v41 = vunpack.i.h.bf16 %v5759_v40  ;;  %v5760_v42 = vunpack.i.l.bf16 %v5759_v40  ;;  %5563 = vmatpush3.bf16.msra.mxu1 %v5560_v22 }
0x11f1   :  { %v5576_v53 = vpack.c.bf16 %v5766_v50, %v5765_v51 }
0x11f2   :  { %v5564_v19 = vpack.c.bf16 %v5761_v41, %v5760_v42 }
0x11f3   :  { %v5769_v52 = vpop.permute.xlu1 %5768 }
0x11f4   :  { %5565 = vmatprep.subr.bf16.mxu1 %v5564_v19  ;;  %v5771_v62 = vunpack.i.h.bf16 %v5769_v52  ;;  %v5770_v56 = vunpack.i.l.bf16 %v5769_v52 }
0x11f5   :  { %5567 = vmatpush3.bf16.msra.mxu1 %v5564_v19 }
0x11f6   :  { %5569 = vmatprep.subr.bf16.mxu1 %v5568_v43  ;;  %v5580_v1 = vpack.c.bf16 %v5771_v62, %v5770_v56 }
0x11f8   :  { %5296 = vmatmul.mubr.msk.f32.vlgmr.msra.gmra.mrb[8].mxu1 %vm1142_vm3, %v4866_v47 }
0x11f9   :  { %5571 = vmatpush3.bf16.msra.mxu1 %v5568_v43  ;;  %5298 = vmatprep.mubr.msk.f32.mxu1 %vm1142_vm3, %v4867_v48 }
0x11fa   :  { %5573 = vmatprep.subr.bf16.mxu1 %v5572_v49 }
0x11fc   :  { %5299 = vmatmul.mubr.msk.f32.gmra.mrb[10].mxu1 %vm1142_vm3, %v4868_v30 }
0x11fd   :  { %5575 = vmatpush3.bf16.msra.mxu1 %v5572_v49  ;;  %5309 = vmatprep.mubr.msk.f32.mxu1 %vm1142_vm3, %v2246_v54 }
0x11fe   :  { %5577 = vmatprep.subr.bf16.mxu1 %v5576_v53 }
0x1200   :  { %5310 = vmatmul.mubr.msk.f32.vlgmr.msra.gmra.mrb[8].mxu1 %vm1142_vm3, %v2247_v5 }
0x1201   :  { %5579 = vmatpush3.bf16.msra.mxu1 %v5576_v53  ;;  %5312 = vmatprep.mubr.msk.f32.mxu1 %vm1142_vm3, %v2248_v7 }
0x1202   :  { %5581 = vmatprep.subr.bf16.mxu1 %v5580_v1 }
0x1204   :  { %5313 = vmatmul.mubr.msk.f32.gmra.mrb[10].mxu1 %vm1142_vm3, %v2249_v8 }
0x1205   :  { %5583 = vmatpush3.bf16.msra.mxu1 %v5580_v1  ;;  %5323 = vmatprep.mubr.msk.f32.mxu1 %vm1142_vm3, %v4877_v29 }
0x1208   :  { %5324 = vmatmul.mubr.msk.f32.vlgmr.msra.gmra.mrb[8].mxu1 %vm1142_vm3, %v4878_v11 }
0x1209   :  { %5326 = vmatprep.mubr.msk.f32.mxu1 %vm1142_vm3, %v4879_v12 }
0x120c   :  { %5327 = vmatmul.mubr.msk.f32.gmra.mrb[10].mxu1 %vm1142_vm3, %v4880_v13 }
0x12db   :  { %v6586_v14 = vpop.f32.mrb[8].mxu1 }
0x12dc   :  { %v6588_v17 = vpop.f32.mrb[9].mxu1  ;;  %v2590_v23 = vsel %vm1241_vm6, %v6586_v14, 0.0  ;;  %v2604_v25 = vmul.f32 %v6586_v14, %v6586_v14 }
0x12dd   :  { %2591 = vadd.xlane.f32.xlu1 %v2590_v23  ;;  %v2587_v24 = vsel %vm1241_vm6, %v6588_v17, 0.0  ;;  %v2603_v34 = vmul.f32 %v6588_v17, %v6588_v17 }
0x12de   :  { %2588 = vadd.xlane.f32.xlu0 %v2587_v24  ;;  %v2610_v28 = vsel %vm1241_vm6, %v2604_v25, 0.0 }
0x12df   :  { %v6596_v0 = vpop.f32.mrb[10].mxu1  ;;  %v2607_v22 = vsel %vm1241_vm6, %v2603_v34, 0.0 }
0x12e0   :  { %v6598_v31 = vpop.f32.mrb[11].mxu1  ;;  %v2596_v38 = vsel %vm1241_vm6, %v6596_v0, 0.0  ;;  %v2606_v40 = vmul.f32 %v6596_v0, %v6596_v0 }
0x12e1   :  { %v2593_v32 = vsel %vm1241_vm6, %v6598_v31, 0.0  ;;  %v2605_v35 = vmul.f32 %v6598_v31, %v6598_v31 }
0x12e2   :  { %2611 = vadd.xlane.f32.xlu0 %v2610_v28  ;;  %2594 = vadd.xlane.f32.xlu1 %v2593_v32  ;;  %v2616_v41 = vsel %vm1241_vm6, %v2606_v40, 0.0 }
0x12e3   :  { %v2613_v37 = vsel %vm1241_vm6, %v2605_v35, 0.0 }
0x12e6   :  { %2608 = vadd.xlane.f32.xlu0 %v2607_v22  ;;  %2614 = vadd.xlane.f32.xlu1 %v2613_v37 }
0x12ea   :  { %2597 = vadd.xlane.f32.xlu0 %v2596_v38 }
0x12ee   :  { %2617 = vadd.xlane.f32.xlu0 %v2616_v41 }
0x136a   :  { %v2592_v42 = vpop.xlane.xlu1 %2591 }
0x136b   :  { %v2589_v19 = vpop.xlane.xlu0 %2588  ;;  %v2600_v43 = vmul.f32 0.0625, %v2592_v42 }
0x136c   :  { %v2599_v44 = vmul.f32 0.0625, %v2589_v19 }
0x136d   :  { %v2624_v47 = vmul.f32 %v2600_v43, %v2600_v43 }
0x136e   :  { %v2623_v51 = vmul.f32 %v2599_v44, %v2599_v44 }
0x136f   :  { %v2612_v45 = vpop.xlane.xlu0 %2611  ;;  %v2595_v46 = vpop.xlane.xlu1 %2594 }
0x1370   :  { %v2620_v48 = vmul.f32 0.0625, %v2612_v45  ;;  %v2601_v49 = vmul.f32 0.0625, %v2595_v46 }
0x1372   :  { %v2628_v50 = vsub.f32 %v2620_v48, %v2624_v47  ;;  %v2625_v53 = vmul.f32 %v2601_v49, %v2601_v49 }
0x1373   :  { %v2609_v52 = vpop.xlane.xlu0 %2608  ;;  %v2615_v30 = vpop.xlane.xlu1 %2614 }
0x1374   :  { %v2632_v54 = vmax.f32 %v2628_v50, 0.0  ;;  %v2619_v62 = vmul.f32 0.0625, %v2609_v52  ;;  %v2621_v56 = vmul.f32 0.0625, %v2615_v30  ;;  %v3056_v50 = vld [vmem:[%s6967_s14] sm:$0xff] }
0x1376   :  { %v2640_v5 = vadd.f32 1e-05, %v2632_v54  ;;  %v2627_v7 = vsub.f32 %v2619_v62, %v2623_v51  ;;  %v2629_v1 = vsub.f32 %v2621_v56, %v2625_v53  ;;  %v2882_v54 = vmul.u32 2, %v6107_v55 }
0x1377   :  { %v2598_v8 = vpop.xlane.xlu0 %2597  ;;  %v2883_v53 = vmul.u32 2, %v6113_v58 }
0x1378   :  { %5832 = vrsqrt.f32 %v2640_v5  ;;  %v2631_v29 = vmax.f32 %v2627_v7, 0.0  ;;  %v2633_v11 = vmax.f32 %v2629_v1, 0.0  ;;  %v2602_v12 = vmul.f32 0.0625, %v2598_v8 }
0x1379   :  { %vm2884_vm8 = vcmp.eq.s32.totalorder %v6008_v3, %v2882_v54  ;;  %vm2885_vm1 = vcmp.eq.s32.totalorder %v6008_v3, %v2883_v53 }
0x137a   :  { %v2639_v13 = vadd.f32 1e-05, %v2631_v29  ;;  %v2641_v23 = vadd.f32 1e-05, %v2633_v11  ;;  %v2626_v25 = vmul.f32 %v2602_v12, %v2602_v12  ;;  %v2888_v29 = vadd.s32 1, %v2882_v54  ;;  %vm6678_vm13 = vmpackc.low %vm2885_vm1, %vm2884_vm8 }
0x137b   :  { %v2618_v24 = vpop.xlane.xlu0 %2617  ;;  %v2889_v11 = vadd.s32 1, %v2883_v53  ;;  %vm7049_vm8 = vcmask 531464   ;;  %vm7050_vm1 = vmmov %vm7030_vm0 }
0x137c   :  { %5834 = vrsqrt.f32 %v2639_v13  ;;  %v2622_v28 = vmul.f32 0.0625, %v2618_v24  ;;  %vm2890_vm9 = vcmp.eq.s32.totalorder %v6008_v3, %v2888_v29 }
0x137d   :  { %5836 = vrsqrt.f32 %v2641_v23  ;;  %vm2891_vm4 = vcmp.eq.s32.totalorder %v6008_v3, %v2889_v11 }
0x137e   :  { %v2630_v32 = vsub.f32 %v2622_v28, %v2626_v25  ;;  %vm6653_vm10 = vmpackc.low %vm2891_vm4, %vm2890_vm9 }
0x137f   :  { %vm7047_vm9 = vmmov %vm7030_vm0 }
0x1380   :  { %v2634_v34 = vmax.f32 %v2630_v32, 0.0  ;;  %vm7048_vm4 = vmmov %vm7030_vm0 }
0x1382   :  { %v5833_v35 = vpop.eup %5832  ;;  %v2642_v22 = vadd.f32 1e-05, %v2634_v34 }
0x1383   :  { %v2648_v37 = vmul.f32 %v5833_v35, %v6453_v59  ;;  %v4888_v35 = vld [vmem:[%s6968_s13 + $0x18] sm:$0xff] }
0x1384   :  { %5838 = vrsqrt.f32 %v2642_v22  ;;  %v2716_v22 = vld [vmem:[%s6968_s13 + $0x8] sm:$0xff] }
0x1385   :  { %2670 = vperm.xlu0 %5730, %v2648_v37   ;;  %v2656_v42 = vmul.f32 %v2648_v37, %v2600_v43 }
0x1386   :  { %v5835_v38 = vpop.eup %5834 }
0x1387   :  { %v5837_v40 = vpop.eup %5836  ;;  %v2647_v41 = vmul.f32 %v5835_v38, %v6459_v20  ;;  %v2660_v46 = vsub.f32 %v6471_v15, %v2656_v42 }
0x1388   :  { %v2649_v19 = vmul.f32 %v5837_v40, %v6464_v26 }
0x1389   :  { %2665 = vperm.xlu1 %5731, %v2647_v41   ;;  %v2655_v20 = vmul.f32 %v2647_v41, %v2599_v44 }
0x138a   :  { %2675 = vperm.xlu0 %5730, %v2649_v19   ;;  %v2657_v45 = vmul.f32 %v2649_v19, %v2601_v49 }
0x138b   :  { %v2659_v26 = vsub.f32 %v6489_v4, %v2655_v20 }
0x138c   :  { %v2661_v47 = vsub.f32 %v6476_v16, %v2657_v45  ;;  %v3057_v16 = vld [vmem:[%s6967_s14 + $0x8] sm:$0xff] }
0x138d   :  { %2694 = vperm.xlu1 %5731, %v2660_v46  }
0x138e   :  { %v5839_v48 = vpop.eup %5838  ;;  %2699 = vperm.xlu0 %5730, %v2661_v47  }
0x138f   :  { %v2650_v59 = vmul.f32 %v5839_v48, %v6483_v18  ;;  %v4887_v18 = vld [vmem:[%s6968_s13 + $0x10] sm:$0xff] }
0x1390   :  { %5348 = vmatprep.mubr.msk.f32.mxu1 %vm1142_vm3, %v4887_v18 }
0x1391   :  { %2680 = vperm.xlu1 %5731, %v2650_v59   ;;  %v2658_v43 = vmul.f32 %v2650_v59, %v2602_v12 }
0x1392   :  { %3060 = vperm.xlu0 %5730, %v3056_v50  }
0x1393   :  { %v2662_v15 = vsub.f32 %v6495_v33, %v2658_v43 }
0x1395   :  { %2689 = vperm.xlu1 %5731, %v2659_v26  }
0x1396   :  { %3070 = vrot.lane.b32.xlu0 %v6331_v10, %s5853_s30  ;;  %v2715_v10 = vld [vmem:[%s6968_s13] sm:$0xff] }
0x1397   :  { %5337 = vmatprep.mubr.msk.f32.mxu0 %vm1142_vm3, %v2715_v10 }
0x1399   :  { %2704 = vperm.xlu1 %5731, %v2662_v15  }
0x139d   :  { %3065 = vperm.xlu1 %5731, %v3057_v16  }
0x13a1   :  { %3072 = vrot.lane.b32.xlu1 %v6333_v21, %s5853_s30 }
0x1404   :  { %v2671_v4 = vpop.permute.xlu0 %2670 }
0x1405   :  { %v2684_v21 = vmul.f32 %v6586_v14, %v2671_v4 }
0x1408   :  { %v2666_v33 = vpop.permute.xlu1 %2665 }
0x1409   :  { %v2676_v44 = vpop.permute.xlu0 %2675  ;;  %v2683_v62 = vmul.f32 %v2666_v33, %v6588_v17 }
0x140a   :  { %v2685_v7 = vmul.f32 %v2676_v44, %v6598_v31  ;;  %v4899_v44 = vld [vmem:[%s6969_s15 + $0x10] sm:$0xff] }
0x140c   :  { %v2695_v49 = vpop.permute.xlu1 %2694 }
0x140d   :  { %v2700_v51 = vpop.permute.xlu0 %2699  ;;  %v2708_v56 = vadd.f32 %v2695_v49, %v2684_v21 }
0x140e   :  { %v2709_v12 = vadd.f32 %v2700_v51, %v2685_v7 }
0x140f   :  { %v2712_v13 = vmax.f32 %v2708_v56, 0.0 }
0x1410   :  { %v2681_v52 = vpop.permute.xlu1 %2680  ;;  %v2713_v24 = vmax.f32 %v2709_v12, 0.0 }
0x1411   :  { %v3061_v30 = vpop.permute.xlu0 %3060  ;;  %v2686_v14 = vmul.f32 %v6596_v0, %v2681_v52 }
0x1414   :  { %v2690_v5 = vpop.permute.xlu1 %2689 }
0x1415   :  { %v3071_v1 = vpop.permute.xlu0 %3070  ;;  %v2707_v8 = vadd.f32 %v2690_v5, %v2683_v62 }
0x1416   :  { %3076 = vst.msk [vmem:[#allocation2] sm:$0xff] %vm863_vm11, %v3071_v1 }
0x1417   :  { %3088 = vst.msk [vmem:[#allocation2] sm:$0xff] %vm7039_vm7, %v5852_v2  ;;  %v2711_v58 = vmax.f32 %v2707_v8, 0.0  ;;  %vm7046_vm7 = vmmov 0  }
0x1418   :  { %3092 = vst.msk [vmem:[#allocation2] sm:$0xff] %vm866_vm5, %v5852_v2  ;;  %v2705_v17 = vpop.permute.xlu1 %2704 }
0x1419   :  { %v5584_v23 = vpack.c.bf16 %v2712_v13, %v2711_v58  ;;  %v2710_v31 = vadd.f32 %v2705_v17, %v2686_v14  ;;  %v4900_v14 = vld [vmem:[%s6969_s15 + $0x18] sm:$0xff]  ;;  %v3108_v58 = vld [vmem:[%s6969_s15] sm:$0xff] }
0x141b   :  { %v2714_v25 = vmax.f32 %v2710_v31, 0.0  ;;  %5585 = vmatprep.subr.bf16.mxu0 %v5584_v23  ;;  %5593 = vmatprep.subr.bf16.mxu1 %v5584_v23 }
0x141c   :  { %5587 = vmatpush3.bf16.msra.mxu0 %v5584_v23  ;;  %5595 = vmatpush3.bf16.msra.mxu1 %v5584_v23  ;;  %v3066_v0 = vpop.permute.xlu1 %3065 }
0x141d   :  { %v5588_v28 = vpack.c.bf16 %v2714_v25, %v2713_v24 }
0x141f   :  { %5589 = vmatprep.subr.bf16.mxu0 %v5588_v28  ;;  %5597 = vmatprep.subr.bf16.mxu1 %v5588_v28  ;;  %v3096_v48 = vld [vmem:[#allocation2] sm:$0xff] }
0x1420   :  { %5591 = vmatpush3.bf16.msra.mxu0 %v5588_v28  ;;  %5599 = vmatpush3.bf16.msra.mxu1 %v5588_v28  ;;  %v3073_v34 = vpop.permute.xlu1 %3072  ;;  %v3104_v26 = vmul.f32 %v3096_v48, %v6197_v36  ;;  %v3100_v5 = vmul.f32 %v3096_v48, %v6206_v39  ;;  %v3109_v28 = vld [vmem:[%s6969_s15 + $0x8] sm:$0xff] }
0x1421   :  { %3077 = vst.msk [vmem:[#allocation2 + $0x8] sm:$0xff] %vm863_vm11, %v3073_v34  ;;  %5601 = vmatprep.subr.msk.bf16.mxu0 %vm6653_vm10, %v5860_v63  ;;  %v4905_v34 = vld [vmem:[%s6969_s15 + $0x20] sm:$0xff] }
0x1422   :  { %3089 = vst.msk [vmem:[#allocation2 + $0x8] sm:$0xff] %vm7042_vm14, %v5852_v2 }
0x1423   :  { %3093 = vst.msk [vmem:[#allocation2 + $0x8] sm:$0xff] %vm866_vm5, %v5852_v2  ;;  %5349 = vmatmul.mubr.msk.f32.vlgmr.msra.gmra.mrb[12].mxu1 %vm1142_vm3, %v4888_v35  ;;  %5338 = vmatmul.mubr.msk.f32.vlgmr.msra.gmra.mrb[12].mxu0 %vm1142_vm3, %v2716_v22  ;;  %v4906_v22 = vld [vmem:[%s6969_s15 + $0x28] sm:$0xff] }
0x1424   :  { %5603 = vmatpush3.bf16.msk.msra.mxu0 %vm6653_vm10, %v5860_v63  ;;  %5373 = vmatprep.mubr.msk.f32.mxu1 %vm1142_vm3, %v4899_v44 }
0x1425   :  { %5605 = vmatprep.subr.msk.bf16.mxu0 %vm6678_vm13, %v5860_v63 }
0x142a   :  { %v3097_v59 = vld [vmem:[#allocation2 + $0x8] sm:$0xff] }
0x142b   :  { %v5772_v50 = vpack.i.bf16 %v3097_v59, %v3096_v48  ;;  %v3105_v20 = vmul.f32 %v3097_v59, %v6197_v36  ;;  %v3101_v7 = vmul.f32 %v3097_v59, %v6206_v39 }
0x142d   :  { %v5782_v43 = vpack.i.bf16 %v3105_v20, %v3104_v26  ;;  %v5616_v12 = vpack.c.bf16 %v3101_v7, %v3100_v5 }
0x14f6   :  { %v5350_v38 = vpop.f32.mrb[12].mxu1  ;;  %v5339_v40 = vpop.f32.mrb[12].mxu0 }
0x14f7   :  { %v2873_v41 = vpop.f32.mrb[13].mxu1  ;;  %v2789_v42 = vpop.f32.mrb[13].mxu0 }
0x14f8   :  { %5355 = vmatprep.mubr.msk.f32.mxu0 %vm1241_vm6, %v2873_v41 }
0x14f9   :  { %5356 = vmatmul.mubr.msk.f32.vlgmr.msra.gmra.mrb[14].mxu0 %vm1241_vm6, %v5350_v38 }
0x14fa   :  { %5607 = vmatpush3.bf16.msk.msra.mxu0 %vm6678_vm13, %v5860_v63  ;;  %5362 = vmatprep.mubr.msk.f32.mxu0 %vm1241_vm6, %v2789_v42 }
0x1501   :  { %5363 = vmatmul.mubr.msk.f32.vlgmr.msra.gmra.mrb[14].mxu0 %vm1241_vm6, %v5339_v40 }
0x15d4   :  { %v5364_v19 = vpop.f32.mrb[14].mxu0 }
0x15d5   :  { %v3069_v45 = vadd.f32 %v5364_v19, %v3066_v0  ;;  %v3047_v46 = vpop.f32.mrb[15].mxu0 }
0x15d6   :  { %v3068_v47 = vadd.f32 %v3061_v30, %v3047_v46 }
0x15d7   :  { %3082 = vrot.lane.b32.xlu1 %v3069_v45, %s5853_s30 }
0x15d8   :  { %3080 = vrot.lane.b32.xlu0 %v3068_v47, %s5853_s30 }
0x15dc   :  { %5773 = vrot.lane.b32.xlu0 %v5772_v50, %s5856_s5 }
0x15e0   :  { %5783 = vrot.lane.b32.xlu0 %v5782_v43, %s5857_s28 }
0x1649   :  { %v3083_v15 = vpop.permute.xlu1 %3082 }
0x164a   :  { %3087 = vst.msk [vmem:[#allocation2 + $0x18] sm:$0xff] %vm863_vm11, %v3083_v15  ;;  %v3081_v16 = vpop.permute.xlu0 %3080 }
0x164b   :  { %3091 = vst.msk [vmem:[#allocation2 + $0x18] sm:$0xff] %vm7045_vm2, %v5852_v2 }
0x164c   :  { %3086 = vst.msk [vmem:[#allocation2 + $0x10] sm:$0xff] %vm863_vm11, %v3081_v16 }
0x164d   :  { %3095 = vst.msk [vmem:[#allocation2 + $0x18] sm:$0xff] %vm866_vm5, %v5852_v2 }
0x164e   :  { %3090 = vst.msk [vmem:[#allocation2 + $0x10] sm:$0xff] %vm7030_vm0, %v5852_v2  ;;  %v5774_v18 = vpop.permute.xlu0 %5773 }
0x164f   :  { %3094 = vst.msk [vmem:[#allocation2 + $0x10] sm:$0xff] %vm866_vm5, %v5852_v2  ;;  %v5776_v10 = vunpack.i.h.bf16 %v5774_v18  ;;  %v5775_v4 = vunpack.i.l.bf16 %v5774_v18 }
0x1651   :  { %v5608_v33 = vpack.c.bf16 %v5776_v10, %v5775_v4 }
0x1652   :  { %v5784_v13 = vpop.permute.xlu0 %5783 }
0x1653   :  { %5609 = vmatprep.subr.bf16.mxu1 %v5608_v33  ;;  %v5786_v17 = vunpack.i.h.bf16 %v5784_v13  ;;  %v5785_v23 = vunpack.i.l.bf16 %v5784_v13 }
0x1654   :  { %v3099_v49 = vld [vmem:[#allocation2 + $0x18] sm:$0xff]  ;;  %5611 = vmatpush3.bf16.msra.mxu1 %v5608_v33 }
0x1655   :  { %v3103_v52 = vmul.f32 %v3099_v49, %v6206_v39  ;;  %v3107_v54 = vmul.f32 %v3099_v49, %v6197_v36  ;;  %v5624_v24 = vpack.c.bf16 %v5786_v17, %v5785_v23 }
0x1656   :  { %v3098_v51 = vld [vmem:[#allocation2 + $0x10] sm:$0xff] }
0x1657   :  { %v3106_v21 = vmul.f32 %v3098_v51, %v6197_v36  ;;  %v5777_v30 = vpack.i.bf16 %v3099_v49, %v3098_v51  ;;  %v3102_v53 = vmul.f32 %v3098_v51, %v6206_v39 }
0x1659   :  { %5778 = vrot.lane.b32.xlu1 %v5777_v30, %s5856_s5  ;;  %v5620_v62 = vpack.c.bf16 %v3103_v52, %v3102_v53  ;;  %v5787_v56 = vpack.i.bf16 %v3107_v54, %v3106_v21  ;;  %v6754_v52 = vld [vmem:[%s6970_s17] sm:$0xff]  ;;  %v6765_v53 = vld [vmem:[%s6970_s17 + $0x8] sm:$0xff] }
0x165a   :  { %v6760_v54 = vld [vmem:[%s6971_s18] sm:$0xff] }
0x165d   :  { %5788 = vrot.lane.b32.xlu1 %v5787_v56, %s5857_s28 }
0x16cb   :  { %v5779_v1 = vpop.permute.xlu1 %5778 }
0x16cc   :  { %v5781_v8 = vunpack.i.h.bf16 %v5779_v1  ;;  %v5780_v29 = vunpack.i.l.bf16 %v5779_v1  ;;  %v6772_v1 = vld [vmem:[%s6971_s18 + $0x8] sm:$0xff] }
0x16ce   :  { %v5612_v11 = vpack.c.bf16 %v5781_v8, %v5780_v29 }
0x16cf   :  { %v5789_v31 = vpop.permute.xlu1 %5788 }
0x16d0   :  { %5613 = vmatprep.subr.bf16.mxu1 %v5612_v11  ;;  %v5791_v25 = vunpack.i.h.bf16 %v5789_v31  ;;  %v5790_v0 = vunpack.i.l.bf16 %v5789_v31 }
0x16d1   :  { %5615 = vmatpush3.bf16.msra.mxu1 %v5612_v11 }
0x16d2   :  { %5617 = vmatprep.subr.bf16.mxu1 %v5616_v12  ;;  %v5628_v35 = vpack.c.bf16 %v5791_v25, %v5790_v0 }
0x16d4   :  { %5374 = vmatmul.mubr.msk.f32.vlgmr.msra.gmra.mrb[14].mxu1 %vm1142_vm3, %v4900_v14 }
0x16d5   :  { %5619 = vmatpush3.bf16.msra.mxu1 %v5616_v12  ;;  %5384 = vmatprep.mubr.msk.f32.mxu1 %vm1142_vm3, %v3108_v58 }
0x16d6   :  { %5621 = vmatprep.subr.bf16.mxu1 %v5620_v62 }
0x16d9   :  { %5623 = vmatpush3.bf16.msra.mxu1 %v5620_v62 }
0x16da   :  { %5625 = vmatprep.subr.bf16.mxu1 %v5624_v24 }
0x16dc   :  { %5385 = vmatmul.mubr.msk.f32.vlgmr.msra.gmra.mrb[14].mxu1 %vm1142_vm3, %v3109_v28 }
0x16dd   :  { %5627 = vmatpush3.bf16.msra.mxu1 %v5624_v24  ;;  %5395 = vmatprep.mubr.msk.f32.mxu1 %vm1142_vm3, %v4905_v34  ;;  %v4909_v34 = vld [vmem:[%s6972_s16 + $0x10] sm:$0xff] }
0x16de   :  { %5629 = vmatprep.subr.bf16.mxu1 %v5628_v35  ;;  %5402 = vmatprep.mubr.msk.f32.mxu0 %vm1241_vm6, %v4909_v34 }
0x16e1   :  { %5631 = vmatpush3.bf16.msra.mxu1 %v5628_v35 }
0x16e2   :  { %5656 = vmatprep.subr.bf16.mxu1 %v5859_v57 }
0x16e4   :  { %5396 = vmatmul.mubr.msk.f32.vlgmr.msra.gmra.mrb[14].mxu1 %vm1142_vm3, %v4906_v22 }
0x16e5   :  { %5658 = vmatpush3.bf16.msk.msra.mxu1 %vm6678_vm13, %v5860_v63  ;;  %5452 = vmatprep.mubr.msk.f32.mxu1 %vm7046_vm7, %v5852_v2  ;;  %vm7051_vm13 = vcmask 540168  }
0x16e6   :  { %5659 = vmatprep.subr.bf16.mxu1 %v5859_v57 }
0x17b7   :  { %v5397_v38 = vpop.f32.mrb[14].mxu1 }
0x17b8   :  { %v3382_v40 = vpop.f32.mrb[15].mxu1  ;;  %v3396_v41 = vsel %vm1142_vm3, %v5397_v38, 0.0  ;;  %v3402_v46 = vmul.f32 %v5397_v38, %v5397_v38 }
0x17b9   :  { %3397 = vadd.xlane.f32.xlu1 %v3396_v41  ;;  %v3393_v42 = vsel %vm1142_vm3, %v3382_v40, 0.0  ;;  %v3401_v19 = vmul.f32 %v3382_v40, %v3382_v40 }
0x17ba   :  { %3394 = vadd.xlane.f32.xlu0 %v3393_v42  ;;  %v3406_v37 = vsel %vm1142_vm3, %v3402_v46, 0.0 }
0x17bb   :  { %v3403_v45 = vsel %vm1142_vm3, %v3401_v19, 0.0 }
0x17be   :  { %3404 = vadd.xlane.f32.xlu0 %v3403_v45 }
0x17c2   :  { %3407 = vadd.xlane.f32.xlu0 %v3406_v37 }
0x1846   :  { %v3398_v59 = vpop.xlane.xlu1 %3397 }
0x1847   :  { %v3395_v47 = vpop.xlane.xlu0 %3394  ;;  %v3400_v20 = vmul.f32 0.03125, %v3398_v59 }
0x1848   :  { %v3399_v48 = vmul.f32 0.03125, %v3395_v47 }
0x1849   :  { %v3412_v18 = vmul.f32 %v3400_v20, %v3400_v20 }
0x184a   :  { %v3411_v26 = vmul.f32 %v3399_v48, %v3399_v48 }
0x184b   :  { %v3405_v50 = vpop.xlane.xlu0 %3404 }
0x184c   :  { %v3409_v43 = vmul.f32 0.03125, %v3405_v50 }
0x184e   :  { %v3413_v15 = vsub.f32 %v3409_v43, %v3411_v26  ;;  %v3477_v43 = vld [vmem:[%s6972_s16] sm:$0xff] }
0x184f   :  { %v3408_v16 = vpop.xlane.xlu0 %3407 }
0x1850   :  { %v3415_v10 = vmax.f32 %v3413_v15, 0.0  ;;  %v3410_v4 = vmul.f32 0.03125, %v3408_v16  ;;  %v3478_v15 = vld [vmem:[%s6972_s16 + $0x8] sm:$0xff]  ;;  %v4915_v16 = vld [vmem:[%s6972_s16 + $0x20] sm:$0xff] }
0x1852   :  { %v3419_v33 = vadd.f32 1e-05, %v3415_v10  ;;  %v3414_v44 = vsub.f32 %v3410_v4, %v3412_v18  ;;  %v4916_v18 = vld [vmem:[%s6972_s16 + $0x28] sm:$0xff] }
0x1854   :  { %5840 = vrsqrt.f32 %v3419_v33  ;;  %v3416_v49 = vmax.f32 %v3414_v44, 0.0 }
0x1856   :  { %v3420_v51 = vadd.f32 1e-05, %v3416_v49 }
0x1858   :  { %5842 = vrsqrt.f32 %v3420_v51 }
0x185e   :  { %v5841_v21 = vpop.eup %5840 }
0x185f   :  { %v3423_v30 = vmul.f32 %v5841_v21, %v6754_v52 }
0x1861   :  { %3433 = vperm.xlu1 %5731, %v3423_v30   ;;  %v3427_v62 = vmul.f32 %v3423_v30, %v3399_v48 }
0x1862   :  { %v5843_v56 = vpop.eup %5842 }
0x1863   :  { %v3429_v5 = vsub.f32 %v6760_v54, %v3427_v62  ;;  %v3424_v7 = vmul.f32 %v5843_v56, %v6765_v53 }
0x1865   :  { %3445 = vperm.xlu1 %5731, %v3429_v5   ;;  %3438 = vperm.xlu0 %5730, %v3424_v7   ;;  %v3428_v8 = vmul.f32 %v3424_v7, %v3400_v20 }
0x1867   :  { %v3430_v29 = vsub.f32 %v6772_v1, %v3428_v8 }
0x1869   :  { %3450 = vperm.xlu1 %5731, %v3430_v29  }
0x18e0   :  { %v3434_v11 = vpop.permute.xlu1 %3433 }
0x18e1   :  { %v3441_v12 = vmul.f32 %v3434_v11, %v3382_v40 }
0x18e4   :  { %v3446_v13 = vpop.permute.xlu1 %3445  ;;  %v3439_v14 = vpop.permute.xlu0 %3438 }
0x18e5   :  { %v3453_v58 = vadd.f32 %v3446_v13, %v3441_v12  ;;  %v3442_v23 = vmul.f32 %v5397_v38, %v3439_v14 }
0x18e7   :  { %v3455_v17 = vmax.f32 %v3453_v58, 0.0 }
0x18e8   :  { %v3451_v31 = vpop.permute.xlu1 %3450 }
0x18e9   :  { %v3454_v24 = vadd.f32 %v3451_v31, %v3442_v23  ;;  %3459 = vrot.lane.b32.xlu0 %v3455_v17, %s5853_s30 }
0x18eb   :  { %v3456_v25 = vmax.f32 %v3454_v24, 0.0 }
0x18ed   :  { %3461 = vrot.lane.b32.xlu1 %v3456_v25, %s5853_s30 }
0x195b   :  { %v3460_v0 = vpop.permute.xlu0 %3459 }
0x195c   :  { %3465 = vst.msk [vmem:[#allocation2] sm:$0xff] %vm863_vm11, %v3460_v0 }
0x195d   :  { %3467 = vst.msk [vmem:[#allocation2] sm:$0xff] %vm7047_vm9, %v5852_v2 }
0x195e   :  { %3469 = vst.msk [vmem:[#allocation2] sm:$0xff] %vm866_vm5, %v5852_v2 }
0x195f   :  { %v3462_v28 = vpop.permute.xlu1 %3461 }
0x1960   :  { %3466 = vst.msk [vmem:[#allocation2 + $0x8] sm:$0xff] %vm863_vm11, %v3462_v28 }
0x1961   :  { %3468 = vst.msk [vmem:[#allocation2 + $0x8] sm:$0xff] %vm7048_vm4, %v5852_v2  ;;  %vm7053_vm4 = vmmov %vm7050_vm1 }
0x1962   :  { %3470 = vst.msk [vmem:[#allocation2 + $0x8] sm:$0xff] %vm866_vm5, %v5852_v2 }
0x1965   :  { %v3471_v35 = vld [vmem:[#allocation2] sm:$0xff] }
0x1966   :  { %v3475_v40 = vmul.f32 %v3471_v35, %v6197_v36  ;;  %v3473_v19 = vmul.f32 %v3471_v35, %v6206_v39 }
0x1969   :  { %v3472_v22 = vld [vmem:[#allocation2 + $0x8] sm:$0xff] }
0x196a   :  { %v5792_v38 = vpack.i.bf16 %v3472_v22, %v3471_v35  ;;  %v3476_v41 = vmul.f32 %v3472_v22, %v6197_v36  ;;  %v3474_v45 = vmul.f32 %v3472_v22, %v6206_v39  ;;  %v4910_v36 = vld [vmem:[%s6972_s16 + $0x18] sm:$0xff] }
0x196c   :  { %5793 = vrot.lane.b32.xlu0 %v5792_v38, %s5856_s5  ;;  %v5797_v42 = vpack.i.bf16 %v3476_v41, %v3475_v40  ;;  %v5636_v50 = vpack.c.bf16 %v3474_v45, %v3473_v19  ;;  %v4117_v41 = vld [vmem:[%s6973_s20] sm:$0xff] }
0x196e   :  { %5798 = vrot.lane.b32.xlu1 %v5797_v42, %s5857_s28 }
0x19de   :  { %v5794_v46 = vpop.permute.xlu0 %5793 }
0x19df   :  { %v5796_v37 = vunpack.i.h.bf16 %v5794_v46  ;;  %v5795_v47 = vunpack.i.l.bf16 %v5794_v46 }
0x19e0   :  { %v5799_v48 = vpop.permute.xlu1 %5798 }
0x19e1   :  { %v5632_v59 = vpack.c.bf16 %v5796_v37, %v5795_v47  ;;  %v5801_v20 = vunpack.i.h.bf16 %v5799_v48  ;;  %v5800_v26 = vunpack.i.l.bf16 %v5799_v48 }
0x19e3   :  { %5633 = vmatprep.subr.bf16.mxu0 %v5632_v59  ;;  %v5640_v39 = vpack.c.bf16 %v5801_v20, %v5800_v26  ;;  %v4920_v20 = vld [vmem:[%s6974_s19 + $0x8] sm:$0xff] }
0x19e4   :  { %5635 = vmatpush3.bf16.msra.mxu0 %v5632_v59 }
0x19e5   :  { %5637 = vmatprep.subr.bf16.mxu0 %v5636_v50 }
0x19e7   :  { %5403 = vmatmul.mubr.msk.f32.vlgmr.msra.gmra.mrb[16].mxu0 %vm1241_vm6, %v4910_v36 }
0x19e8   :  { %5639 = vmatpush3.bf16.msra.mxu0 %v5636_v50  ;;  %5409 = vmatprep.mubr.msk.f32.mxu0 %vm1241_vm6, %v3477_v43  ;;  %v3810_v50 = vld [vmem:[%s6974_s19] sm:$0xff] }
0x19e9   :  { %5641 = vmatprep.subr.bf16.mxu0 %v5640_v39 }
0x19ef   :  { %5410 = vmatmul.mubr.msk.f32.vlgmr.msra.gmra.mrb[16].mxu0 %vm1241_vm6, %v3478_v15 }
0x19f0   :  { %5643 = vmatpush3.bf16.msra.mxu0 %v5640_v39  ;;  %5416 = vmatprep.mubr.msk.f32.mxu0 %vm1241_vm6, %v4915_v16 }
0x19f1   :  { %5644 = vmatprep.subr.bf16.mxu0 %v5859_v57 }
0x19f7   :  { %5417 = vmatmul.mubr.msk.f32.vlgmr.msra.gmra.mrb[16].mxu0 %vm1241_vm6, %v4916_v18 }
0x19f8   :  { %5423 = vmatprep.mubr.msk.f32.mxu0 %vm7046_vm7, %v5852_v2 }
0x1aca   :  { %v5418_v10 = vpop.f32.mrb[16].mxu0 }
0x1acb   :  { %v3735_v4 = vpop.f32.mrb[17].mxu0  ;;  %v3749_v33 = vsel %vm1142_vm3, %v5418_v10, 0.0  ;;  %v3755_v51 = vmul.f32 %v5418_v10, %v5418_v10 }
0x1acc   :  { %v3754_v44 = vmul.f32 %v3735_v4, %v3735_v4  ;;  %3750 = vadd.xlane.f32.xlu1 %v3749_v33  ;;  %v3746_v49 = vsel %vm1142_vm3, %v3735_v4, 0.0 }
0x1acd   :  { %3747 = vadd.xlane.f32.xlu0 %v3746_v49  ;;  %v3759_v30 = vsel %vm1142_vm3, %v3755_v51, 0.0 }
0x1ace   :  { %v3756_v21 = vsel %vm1142_vm3, %v3754_v44, 0.0 }
0x1ad1   :  { %3757 = vadd.xlane.f32.xlu0 %v3756_v21 }
0x1ad5   :  { %3760 = vadd.xlane.f32.xlu0 %v3759_v30 }
0x1b59   :  { %v3751_v5 = vpop.xlane.xlu1 %3750 }
0x1b5a   :  { %v3748_v62 = vpop.xlane.xlu0 %3747  ;;  %v3753_v8 = vmul.f32 0.03125, %v3751_v5 }
0x1b5b   :  { %v3752_v56 = vmul.f32 0.03125, %v3748_v62 }
0x1b5c   :  { %v3765_v14 = vmul.f32 %v3753_v8, %v3753_v8 }
0x1b5d   :  { %v3764_v29 = vmul.f32 %v3752_v56, %v3752_v56 }
0x1b5e   :  { %v3758_v7 = vpop.xlane.xlu0 %3757 }
0x1b5f   :  { %v3762_v11 = vmul.f32 0.03125, %v3758_v7 }
0x1b61   :  { %v3766_v12 = vsub.f32 %v3762_v11, %v3764_v29 }
0x1b62   :  { %v3761_v13 = vpop.xlane.xlu0 %3760 }
0x1b63   :  { %v3768_v58 = vmax.f32 %v3766_v12, 0.0  ;;  %v3763_v17 = vmul.f32 0.03125, %v3761_v13  ;;  %v4932_v13 = vld [vmem:[%s6975_s21 + $0x8] sm:$0xff] }
0x1b65   :  { %v3772_v23 = vadd.f32 1e-05, %v3768_v58  ;;  %v3767_v31 = vsub.f32 %v3763_v17, %v3765_v14 }
0x1b67   :  { %5844 = vrsqrt.f32 %v3772_v23  ;;  %v3769_v24 = vmax.f32 %v3767_v31, 0.0  ;;  %v4143_v31 = vld [vmem:[%s6975_s21] sm:$0xff] }
0x1b69   :  { %v3773_v25 = vadd.f32 1e-05, %v3769_v24 }
0x1b6b   :  { %5846 = vrsqrt.f32 %v3773_v25  ;;  %v4935_v25 = vld [vmem:[%s6975_s21 + $0x10] sm:$0xff] }
0x1b71   :  { %v5845_v0 = vpop.eup %5844 }
0x1b72   :  { %v3776_v28 = vmul.f32 %v5845_v0, %v6754_v52  ;;  %v3959_v52 = vmul.u32 2, %v6117_v60 }
0x1b74   :  { %3786 = vperm.xlu1 %5731, %v3776_v28   ;;  %v3780_v34 = vmul.f32 %v3776_v28, %v3752_v56  ;;  %vm3961_vm11 = vcmp.eq.s32.totalorder %v6008_v3, %v3959_v52  ;;  %v3965_v26 = vadd.s32 1, %v3959_v52 }
0x1b75   :  { %v5847_v35 = vpop.eup %5846 }
0x1b76   :  { %v3782_v22 = vsub.f32 %v6760_v54, %v3780_v34  ;;  %v3777_v38 = vmul.f32 %v5847_v35, %v6765_v53  ;;  %v3960_v54 = vmul.u32 2, %v6120_v61  ;;  %vm3967_vm2 = vcmp.eq.s32.totalorder %v6008_v3, %v3965_v26 }
0x1b78   :  { %3798 = vperm.xlu1 %5731, %v3782_v22   ;;  %3791 = vperm.xlu0 %5730, %v3777_v38   ;;  %v3781_v40 = vmul.f32 %v3777_v38, %v3753_v8  ;;  %vm3962_vm5 = vcmp.eq.s32.totalorder %v6008_v3, %v3960_v54  ;;  %v3966_v36 = vadd.s32 1, %v3960_v54 }
0x1b79   :  { %vm5660_vm14 = vmpackc.low %vm3962_vm5, %vm3961_vm11 }
0x1b7a   :  { %v3783_v42 = vsub.f32 %v6772_v1, %v3781_v40  ;;  %5661 = vmatpush3.bf16.msk.msra.mxu1 %vm5660_vm14, %v5860_v63  ;;  %vm3968_vm0 = vcmp.eq.s32.totalorder %v6008_v3, %v3966_v36  ;;  %vm7056_vm11 = vmmov %vm7050_vm1 }
0x1b7b   :  { %5476 = vmatprep.subr.mxu1 %v5852_v2  ;;  %vm5654_vm9 = vmpackc.low %vm3968_vm0, %vm3967_vm2 }
0x1b7c   :  { %4120 = vperm.xlu0 %5730, %v4117_v41   ;;  %3803 = vperm.xlu1 %5731, %v3783_v42  }
0x1b80   :  { %4124 = vrot.lane.b32.xlu1 %v6174_v27, %s5853_s30 }
0x1bf3   :  { %v3787_v53 = vpop.permute.xlu1 %3786 }
0x1bf4   :  { %v3794_v45 = vmul.f32 %v3787_v53, %v3735_v4 }
0x1bf7   :  { %v3799_v1 = vpop.permute.xlu1 %3798  ;;  %v3792_v19 = vpop.permute.xlu0 %3791 }
0x1bf8   :  { %v3806_v46 = vadd.f32 %v3799_v1, %v3794_v45  ;;  %v3795_v37 = vmul.f32 %v5418_v10, %v3792_v19  ;;  %v4396_v1 = vld [vmem:[%s6976_s23] sm:$0xff] }
0x1bfa   :  { %v3808_v60 = vmax.f32 %v3806_v46, 0.0  ;;  %v4400_v46 = vld [vmem:[%s6977_s24] sm:$0xff] }
0x1bfb   :  { %v3804_v27 = vpop.permute.xlu1 %3803  ;;  %v4121_v4 = vpop.permute.xlu0 %4120 }
0x1bfc   :  { %v3807_v47 = vadd.f32 %v3804_v27, %v3795_v37 }
0x1bfe   :  { %v3809_v48 = vmax.f32 %v3807_v47, 0.0 }
0x1bff   :  { %v4125_v61 = vpop.permute.xlu1 %4124 }
0x1c00   :  { %v5645_v59 = vpack.c.bf16 %v3809_v48, %v3808_v60  ;;  %4127 = vst.msk [vmem:[#allocation2] sm:$0xff] %vm7049_vm8, %v4125_v61 }
0x1c01   :  { %4133 = vst.msk [vmem:[#allocation2] sm:$0xff] %vm7050_vm1, %v5852_v2 }
0x1c02   :  { %4135 = vst.msk [vmem:[#allocation2] sm:$0xff] %vm7051_vm13, %v5852_v2  ;;  %5646 = vmatpush3.bf16.msra.mxu0 %v5645_v59 }
0x1c03   :  { %5647 = vmatprep.subr.bf16.mxu0 %v5859_v57 }
0x1c05   :  { %5424 = vmatmul.mubr.msk.f32.vlgmr.msra.gmra.mrb[18].mxu0 %vm1241_vm6, %v3810_v50 }
0x1c06   :  { %5649 = vmatpush3.bf16.msra.mxu0 %v5645_v59  ;;  %5430 = vmatprep.mubr.msk.f32.mxu0 %vm7046_vm7, %v5852_v2 }
0x1c07   :  { %5650 = vmatprep.subr.bf16.mxu0 %v5859_v57 }
0x1c09   :  { %5431 = vmatmul.mubr.msk.f32.vlgmr.msra.gmra.mrb[20].mxu0 %vm1241_vm6, %v4920_v20  ;;  %v4137_v49 = vld [vmem:[#allocation2] sm:$0xff] }
0x1c0a   :  { %5652 = vmatpush3.bf16.msk.msra.mxu0 %vm6653_vm10, %v5860_v63  ;;  %5441 = vmatprep.mubr.msk.f32.mxu0 %vm7046_vm7, %v5852_v2  ;;  %vm7052_vm10 = vmmov %vm7049_vm8  ;;  %v4141_v30 = vmul.f32 %v4137_v49, %v6022_v6  ;;  %v4139_v29 = vmul.f32 %v4137_v49, %v6032_v9 }
0x1c0b   :  { %5653 = vmatprep.subr.bf16.mxu0 %v5859_v57 }
0x1c0e   :  { %5655 = vmatpush3.bf16.msk.msra.mxu0 %vm5654_vm9, %v5860_v63 }
0x1c0f   :  { %5662 = vmatprep.subr.bf16.mxu0 %v5859_v57 }
0x1cd8   :  { %v3880_v43 = vpop.f32.mrb[18].mxu0 }
0x1cd9   :  { %v5425_v39 = vpop.f32.mrb[19].mxu0  ;;  %5453 = vmatmul.mubr.msk.f32.vlgmr.msra.gmra.mrb[16].mxu1 %vm1142_vm3, %v3880_v43  ;;  %v4937_v43 = vld [vmem:[%s6978_s22 + $0x8] sm:$0xff] }
0x1cda   :  { %5478 = vmatprep.mubr.msk.f32.mxu1 %vm7046_vm7, %v5852_v2 }
0x1cdc   :  { %v3955_v32 = vpop.f32.mrb[20].mxu0 }
0x1cdd   :  { %v5432_v15 = vpop.f32.mrb[21].mxu0  ;;  %5442 = vmatmul.mubr.msk.f32.vlgmr.msra.gmra.mrb[22].mxu0 %vm1142_vm3, %v3955_v32  ;;  %vm7054_vm3 = vmmov %vm7051_vm13  ;;  %v4940_v32 = vld [vmem:[%s6978_s22 + $0x10] sm:$0xff] }
0x1cde   :  { %5459 = vmatprep.mubr.msk.f32.mxu0 %vm7046_vm7, %v5852_v2  ;;  %vm7057_vm5 = vmmov %vm7054_vm3 }
0x1dac   :  { %v4113_v3 = vpop.f32.mrb[16].mxu1 }
0x1dad   :  { %v5454_v16 = vpop.f32.mrb[17].mxu1 }
0x1db0   :  { %v4040_v18 = vpop.f32.mrb[22].mxu0 }
0x1db1   :  { %v4114_v63 = vadd.f32 %v4113_v3, %v4040_v18  ;;  %v5443_v10 = vpop.f32.mrb[23].mxu0 }
0x1db2   :  { %v32_v10 = vstv %s6979_s26 }
0x1db3   :  { %v4123_v33 = vadd.f32 %v4121_v4, %v4114_v63  ;;  %33 = vst [vmem:[#allocation3] sm:$0x1] %v32_v10 }
0x1db5   :  { %4129 = vrot.lane.b32.xlu0 %v4123_v33, %s5853_s30 }
0x1e27   :  { %v4130_v44 = vpop.permute.xlu0 %4129 }
0x1e28   :  { %4132 = vst.msk [vmem:[#allocation2 + $0x8] sm:$0xff] %vm7052_vm10, %v4130_v44 }
0x1e29   :  { %4134 = vst.msk [vmem:[#allocation2 + $0x8] sm:$0xff] %vm7053_vm4, %v5852_v2 }
0x1e2a   :  { %4136 = vst.msk [vmem:[#allocation2 + $0x8] sm:$0xff] %vm7054_vm3, %v5852_v2 }
0x1e31   :  { %v4138_v51 = vld [vmem:[#allocation2 + $0x8] sm:$0xff] }
0x1e32   :  { %v5802_v21 = vpack.i.bf16 %v4138_v51, %v4137_v49  ;;  %v4142_v62 = vmul.f32 %v4138_v51, %v6022_v6  ;;  %v4140_v11 = vmul.f32 %v4138_v51, %v6032_v9 }
0x1e34   :  { %5803 = vrot.lane.b32.xlu1 %v5802_v21, %s5856_s5  ;;  %v5807_v56 = vpack.i.bf16 %v4142_v62, %v4141_v30  ;;  %v5666_v14 = vpack.c.bf16 %v4140_v11, %v4139_v29 }
0x1e36   :  { %5808 = vrot.lane.b32.xlu0 %v5807_v56, %s5857_s28 }
0x1ea6   :  { %v5804_v5 = vpop.permute.xlu1 %5803 }
0x1ea7   :  { %v5806_v7 = vunpack.i.h.bf16 %v5804_v5  ;;  %v5805_v8 = vunpack.i.l.bf16 %v5804_v5 }
0x1ea8   :  { %v5809_v58 = vpop.permute.xlu0 %5808 }
0x1ea9   :  { %v5663_v12 = vpack.c.bf16 %v5806_v7, %v5805_v8  ;;  %v5811_v17 = vunpack.i.h.bf16 %v5809_v58  ;;  %v5810_v23 = vunpack.i.l.bf16 %v5809_v58  ;;  %v4692_v7 = vld [vmem:[#allocation3] sm:$0x1] }
0x1eaa   :  { %v4691_v58 = vld [vmem:[%s6980_s25] sm:$0x1] }
0x1eab   :  { %5664 = vmatpush3.bf16.msra.mxu0 %v5663_v12  ;;  %v5669_v24 = vpack.c.bf16 %v5811_v17, %v5810_v23  ;;  %v4700_v17 = vsub.s32 0, %v6107_v55 }
0x1eac   :  { %5665 = vmatprep.subr.bf16.mxu0 %v5859_v57 }
0x1eae   :  { %5460 = vmatmul.mubr.msk.f32.vlgmr.msra.gmra.mrb[24].mxu0 %vm1241_vm6, %v4932_v13 }
0x1eaf   :  { %5667 = vmatpush3.bf16.msra.mxu0 %v5666_v14  ;;  %5466 = vmatprep.mubr.msk.f32.mxu0 %vm7046_vm7, %v5852_v2 }
0x1eb0   :  { %5668 = vmatprep.subr.bf16.mxu0 %v5859_v57 }
0x1eb6   :  { %5467 = vmatmul.mubr.msk.f32.vlgmr.msra.gmra.mrb[24].mxu0 %vm1241_vm6, %v4143_v31 }
0x1eb7   :  { %5670 = vmatpush3.bf16.msra.mxu0 %v5669_v24  ;;  %5473 = vmatprep.mubr.msk.f32.mxu0 %vm7046_vm7, %v5852_v2 }
0x1eb8   :  { %5491 = vmatprep.subr.mxu0 %v5852_v2 }
0x1ebe   :  { %5474 = vmatmul.mubr.msk.f32.vlgmr.msra.gmra.mrb[24].mxu0 %vm1241_vm6, %v4935_v25  ;;  %vm7055_vm6 = vmmov %vm7049_vm8 }
0x1ebf   :  { %5493 = vmatprep.mubr.msk.f32.mxu0 %vm7046_vm7, %v5852_v2 }
0x1f91   :  { %v4379_v57 = vpop.f32.mrb[24].mxu0 }
0x1f92   :  { %v4388_v0 = vmul.f32 %v4379_v57, %v4379_v57  ;;  %v5475_v28 = vpop.f32.mrb[25].mxu0  ;;  %v4384_v34 = vsel %vm360_vm12, %v4379_v57, 0.0 }
0x1f93   :  { %4385 = vadd.xlane.f32.xlu1 %v4384_v34 }
0x1f94   :  { %v4389_v35 = vsel %vm360_vm12, %v4388_v0, 0.0 }
0x1f95   :  { %4390 = vadd.xlane.f32.xlu0 %v4389_v35 }
0x2020   :  { %v4386_v22 = vpop.xlane.xlu1 %4385 }
0x2021   :  { %v4387_v38 = vmul.f32 0.015625, %v4386_v22 }
0x2022   :  { %v4391_v40 = vpop.xlane.xlu0 %4390 }
0x2023   :  { %v4393_v41 = vmul.f32 %v4387_v38, %v4387_v38  ;;  %v4392_v42 = vmul.f32 0.015625, %v4391_v40 }
0x2025   :  { %v4394_v52 = vsub.f32 %v4392_v42, %v4393_v41 }
0x2027   :  { %v4395_v54 = vmax.f32 %v4394_v52, 0.0 }
0x2029   :  { %v4397_v53 = vadd.f32 1e-05, %v4395_v54 }
0x202b   :  { %5848 = vrsqrt.f32 %v4397_v53 }
0x2035   :  { %v5849_v19 = vpop.eup %5848 }
0x2036   :  { %v4399_v45 = vmul.f32 %v5849_v19, %v4396_v1 }
0x2038   :  { %4405 = vperm.xlu0 %5730, %v4399_v45   ;;  %v4401_v37 = vmul.f32 %v4399_v45, %v4387_v38 }
0x203a   :  { %v4402_v27 = vsub.f32 %v4400_v46, %v4401_v37 }
0x203c   :  { %4411 = vperm.xlu1 %5731, %v4402_v27  }
0x20b7   :  { %v4406_v47 = vpop.permute.xlu0 %4405 }
0x20b8   :  { %v4408_v60 = vmul.f32 %v4406_v47, %v4379_v57 }
0x20bb   :  { %v4412_v48 = vpop.permute.xlu1 %4411 }
0x20bc   :  { %v4414_v61 = vadd.f32 %v4412_v48, %v4408_v60 }
0x20be   :  { %v4415_v59 = vmax.f32 %v4414_v61, 0.0 }
0x20c0   :  { %4417 = vrot.lane.b32.xlu1 %v4415_v59, %s5853_s30 }
0x2132   :  { %v4418_v50 = vpop.permute.xlu1 %4417 }
0x2133   :  { %4420 = vst.msk [vmem:[#allocation2] sm:$0xff] %vm7055_vm6, %v4418_v50 }
0x2134   :  { %4421 = vst.msk [vmem:[#allocation2] sm:$0xff] %vm7056_vm11, %v5852_v2 }
0x2135   :  { %4422 = vst.msk [vmem:[#allocation2] sm:$0xff] %vm7057_vm5, %v5852_v2 }
0x213c   :  { %v4423_v20 = vld [vmem:[#allocation2] sm:$0xff] }
0x213d   :  { %4430 = vrot.lane.b32.xlu0 %v4423_v20, %s5856_s5  ;;  %v4425_v26 = vmul.f32 %v4423_v20, %v6022_v6  ;;  %v4424_v36 = vmul.f32 %v4423_v20, %v6032_v9  ;;  %v4426_v6 = vld [vmem:[%s6978_s22] sm:$0xff] }
0x213f   :  { %4582 = vrot.lane.b32.xlu1 %v4425_v26, %s5857_s28 }
0x21af   :  { %v4431_v39 = vpop.permute.xlu0 %4430 }
0x21b0   :  { %5477 = vmatpush3.msra.mxu1 %v4431_v39 }
0x21b1   :  { %5479 = vmatmul.mubr.msk.f32.vlgmr.msra.gmra.mrb[18].mxu1 %vm413_vm15, %v4937_v43  ;;  %5481 = vmatprep.subr.mxu1 %v5852_v2  ;;  %v4583_v9 = vpop.permute.xlu1 %4582 }
0x21b2   :  { %5482 = vmatpush3.msra.mxu1 %v4424_v36  ;;  %5483 = vmatprep.mubr.msk.f32.mxu1 %vm7046_vm7, %v5852_v2 }
0x21b3   :  { %5486 = vmatprep.subr.mxu1 %v5852_v2 }
0x21b9   :  { %5484 = vmatmul.mubr.msk.f32.vlgmr.msra.gmra.mrb[18].mxu1 %vm413_vm15, %v4426_v6 }
0x21ba   :  { %5487 = vmatpush3.msra.mxu1 %v4583_v9  ;;  %5488 = vmatprep.mubr.msk.f32.mxu1 %vm7046_vm7, %v5852_v2 }
0x21c1   :  { %5489 = vmatmul.mubr.msk.f32.vlgmr.msra.gmra.mrb[18].mxu1 %vm413_vm15, %v4940_v32 }
0x2294   :  { %v4654_v15 = vpop.f32.mrb[18].mxu1 }
0x2295   :  { %v4663_v3 = vmul.f32 %v4654_v15, %v4654_v15  ;;  %v5490_v16 = vpop.f32.mrb[19].mxu1  ;;  %v4659_v18 = vsel %vm360_vm12, %v4654_v15, 0.0 }
0x2296   :  { %4660 = vadd.xlane.f32.xlu0 %v4659_v18 }
0x2297   :  { %v4664_v63 = vsel %vm360_vm12, %v4663_v3, 0.0  ;;  %vm4775_vm12 = vcmask 516096  }
0x2298   :  { %4665 = vadd.xlane.f32.xlu1 %v4664_v63 }
0x2323   :  { %v4661_v2 = vpop.xlane.xlu0 %4660 }
0x2324   :  { %v4662_v4 = vmul.f32 0.015625, %v4661_v2 }
0x2325   :  { %v4666_v33 = vpop.xlane.xlu1 %4665 }
0x2326   :  { %v4668_v44 = vmul.f32 %v4662_v4, %v4662_v4  ;;  %v4667_v49 = vmul.f32 0.015625, %v4666_v33 }
0x2328   :  { %v4669_v51 = vsub.f32 %v4667_v49, %v4668_v44 }
0x232a   :  { %v4670_v21 = vmax.f32 %v4669_v51, 0.0 }
0x232c   :  { %v4672_v30 = vadd.f32 1e-05, %v4670_v21 }
0x232e   :  { %5850 = vrsqrt.f32 %v4672_v30 }
0x2338   :  { %v5851_v62 = vpop.eup %5850 }
0x2339   :  { %v4674_v56 = vmul.f32 %v5851_v62, %v4396_v1 }
0x233b   :  { %4680 = vperm.xlu0 %5730, %v4674_v56   ;;  %v4676_v5 = vmul.f32 %v4674_v56, %v4662_v4 }
0x233d   :  { %v4677_v8 = vsub.f32 %v4400_v46, %v4676_v5 }
0x233f   :  { %4695 = vperm.xlu0 %5730, %v4692_v7   ;;  %4686 = vperm.xlu1 %5731, %v4677_v8  }
0x23ba   :  { %v4681_v29 = vpop.permute.xlu0 %4680 }
0x23bb   :  { %v4683_v11 = vmul.f32 %v4681_v29, %v4654_v15 }
0x23be   :  { %v4687_v12 = vpop.permute.xlu1 %4686  ;;  %v4696_v23 = vpop.permute.xlu0 %4695 }
0x23bf   :  { %v4689_v13 = vadd.f32 %v4687_v12, %v4683_v11  ;;  %v4701_v31 = vrot.slane %v4696_v23, %v4700_v17 }
0x23c1   :  { %v4690_v14 = vmax.f32 %v4689_v13, 0.0 }
0x23c3   :  { %5492 = vmatpush3.msra.mxu0 %v4690_v14 }
0x23c4   :  { %5494 = vmatmul.mubr.msk.f32.vlgmr.msra.gmra.mrb[26].mxu0 %vm413_vm15, %v4691_v58 }
0x2497   :  { %v4771_v24 = vpop.f32.mrb[26].mxu0 }
0x2498   :  { %v4772_v25 = vadd.f32 %v4771_v24, %v4701_v31  ;;  %v5495_v57 = vpop.f32.mrb[27].mxu0 }
0x249a   :  { %4776 = vst.msk [vmem:[%s6981_s27] sm:$0x1] %vm4775_vm12, %v4772_v25 }

</bundles_post_ra>
